<compile_context>
chip_gen: v7x
topology: tpu7x:2x2x1
jax: 0.10.0
libtpu: 0.0.40
codegen_flags: <defaults>
</compile_context>

<pallas_src>
import functools
import math

import jax
import jax.numpy as jnp
from jax.experimental import pallas as pl
from jax.experimental.pallas import tpu as pltpu


def _mha_kernel(*refs, num_heads, head_dim, qkv_activation, input_layernorm,
                ln_eps):
    if input_layernorm:
        x_ref, wqkv_ref, wout_ref, g_ref, b_ref, o_ref, acc_ref = refs
    else:
        x_ref, wqkv_ref, wout_ref, o_ref, acc_ref = refs
        g_ref = b_ref = None

    H, D = num_heads, head_dim
    HD = H * D
    BT, L, in_dim = x_ref.shape
    out_dim = o_ref.shape[-1]
    R = BT * L                      # MXU LHS rows per grid step
    op_dtype = wqkv_ref.dtype       # MXU operand dtype (f32, or bf16 path)

    # ---- (optional) input LayerNorm -- elementwise math kept in f32 ----
    x2 = x_ref[...].reshape(R, in_dim)
    if input_layernorm:
        xf = x2.astype(jnp.float32)
        mu = jnp.mean(xf, axis=-1, keepdims=True)
        var = jnp.mean(jnp.square(xf - mu), axis=-1, keepdims=True)
        xn = (xf - mu) * jax.lax.rsqrt(var + ln_eps)
        xn = xn * g_ref[...].astype(jnp.float32) + b_ref[...].astype(jnp.float32)
        x2 = xn.astype(op_dtype)
    else:
        x2 = x2.astype(op_dtype)

    # ---- fused QKV projection: [BT*L, in_dim] @ [in_dim, 3*H*D] ----
    qkv = jnp.dot(x2, wqkv_ref[...], preferred_element_type=jnp.float32)
    if qkv_activation == "relu":
        qkv = jnp.maximum(qkv, 0.0)
    elif qkv_activation == "tanh":
        qkv = jnp.tanh(qkv)
    qkv3 = qkv.reshape(BT, L, 3 * HD)

    # ---- additive causal bias, built once per step (not per head) ----
    # Equivalent to sequence_mask(arange(1, L+1)): query i attends to j <= i.
    row = jax.lax.broadcasted_iota(jnp.int32, (L, L), 0)
    col = jax.lax.broadcasted_iota(jnp.int32, (L, L), 1)
    bias2 = jnp.where(col <= row, 0.0, -1e30).astype(jnp.float32)
    bias = jnp.broadcast_to(bias2[None, :, :], (BT, L, L))   # hoisted broadcast

    scale = 1.0 / math.sqrt(float(D))

    # ---- per-head attention, batched over BT; heads -> VMEM f32 slab ----
    for h in range(H):   # H is small & static -> unrolled
        qh = qkv3[:, :, 0 * HD + h * D:0 * HD + (h + 1) * D].astype(op_dtype)
        kh = qkv3[:, :, 1 * HD + h * D:1 * HD + (h + 1) * D].astype(op_dtype)
        vh = qkv3[:, :, 2 * HD + h * D:2 * HD + (h + 1) * D]

        s = jnp.einsum('bqd,bkd->bqk', qh, kh,
                       preferred_element_type=jnp.float32) * scale + bias
        m = jnp.max(s, axis=-1, keepdims=True)
        p = jnp.exp(s - m)
        l = jnp.sum(p, axis=-1, keepdims=True)
        p = p * pl.reciprocal(l, approx=True)     # EUP slot, not a VALU divide

        oh = jnp.einsum('bqk,bkd->bqd', p.astype(op_dtype), vh.astype(op_dtype),
                        preferred_element_type=jnp.float32)   # [BT, L, D]
        acc_ref[:, h * D:(h + 1) * D] = oh.reshape(R, D)

    # ---- output projection at full contraction width: [BT*L,HD]@[HD,out] ----
    out = jnp.dot(acc_ref[...].astype(op_dtype), wout_ref[...],
                  preferred_element_type=jnp.float32)
    o_ref[...] = out.reshape(BT, L, out_dim).astype(o_ref.dtype)


def _pick_block_batch(B, L):
    """Aim for >=256 MXU rows per grid step (v6e/v7x), but keep >=2 grid
    steps (v7x megacore) whenever that still gives >=128 rows (v5e MXU)."""
    target = max(1, -(-256 // L))                 # ceil(256 / L)
    if B >= 2 * max(1, -(-128 // L)):
        target = min(target, B // 2)
    bt = max(1, min(B, target))
    while B % bt:                                 # largest divisor of B <= target
        bt -= 1
    return bt


def multi_head_attention(x, w_qkv_t, w_out_t, *, num_heads, head_dim,
                         ln_gamma=None, ln_beta=None, qkv_activation=None,
                         ln_eps=1e-5, compute_dtype=None, block_batch=None):
    """Fused MultiHeadAttention forward.

    x:        [B, L, in_dim]
    w_qkv_t:  [in_dim, 3*num_heads*head_dim]   (PyTorch qkv weight, transposed)
    w_out_t:  [num_heads*head_dim, out_dim]    (PyTorch out weight, transposed)
    ln_gamma/ln_beta: [in_dim] or None         (input LayerNorm params)
    qkv_activation: None | "relu" | "tanh"     (module's output_activation)
    compute_dtype: e.g. jnp.bfloat16 -> bf16 MXU operands, f32 accumulation.
    block_batch: batch elements per grid step (default: auto heuristic).
    """
    B, L, in_dim = x.shape
    HD = num_heads * head_dim
    assert w_qkv_t.shape == (in_dim, 3 * HD)
    assert w_out_t.shape[0] == HD
    out_dim = w_out_t.shape[1]

    out_dtype = x.dtype
    if compute_dtype is not None:
        x = x.astype(compute_dtype)
        w_qkv_t = w_qkv_t.astype(compute_dtype)
        w_out_t = w_out_t.astype(compute_dtype)

    BT = block_batch if block_batch is not None else _pick_block_batch(B, L)
    assert B % BT == 0, f"block_batch {BT} must divide batch {B}"
    grid = (B // BT,)

    input_layernorm = ln_gamma is not None

    inputs = [x, w_qkv_t, w_out_t]
    in_specs = [
        pl.BlockSpec((BT, L, in_dim), lambda g: (g, 0, 0)),
        # Constant block index -> weights stay resident in VMEM across grid.
        pl.BlockSpec((in_dim, 3 * HD), lambda g: (0, 0)),
        pl.BlockSpec((HD, out_dim), lambda g: (0, 0)),
    ]
    if input_layernorm:
        inputs += [ln_gamma.reshape(1, in_dim).astype(x.dtype),
                   ln_beta.reshape(1, in_dim).astype(x.dtype)]
        in_specs += [pl.BlockSpec((1, in_dim), lambda g: (0, 0)),
                     pl.BlockSpec((1, in_dim), lambda g: (0, 0))]

    kernel = functools.partial(
        _mha_kernel, num_heads=num_heads, head_dim=head_dim,
        qkv_activation=qkv_activation, input_layernorm=input_layernorm,
        ln_eps=float(ln_eps))

    flops = 2 * B * (L * in_dim * 3 * HD                  # qkv projection
                     + 2 * num_heads * L * L * head_dim   # QK^T and P@V
                     + L * HD * out_dim)                  # output projection
    bytes_accessed = int(sum(a.size * a.dtype.itemsize for a in inputs)
                         + B * L * out_dim * jnp.dtype(out_dtype).itemsize)
    cost = pl.CostEstimate(flops=int(flops),
                           transcendentals=int(B * num_heads * L * L),
                           bytes_accessed=bytes_accessed)

    return pl.pallas_call(
        kernel,
        out_shape=jax.ShapeDtypeStruct((B, L, out_dim), out_dtype),
        grid=grid,
        in_specs=in_specs,
        out_specs=pl.BlockSpec((BT, L, out_dim), lambda g: (g, 0, 0)),
        scratch_shapes=[pltpu.VMEM((BT * L, HD), jnp.float32)],  # head slab
        compiler_params=pltpu.CompilerParams(
            dimension_semantics=("parallel",)),   # megacore sharding on v7x
        cost_estimate=cost,
    )(*inputs)


def _mha_reference(x, w_qkv_t, w_out_t, num_heads, head_dim, ln_gamma=None,
                   ln_beta=None, qkv_activation=None, ln_eps=1e-5):
    """Pure-JAX reference that mirrors the PyTorch module line-by-line."""
    B, L, _ = x.shape
    H, D = num_heads, head_dim
    if ln_gamma is not None:
        mu = jnp.mean(x, -1, keepdims=True)
        var = jnp.mean(jnp.square(x - mu), -1, keepdims=True)
        x = (x - mu) / jnp.sqrt(var + ln_eps) * ln_gamma + ln_beta
    qkv = x @ w_qkv_t
    if qkv_activation == "relu":
        qkv = jnp.maximum(qkv, 0.0)
    elif qkv_activation == "tanh":
        qkv = jnp.tanh(qkv)
    q, k, v = jnp.split(qkv, 3, axis=-1)
    q = q.reshape(B, L, H, D)
    k = k.reshape(B, L, H, D)
    v = v.reshape(B, L, H, D)
    score = jnp.einsum('bihd,bjhd->bijh', q, k) / (D ** 0.5)
    mask = (jnp.arange(L)[None, :] <= jnp.arange(L)[:, None]).astype(score.dtype)
    mask = mask[None, :, :, None]
    masked = score * mask + 1e30 * (mask - 1.0)
    w = jax.nn.softmax(masked, axis=2)
    out = jnp.einsum('bijh,bjhd->bihd', w, v).reshape(B, L, H * D)
    return out @ w_out_t


if __name__ == "__main__":
    key = jax.random.PRNGKey(0)
    k1, k2, k3, k4, k5 = jax.random.split(key, 5)

    # Small but lane-dense shapes: H*D = 128, in_dim = out_dim = 128, L = 8.
    # B=32 so the batch-blocked grid has 2 steps of BT=16 (BT*L = 128 rows).
    B, L = 32, 8
    in_dim, out_dim = 128, 128
    H, D = 4, 32
    HD = H * D

    x = jax.random.normal(k1, (B, L, in_dim), dtype=jnp.float32)

    # nn.Linear default init: U(-1/sqrt(fan_in), 1/sqrt(fan_in)); stored transposed.
    b1 = 1.0 / (in_dim ** 0.5)
    w_qkv_t = jax.random.uniform(k2, (in_dim, 3 * HD), minval=-b1, maxval=b1,
                                 dtype=jnp.float32)
    b2 = 1.0 / (HD ** 0.5)
    w_out_t = jax.random.uniform(k3, (HD, out_dim), minval=-b2, maxval=b2,
                                 dtype=jnp.float32)

    # --- default config: no input LayerNorm, no output activation ---
    y = multi_head_attention(x, w_qkv_t, w_out_t, num_heads=H, head_dim=D)
    y = jax.block_until_ready(y)
    y_ref = _mha_reference(x, w_qkv_t, w_out_t, H, D)
    assert y.shape == (B, L, out_dim)
    # Tolerance relaxed (vs exact divide) for pl.reciprocal(approx=True).
    assert jnp.allclose(y, y_ref, atol=1e-2, rtol=1e-2), \
        float(jnp.max(jnp.abs(y - y_ref)))

    # --- GTrXL config: input LayerNorm + relu on the qkv projection ---
    gamma = jax.random.uniform(k4, (in_dim,), minval=0.5, maxval=1.5,
                               dtype=jnp.float32)
    beta = 0.1 * jax.random.normal(k5, (in_dim,), dtype=jnp.float32)
    y2 = multi_head_attention(x, w_qkv_t, w_out_t, num_heads=H, head_dim=D,
                              ln_gamma=gamma, ln_beta=beta,
                              qkv_activation="relu")
    y2 = jax.block_until_ready(y2)
    y2_ref = _mha_reference(x, w_qkv_t, w_out_t, H, D, ln_gamma=gamma,
                            ln_beta=beta, qkv_activation="relu")
    assert jnp.allclose(y2, y2_ref, atol=1e-2, rtol=1e-2), \
        float(jnp.max(jnp.abs(y2 - y2_ref)))

    # --- bf16 operands (v6e/v7x path): f32 accumulation, loose tolerance ---
    y3 = multi_head_attention(x, w_qkv_t, w_out_t, num_heads=H, head_dim=D,
                              compute_dtype=jnp.bfloat16)
    y3 = jax.block_until_ready(y3)
    assert y3.shape == (B, L, out_dim)
    assert jnp.allclose(y3, y_ref, atol=1e-1, rtol=1e-1)

    # --- explicit BT override (e.g. BT*L = 256 for v6e/v7x row fill) ---
    y4 = multi_head_attention(x, w_qkv_t, w_out_t, num_heads=H, head_dim=D,
                              block_batch=32)
    y4 = jax.block_until_ready(y4)
    assert jnp.allclose(y4, y_ref, atol=1e-2, rtol=1e-2)

    print("KERNEL_OK")
</pallas_src>

<mosaic_0001>
module attributes {stable_mosaic.version = 11 : i64} {
  func.func @_mha_kernel(%arg0: i32, %arg1: memref<16x8x128xf32, #tpu.memory_space<vmem>>, %arg2: memref<128x384xf32, #tpu.memory_space<vmem>>, %arg3: memref<128x128xf32, #tpu.memory_space<vmem>>, %arg4: memref<16x8x128xf32, #tpu.memory_space<vmem>>, %arg5: memref<128x128xf32, #tpu.memory_space<vmem>>) attributes {dimension_semantics = [#tpu.dimension_semantics<parallel>], iteration_bounds = array<i64: 2>, scalar_prefetch = 0 : i64, scratch_operands = 1 : i64, tpu.core_type = #tpu.core_type<tc>, window_params = [{transform_indices = @transform_0, window_bounds = array<i64: 16, 8, 128>}, {pipeline_mode = #tpu.pipeline_mode<synchronous>, transform_indices = @transform_1, window_bounds = array<i64: 128, 384>}, {pipeline_mode = #tpu.pipeline_mode<synchronous>, transform_indices = @transform_2, window_bounds = array<i64: 128, 128>}, {transform_indices = @transform_3, window_bounds = array<i64: 16, 8, 128>}]} {
    %c0 = arith.constant 0 : index
    %c0_0 = arith.constant 0 : index
    %c0_1 = arith.constant 0 : index
    %0 = vector.load %arg1[%c0, %c0_0, %c0_1] : memref<16x8x128xf32, #tpu.memory_space<vmem>>, vector<16x8x128xf32>
    %1 = vector.shape_cast %0 : vector<16x8x128xf32> to vector<128x128xf32>
    %c0_2 = arith.constant 0 : index
    %c0_3 = arith.constant 0 : index
    %2 = vector.load %arg2[%c0_2, %c0_3] : memref<128x384xf32, #tpu.memory_space<vmem>>, vector<128x384xf32>
    %cst = arith.constant dense<0.000000e+00> : vector<128x384xf32>
    %3 = tpu.matmul %1, %2, %cst {dimension_numbers = #tpu.dot_dimension_numbers<[1], [0], [0], [1], [0, 0, 1, 1], [], []>} : vector<128x128xf32>, vector<128x384xf32>, vector<128x384xf32> -> vector<128x384xf32>
    %4 = vector.shape_cast %3 : vector<128x384xf32> to vector<16x8x384xf32>
    %5 = tpu.iota {dimensions = array<i32: 0>} : vector<8x8xi32>
    %6 = tpu.iota {dimensions = array<i32: 1>} : vector<8x8xi32>
    %7 = arith.cmpi sle, %6, %5 : vector<8x8xi32>
    %cst_4 = arith.constant 0.000000e+00 : f32
    %cst_5 = arith.constant -1.000000e+30 : f32
    %8 = vector.broadcast %cst_4 : f32 to vector<8x8xf32>
    %9 = vector.broadcast %cst_5 : f32 to vector<8x8xf32>
    %10 = arith.select %7, %8, %9 : vector<8x8xi1>, vector<8x8xf32>
    %11 = vector.shape_cast %10 : vector<8x8xf32> to vector<1x8x8xf32>
    %12 = vector.shape_cast %11 : vector<1x8x8xf32> to vector<1x8x8xf32>
    %13 = vector.broadcast %12 : vector<1x8x8xf32> to vector<16x8x8xf32>
    %14 = vector.extract_strided_slice %4 {offsets = [0, 0, 0], sizes = [16, 8, 32], strides = [1, 1, 1]} : vector<16x8x384xf32> to vector<16x8x32xf32>
    %15 = vector.extract_strided_slice %4 {offsets = [0, 0, 128], sizes = [16, 8, 32], strides = [1, 1, 1]} : vector<16x8x384xf32> to vector<16x8x32xf32>
    %16 = vector.extract_strided_slice %4 {offsets = [0, 0, 256], sizes = [16, 8, 32], strides = [1, 1, 1]} : vector<16x8x384xf32> to vector<16x8x32xf32>
    "tpu.trace_start"() <{level = 10 : i32, message = "bqd,bkd->bqk"}> : () -> ()
    %cst_6 = arith.constant dense<0.000000e+00> : vector<16x8x8xf32>
    %17 = tpu.matmul %14, %15, %cst_6 {dimension_numbers = #tpu.dot_dimension_numbers<[2], [2], [1], [1], [0, 0, 0, 1, 1, 1], [0], [0]>} : vector<16x8x32xf32>, vector<16x8x32xf32>, vector<16x8x8xf32> -> vector<16x8x8xf32>
    "tpu.trace_stop"() : () -> ()
    %cst_7 = arith.constant 0.176776692 : f32
    %18 = vector.broadcast %cst_7 : f32 to vector<16x8x8xf32>
    %19 = arith.mulf %17, %18 : vector<16x8x8xf32>
    %20 = arith.addf %19, %13 : vector<16x8x8xf32>
    %cst_8 = arith.constant dense<0xFF800000> : vector<16x8xf32>
    %21 = vector.multi_reduction <maximumf>, %20, %cst_8 [2] : vector<16x8x8xf32> to vector<16x8xf32>
    %22 = vector.shape_cast %21 : vector<16x8xf32> to vector<16x8x1xf32>
    %23 = vector.broadcast %22 : vector<16x8x1xf32> to vector<16x8x8xf32>
    %24 = arith.subf %20, %23 : vector<16x8x8xf32>
    %25 = math.exp %24 : vector<16x8x8xf32>
    %cst_9 = arith.constant dense<0.000000e+00> : vector<16x8xf32>
    %26 = vector.multi_reduction <add>, %25, %cst_9 [2] : vector<16x8x8xf32> to vector<16x8xf32>
    %27 = vector.shape_cast %26 : vector<16x8xf32> to vector<16x8x1xf32>
    %28 = tpu.reciprocal %27 {approx = true} : vector<16x8x1xf32> -> vector<16x8x1xf32>
    %29 = vector.broadcast %28 : vector<16x8x1xf32> to vector<16x8x8xf32>
    %30 = arith.mulf %25, %29 : vector<16x8x8xf32>
    "tpu.trace_start"() <{level = 10 : i32, message = "bqk,bkd->bqd"}> : () -> ()
    %cst_10 = arith.constant dense<0.000000e+00> : vector<16x8x32xf32>
    %31 = tpu.matmul %30, %16, %cst_10 {dimension_numbers = #tpu.dot_dimension_numbers<[2], [1], [1], [2], [0, 0, 0, 1, 1, 2], [0], [0]>} : vector<16x8x8xf32>, vector<16x8x32xf32>, vector<16x8x32xf32> -> vector<16x8x32xf32>
    "tpu.trace_stop"() : () -> ()
    %32 = vector.shape_cast %31 : vector<16x8x32xf32> to vector<128x32xf32>
    %c0_11 = arith.constant 0 : index
    %c0_12 = arith.constant 0 : index
    %33 = vector.load %arg5[%c0_11, %c0_12] : memref<128x128xf32, #tpu.memory_space<vmem>>, vector<128x32xf32>
    tpu.vector_store %arg5[%c0_11, %c0_12], %32 {strides = array<i32>} : memref<128x128xf32, #tpu.memory_space<vmem>>, vector<128x32xf32>,
    %34 = vector.extract_strided_slice %4 {offsets = [0, 0, 32], sizes = [16, 8, 32], strides = [1, 1, 1]} : vector<16x8x384xf32> to vector<16x8x32xf32>
    %35 = vector.extract_strided_slice %4 {offsets = [0, 0, 160], sizes = [16, 8, 32], strides = [1, 1, 1]} : vector<16x8x384xf32> to vector<16x8x32xf32>
    %36 = vector.extract_strided_slice %4 {offsets = [0, 0, 288], sizes = [16, 8, 32], strides = [1, 1, 1]} : vector<16x8x384xf32> to vector<16x8x32xf32>
    "tpu.trace_start"() <{level = 10 : i32, message = "bqd,bkd->bqk"}> : () -> ()
    %cst_13 = arith.constant dense<0.000000e+00> : vector<16x8x8xf32>
    %37 = tpu.matmul %34, %35, %cst_13 {dimension_numbers = #tpu.dot_dimension_numbers<[2], [2], [1], [1], [0, 0, 0, 1, 1, 1], [0], [0]>} : vector<16x8x32xf32>, vector<16x8x32xf32>, vector<16x8x8xf32> -> vector<16x8x8xf32>
    "tpu.trace_stop"() : () -> ()
    %cst_14 = arith.constant 0.176776692 : f32
    %38 = vector.broadcast %cst_14 : f32 to vector<16x8x8xf32>
    %39 = arith.mulf %37, %38 : vector<16x8x8xf32>
    %40 = arith.addf %39, %13 : vector<16x8x8xf32>
    %cst_15 = arith.constant dense<0xFF800000> : vector<16x8xf32>
    %41 = vector.multi_reduction <maximumf>, %40, %cst_15 [2] : vector<16x8x8xf32> to vector<16x8xf32>
    %42 = vector.shape_cast %41 : vector<16x8xf32> to vector<16x8x1xf32>
    %43 = vector.broadcast %42 : vector<16x8x1xf32> to vector<16x8x8xf32>
    %44 = arith.subf %40, %43 : vector<16x8x8xf32>
    %45 = math.exp %44 : vector<16x8x8xf32>
    %cst_16 = arith.constant dense<0.000000e+00> : vector<16x8xf32>
    %46 = vector.multi_reduction <add>, %45, %cst_16 [2] : vector<16x8x8xf32> to vector<16x8xf32>
    %47 = vector.shape_cast %46 : vector<16x8xf32> to vector<16x8x1xf32>
    %48 = tpu.reciprocal %47 {approx = true} : vector<16x8x1xf32> -> vector<16x8x1xf32>
    %49 = vector.broadcast %48 : vector<16x8x1xf32> to vector<16x8x8xf32>
    %50 = arith.mulf %45, %49 : vector<16x8x8xf32>
    "tpu.trace_start"() <{level = 10 : i32, message = "bqk,bkd->bqd"}> : () -> ()
    %cst_17 = arith.constant dense<0.000000e+00> : vector<16x8x32xf32>
    %51 = tpu.matmul %50, %36, %cst_17 {dimension_numbers = #tpu.dot_dimension_numbers<[2], [1], [1], [2], [0, 0, 0, 1, 1, 2], [0], [0]>} : vector<16x8x8xf32>, vector<16x8x32xf32>, vector<16x8x32xf32> -> vector<16x8x32xf32>
    "tpu.trace_stop"() : () -> ()
    %52 = vector.shape_cast %51 : vector<16x8x32xf32> to vector<128x32xf32>
    %c0_18 = arith.constant 0 : index
    %c32 = arith.constant 32 : index
    %53 = vector.load %arg5[%c0_18, %c32] : memref<128x128xf32, #tpu.memory_space<vmem>>, vector<128x32xf32>
    tpu.vector_store %arg5[%c0_18, %c32], %52 {strides = array<i32>} : memref<128x128xf32, #tpu.memory_space<vmem>>, vector<128x32xf32>,
    %54 = vector.extract_strided_slice %4 {offsets = [0, 0, 64], sizes = [16, 8, 32], strides = [1, 1, 1]} : vector<16x8x384xf32> to vector<16x8x32xf32>
    %55 = vector.extract_strided_slice %4 {offsets = [0, 0, 192], sizes = [16, 8, 32], strides = [1, 1, 1]} : vector<16x8x384xf32> to vector<16x8x32xf32>
    %56 = vector.extract_strided_slice %4 {offsets = [0, 0, 320], sizes = [16, 8, 32], strides = [1, 1, 1]} : vector<16x8x384xf32> to vector<16x8x32xf32>
    "tpu.trace_start"() <{level = 10 : i32, message = "bqd,bkd->bqk"}> : () -> ()
    %cst_19 = arith.constant dense<0.000000e+00> : vector<16x8x8xf32>
    %57 = tpu.matmul %54, %55, %cst_19 {dimension_numbers = #tpu.dot_dimension_numbers<[2], [2], [1], [1], [0, 0, 0, 1, 1, 1], [0], [0]>} : vector<16x8x32xf32>, vector<16x8x32xf32>, vector<16x8x8xf32> -> vector<16x8x8xf32>
    "tpu.trace_stop"() : () -> ()
    %cst_20 = arith.constant 0.176776692 : f32
    %58 = vector.broadcast %cst_20 : f32 to vector<16x8x8xf32>
    %59 = arith.mulf %57, %58 : vector<16x8x8xf32>
    %60 = arith.addf %59, %13 : vector<16x8x8xf32>
    %cst_21 = arith.constant dense<0xFF800000> : vector<16x8xf32>
    %61 = vector.multi_reduction <maximumf>, %60, %cst_21 [2] : vector<16x8x8xf32> to vector<16x8xf32>
    %62 = vector.shape_cast %61 : vector<16x8xf32> to vector<16x8x1xf32>
    %63 = vector.broadcast %62 : vector<16x8x1xf32> to vector<16x8x8xf32>
    %64 = arith.subf %60, %63 : vector<16x8x8xf32>
    %65 = math.exp %64 : vector<16x8x8xf32>
    %cst_22 = arith.constant dense<0.000000e+00> : vector<16x8xf32>
    %66 = vector.multi_reduction <add>, %65, %cst_22 [2] : vector<16x8x8xf32> to vector<16x8xf32>
    %67 = vector.shape_cast %66 : vector<16x8xf32> to vector<16x8x1xf32>
    %68 = tpu.reciprocal %67 {approx = true} : vector<16x8x1xf32> -> vector<16x8x1xf32>
    %69 = vector.broadcast %68 : vector<16x8x1xf32> to vector<16x8x8xf32>
    %70 = arith.mulf %65, %69 : vector<16x8x8xf32>
    "tpu.trace_start"() <{level = 10 : i32, message = "bqk,bkd->bqd"}> : () -> ()
    %cst_23 = arith.constant dense<0.000000e+00> : vector<16x8x32xf32>
    %71 = tpu.matmul %70, %56, %cst_23 {dimension_numbers = #tpu.dot_dimension_numbers<[2], [1], [1], [2], [0, 0, 0, 1, 1, 2], [0], [0]>} : vector<16x8x8xf32>, vector<16x8x32xf32>, vector<16x8x32xf32> -> vector<16x8x32xf32>
    "tpu.trace_stop"() : () -> ()
    %72 = vector.shape_cast %71 : vector<16x8x32xf32> to vector<128x32xf32>
    %c0_24 = arith.constant 0 : index
    %c64 = arith.constant 64 : index
    %73 = vector.load %arg5[%c0_24, %c64] : memref<128x128xf32, #tpu.memory_space<vmem>>, vector<128x32xf32>
    tpu.vector_store %arg5[%c0_24, %c64], %72 {strides = array<i32>} : memref<128x128xf32, #tpu.memory_space<vmem>>, vector<128x32xf32>,
    %74 = vector.extract_strided_slice %4 {offsets = [0, 0, 96], sizes = [16, 8, 32], strides = [1, 1, 1]} : vector<16x8x384xf32> to vector<16x8x32xf32>
    %75 = vector.extract_strided_slice %4 {offsets = [0, 0, 224], sizes = [16, 8, 32], strides = [1, 1, 1]} : vector<16x8x384xf32> to vector<16x8x32xf32>
    %76 = vector.extract_strided_slice %4 {offsets = [0, 0, 352], sizes = [16, 8, 32], strides = [1, 1, 1]} : vector<16x8x384xf32> to vector<16x8x32xf32>
    "tpu.trace_start"() <{level = 10 : i32, message = "bqd,bkd->bqk"}> : () -> ()
    %cst_25 = arith.constant dense<0.000000e+00> : vector<16x8x8xf32>
    %77 = tpu.matmul %74, %75, %cst_25 {dimension_numbers = #tpu.dot_dimension_numbers<[2], [2], [1], [1], [0, 0, 0, 1, 1, 1], [0], [0]>} : vector<16x8x32xf32>, vector<16x8x32xf32>, vector<16x8x8xf32> -> vector<16x8x8xf32>
    "tpu.trace_stop"() : () -> ()
    %cst_26 = arith.constant 0.176776692 : f32
    %78 = vector.broadcast %cst_26 : f32 to vector<16x8x8xf32>
    %79 = arith.mulf %77, %78 : vector<16x8x8xf32>
    %80 = arith.addf %79, %13 : vector<16x8x8xf32>
    %cst_27 = arith.constant dense<0xFF800000> : vector<16x8xf32>
    %81 = vector.multi_reduction <maximumf>, %80, %cst_27 [2] : vector<16x8x8xf32> to vector<16x8xf32>
    %82 = vector.shape_cast %81 : vector<16x8xf32> to vector<16x8x1xf32>
    %83 = vector.broadcast %82 : vector<16x8x1xf32> to vector<16x8x8xf32>
    %84 = arith.subf %80, %83 : vector<16x8x8xf32>
    %85 = math.exp %84 : vector<16x8x8xf32>
    %cst_28 = arith.constant dense<0.000000e+00> : vector<16x8xf32>
    %86 = vector.multi_reduction <add>, %85, %cst_28 [2] : vector<16x8x8xf32> to vector<16x8xf32>
    %87 = vector.shape_cast %86 : vector<16x8xf32> to vector<16x8x1xf32>
    %88 = tpu.reciprocal %87 {approx = true} : vector<16x8x1xf32> -> vector<16x8x1xf32>
    %89 = vector.broadcast %88 : vector<16x8x1xf32> to vector<16x8x8xf32>
    %90 = arith.mulf %85, %89 : vector<16x8x8xf32>
    "tpu.trace_start"() <{level = 10 : i32, message = "bqk,bkd->bqd"}> : () -> ()
    %cst_29 = arith.constant dense<0.000000e+00> : vector<16x8x32xf32>
    %91 = tpu.matmul %90, %76, %cst_29 {dimension_numbers = #tpu.dot_dimension_numbers<[2], [1], [1], [2], [0, 0, 0, 1, 1, 2], [0], [0]>} : vector<16x8x8xf32>, vector<16x8x32xf32>, vector<16x8x32xf32> -> vector<16x8x32xf32>
    "tpu.trace_stop"() : () -> ()
    %92 = vector.shape_cast %91 : vector<16x8x32xf32> to vector<128x32xf32>
    %c0_30 = arith.constant 0 : index
    %c96 = arith.constant 96 : index
    %93 = vector.load %arg5[%c0_30, %c96] : memref<128x128xf32, #tpu.memory_space<vmem>>, vector<128x32xf32>
    tpu.vector_store %arg5[%c0_30, %c96], %92 {strides = array<i32>} : memref<128x128xf32, #tpu.memory_space<vmem>>, vector<128x32xf32>,
    %c0_31 = arith.constant 0 : index
    %c0_32 = arith.constant 0 : index
    %94 = vector.load %arg5[%c0_31, %c0_32] : memref<128x128xf32, #tpu.memory_space<vmem>>, vector<128x128xf32>
    %c0_33 = arith.constant 0 : index
    %c0_34 = arith.constant 0 : index
    %95 = vector.load %arg3[%c0_33, %c0_34] : memref<128x128xf32, #tpu.memory_space<vmem>>, vector<128x128xf32>
    %cst_35 = arith.constant dense<0.000000e+00> : vector<128x128xf32>
    %96 = tpu.matmul %94, %95, %cst_35 {dimension_numbers = #tpu.dot_dimension_numbers<[1], [0], [0], [1], [0, 0, 1, 1], [], []>} : vector<128x128xf32>, vector<128x128xf32>, vector<128x128xf32> -> vector<128x128xf32>
    %97 = vector.shape_cast %96 : vector<128x128xf32> to vector<16x8x128xf32>
    %c0_36 = arith.constant 0 : index
    %c0_37 = arith.constant 0 : index
    %c0_38 = arith.constant 0 : index
    %98 = vector.load %arg4[%c0_36, %c0_37, %c0_38] : memref<16x8x128xf32, #tpu.memory_space<vmem>>, vector<16x8x128xf32>
    tpu.vector_store %arg4[%c0_36, %c0_37, %c0_38], %97 {strides = array<i32>} : memref<16x8x128xf32, #tpu.memory_space<vmem>>, vector<16x8x128xf32>,
    return
  }
  func.func @transform_0(%arg0: i32) -> (i32, i32, i32) {
    %c0_i32 = arith.constant 0 : i32
    %c0_i32_0 = arith.constant 0 : i32
    %c0_i32_1 = arith.constant 0 : i32
    return %arg0, %c0_i32, %c0_i32_0 : i32, i32, i32
  }
  func.func @transform_1(%arg0: i32) -> (i32, i32) {
    %c0_i32 = arith.constant 0 : i32
    %c0_i32_0 = arith.constant 0 : i32
    %c0_i32_1 = arith.constant 0 : i32
    return %c0_i32, %c0_i32_0 : i32, i32
  }
  func.func @transform_2(%arg0: i32) -> (i32, i32) {
    %c0_i32 = arith.constant 0 : i32
    %c0_i32_0 = arith.constant 0 : i32
    %c0_i32_1 = arith.constant 0 : i32
    return %c0_i32, %c0_i32_0 : i32, i32
  }
  func.func @transform_3(%arg0: i32) -> (i32, i32, i32) {
    %c0_i32 = arith.constant 0 : i32
    %c0_i32_0 = arith.constant 0 : i32
    %c0_i32_1 = arith.constant 0 : i32
    return %arg0, %c0_i32, %c0_i32_0 : i32, i32, i32
  }
}

</mosaic_0001>

<bundles_post_ra>
// kernel: tpu_custom_call.1
= control target key start
LH: loop header
LB: loop body
LE: loop exit
PB: predicated region body
PF: predicated region fallthrough
CT: control target
= control target key end

     0   :  { %8 = vsyncpa [#allocation4], 0  ;;  %s16180_s0 = inlined_call_operand.hbm [shape: f32[32,8,128], index: 0, kind: input, shape index: {}]   ;;  %s16181_s1 = inlined_call_operand.hbm [shape: f32[128,384], index: 1, kind: input, shape index: {}]   ;;  %s16182_s2 = inlined_call_operand.hbm [shape: f32[128,128], index: 2, kind: input, shape index: {}]   ;;  %s16183_s3 = inlined_call_operand.hbm [shape: f32[32,8,128], index: 3, kind: output, shape index: {}]  }
   0x1   :  { %10 = vsyncpa [#allocation4 + $0x1], 0 }
   0x2   :  { %11 = vsyncpa [#allocation7], 0 }
   0x3   :  { %12 = vsyncpa [#allocation5], 0 }
   0x4   :  { %14 = vsyncpa [#allocation5 + $0x1], 0  ;;  %s13705_s12 = smov 0   ;;  %s13707_s13 = smov 0  }
   0x5   :  { %s13709_s14 = smov 0   ;;  %s13711_s15 = smov 0  }
   0x6 LB: > { %s13726_s16 = sadd.s32 4294967295, %s13667_s15   ;;  %s11780_s17 = sadd.s32 4294967294, %s13667_s15   ;;  %s13667_s15 = sphi %s13711_s15, %s16451_s15   ;;  %s13663_s14 = sphi %s13709_s14, %s16450_s14   ;;  %s13659_s13 = sphi %s13707_s13, %s16449_s13   ;;  %s13655_s12 = sphi %s13705_s12, %s16448_s12  }
   0x7   : > { %p40_p0 = scmp.ne.s32.totalorder %s13659_s13, %s13655_s12  ;;  %p16184_p1 = scmp.eq.s32.totalorder %s13726_s16, 0 }
   0x8   : > { %p112_p3 = scmp.eq.s32.totalorder %s11780_s17, 1  ;;  %p11781_p5 = scmp.ge.s32.totalorder %s13667_s15, 1 }
   0x9   : > { %p13735_p4 = por %p16184_p1, %p40_p0  ;;  %p119_p7 = scmp.lt.s32.totalorder %s13667_s15, 3 }
   0xa   : > { %p13740_p6 = por %p112_p3, %p40_p0  ;;  %s13669_s21 = smov [#allocation6]  }
   0xb   : > { %s16243_s18 = scalar_select %p13735_p4, 1, 0 }
   0xc   : > { %s16244_s19 = scalar_select %p13740_p6, 1, 0 }
   0xd   : > { %p13745_p8 = pnand %p11781_p5, %p119_p7  ;;  %s131_s22 = sshll.u32 %s13669_s21, 4  ;;  %s13749_s22 = int_to_ptr.vmem [resolvable:$true] %s131_s22 }
   0xe   : > { %s13670_s24 = smov [#allocation8]   ;;  %s13511_s28 = scalar_lea.hbm %s16181_s1, 6144 }
   0xf   : > { %p13188_p9 = pneg %p13745_p8  ;;  %s144_s25 = sshll.u32 %s13670_s24, 4  ;;  %s13760_s25 = int_to_ptr.vmem [resolvable:$true] %s144_s25 }
  0x10   : > { %p13512_p12 = scmp.ne.s32.totalorder %s16181_s1, %s13511_s28  ;;  %p13518_p5 = scmp.lt.u32.totalorder %s13511_s28, %s16181_s1 }
  0x11   : > { %p13756_p11 = pnand %p13188_p9, %p16184_p1 }
  0x13   : > { %p13513_p13 = pneg %p13756_p11 }
  0x15   : > { %p13514_p0 = pnand %p13513_p13, %p13512_p12 }
  0x17   : > { %p13515_p3 = pneg %p13514_p0 }
  0x19   : > { %p13520_p7 = pnand %p13518_p5, %p13515_p3 }
  0x1b   : > { %13523 = shalt.err (!%p13520_p7)
}
  0x1c   : > { %s13524_s6 = scalar_lea.vmem %s13749_s22, 6144  ;;  %p13532_p2 = scmp.lt.s32.totalorder %s13749_s22, %s13749_s22 }
  0x1d   : > { %p13525_p9 = scmp.ne.s32.totalorder %s13749_s22, %s13524_s6  ;;  %p13533_p12 = scmp.lt.s32.totalorder %s13524_s6, %s13524_s6 }
  0x1f   : > { %p13527_p10 = pnand %p13525_p9, %p13513_p13  ;;  %p13534_p0 = por %p13533_p12, %p13532_p2 }
  0x21   : > { %p13528_p1 = pneg %p13527_p10 }
  0x23   : > { %p13535_p6 = pnand %p13534_p0, %p13528_p1 }
  0x25   : > { %13538 = shalt.err (!%p13535_p6)
}
  0x26   : > { %s13671_s7 = smov 384   ;;  %s13672_s8 = smov 24  }
  0x27   : > { %13191 = dma.hbm_to_vmem [thread:$0]  (!%p13756_p11), %s16181_s1, 6144, %s13749_s22, [#allocation7], %s13671_s7, %s13671_s7, %s13672_s8  }
  0x28   : > { %s13539_s21 = scalar_lea.hbm %s16182_s2, 2048 }
  0x29   : > { %p13540_p2 = scmp.ne.s32.totalorder %s16182_s2, %s13539_s21  ;;  %p13546_p10 = scmp.lt.u32.totalorder %s13539_s21, %s16182_s2 }
  0x2b   : > { %p13542_p1 = pnand %p13540_p2, %p13513_p13 }
  0x2d   : > { %p13543_p6 = pneg %p13542_p1 }
  0x2f   : > { %p13548_p3 = pnand %p13546_p10, %p13543_p6 }
  0x31   : > { %13551 = shalt.err (!%p13548_p3)
}
  0x32   : > { %s13552_s22 = scalar_lea.vmem %s13760_s25, 2048  ;;  %p13560_p12 = scmp.lt.s32.totalorder %s13760_s25, %s13760_s25 }
  0x33   : > { %p13553_p5 = scmp.ne.s32.totalorder %s13760_s25, %s13552_s22  ;;  %p13561_p0 = scmp.lt.s32.totalorder %s13552_s22, %s13552_s22 }
  0x35   : > { %p13555_p7 = pnand %p13553_p5, %p13513_p13  ;;  %p13562_p2 = por %p13561_p0, %p13560_p12 }
  0x37   : > { %p13556_p9 = pneg %p13555_p7 }
  0x39   : > { %p13563_p1 = pnand %p13562_p2, %p13556_p9 }
  0x3b   : > { %13566 = shalt.err (!%p13563_p1)
}
  0x3c   : > { %s13673_s29 = smov 128   ;;  %s13674_s30 = smov 8  }
  0x3d   : > { %13194 = dma.hbm_to_vmem [thread:$0]  (!%p13756_p11), %s16182_s2, 2048, %s13760_s25, [#allocation7], %s13673_s29, %s13673_s29, %s13674_s30  }
  0x3e   : > { %s13818_s6 = sadd.s32 1, %s13667_s15   ;;  %s27_s8 = sadd.s32 1, %s13663_s14 }
  0x3f   : > { %s24_s7 = ssub.s32 %s13667_s15, %s13818_s6  ;;  %p34_p6 = scmp.ne.s32.totalorder %s13663_s14, %s13659_s13 }
  0x40   : > { %p25_p13 = scmp.eq.s32.totalorder %s24_s7, 0  ;;  %p35_p10 = scmp.eq.s32.totalorder %s13667_s15, 0 }
  0x41   : > { %p16247_p5 = scmp.eq.s32.totalorder %s13726_s16, 1  ;;  %p13205_p9 = scmp.lt.s32.totalorder %s13667_s15, 2 }
  0x42   : > { %s13827_s9 = scalar_select %p25_p13, %s13663_s14, %s27_s8  }
  0x43   : > { %p36_p3 = por %p35_p10, %p34_p6  ;;  %p13831_p7 = por %p16247_p5, %p34_p6 }
  0x44   : > { %s158_s10 = sand.u32 1, %s13663_s14   ;;  %s11990_s25 = sshll.u32 %s13667_s15, 11 }
  0x45   : > { %s16248_s23 = scalar_select %p13831_p7, 1, 0 }
  0x46   : > { %s11785_s11 = sshll.u32 %s158_s10, 7  ;;  %s13841_s24 = scalar_lea.hbm %s16180_s0, %s11990_s25 }
  0x47   : > { %s162_s26 = scalar_lea.vmem [#allocation3], %s11785_s11  ;;  %p13845_p11 = pnand %p13205_p9, %p36_p3 }
  0x48   : > { %s169_s27 = sshll.u32 %s162_s26, 4  ;;  %s13849_s22 = scalar_lea.sflag [#allocation4], %s158_s10  ;;  %s13843_s27 = int_to_ptr.vmem [resolvable:$true] %s169_s27 }
  0x49   : > { %s13567_s4 = scalar_lea.hbm %s13841_s24, 2048  ;;  %p13569_p0 = pneg %p13845_p11 }
  0x4a   : > { %p13568_p12 = scmp.ne.s32.totalorder %s13841_s24, %s13567_s4  ;;  %s13572_s8 = scalar_lea.hbm %s16180_s0, 4096 }
  0x4b   : > { %p13573_p13 = scmp.lt.u32.totalorder %s13841_s24, %s16180_s0  ;;  %p13574_p6 = scmp.lt.u32.totalorder %s13572_s8, %s13567_s4 }
  0x4c   : > { %p13570_p2 = pnand %p13569_p0, %p13568_p12  ;;  %p13576_p3 = scmp.lt.u32.totalorder %s13567_s4, %s13841_s24 }
  0x4d   : > { %p13575_p10 = por %p13574_p6, %p13573_p13 }
  0x4e   : > { %p13571_p1 = pneg %p13570_p2 }
  0x4f   : > { %p13577_p5 = por %p13576_p3, %p13575_p10 }
  0x51   : > { %p13578_p9 = pnand %p13577_p5, %p13571_p1 }
  0x53   : > { %13581 = shalt.err (!%p13578_p9)
}
  0x54   : > { %s13582_s10 = scalar_lea.vmem %s13843_s27, 2048  ;;  %s13675_s17 = smov [#allocation3]  }
  0x55   : > { %p13583_p12 = scmp.ne.s32.totalorder %s13843_s27, %s13582_s10  ;;  %s13587_s21 = sshll.u32 %s13675_s17, 4  ;;  %s13588_s21 = int_to_ptr.vmem [resolvable:$false] %s13587_s21 }
  0x56   : > { %s13589_s26 = scalar_lea.vmem %s13588_s21, 4096  ;;  %p13590_p4 = scmp.lt.s32.totalorder %s13843_s27, %s13588_s21 }
  0x57   : > { %p13585_p2 = pnand %p13583_p12, %p13569_p0  ;;  %p13591_p13 = scmp.lt.s32.totalorder %s13589_s26, %s13582_s10 }
  0x59   : > { %p13586_p7 = pneg %p13585_p2  ;;  %p13592_p6 = por %p13591_p13, %p13590_p4 }
  0x5b   : > { %p13593_p10 = pnand %p13592_p6, %p13586_p7 }
  0x5d   : > { %13596 = shalt.err (!%p13593_p10)
}
  0x5e   : > { %13198 = dma.hbm_to_vmem [thread:$0]  (!%p13845_p11), %s13841_s24, 2048, %s13843_s27, %s13849_s22, %s13673_s29, %s13673_s29, %s13674_s30  }
  0x5f   : > { %181 = sbr.rel (%p13745_p8) target bundleno = 3402 (0xd4a), region = 32 }
  0x66   : > { %s13883_s4 = sand.u32 1, %s13659_s13   ;;  %p16250_p4 = scmp.ne.s32.totalorder %s16243_s18, 0 }
  0x67   : > { %s11789_s5 = sshll.u32 %s13883_s4, 7  ;;  %s184_s7 = scalar_lea.sflag [#allocation4], %s13883_s4 }
  0x68   : > { %s13889_s28 = scalar_lea.vmem [#allocation3], %s11789_s5 }
  0x69   : > { %13642 = dma.done.wait (%p16250_p4), %s184_s7, 2048  }
  0x6a   : > { %13644 = vsyncadd (%p16250_p4), %s184_s7, 4294965248  ;;  %p16251_p7 = scmp.eq.s32.totalorder %s13726_s16, 0 }
  0x6c   : > { %13646 = dma.done.wait (%p16251_p7), [#allocation7], 8192   ;;  %p16252_p8 = pmov %p16251_p7 }
  0x6d   : > { %v16187_v0 = vmov 0.0   ;;  %v237_v1 = vld [vmem:[#allocation6 + $0x8] sm:$0xff]  ;;  %v240_v2 = vld [vmem:[#allocation6 + $0x20] sm:$0xff]  ;;  %v239_v5 = vld [vmem:[#allocation6 + $0x18] sm:$0xff]  ;;  %vm13677_vm0 = vmmov 0   ;;  %vm596_vm1 = vcmask 261120  }
  0x6e   : > { %13648 = vsyncadd (%p16252_p8), [#allocation7], 4294959104  ;;  %348 = vmatprep.mubr.f32.mxu0 %v16187_v0  ;;  %v236_v3 = vld [vmem:[#allocation6] sm:$0xff]  ;;  %v13064_v4 = vpack.c.bf16 %v240_v2, %v237_v1  ;;  %v243_v6 = vld [vmem:[#allocation6 + $0x38] sm:$0xff]  ;;  %s13678_s18 = smov 96   ;;  %vm1845_vm3 = vcmask 64512  }
  0x6f   : > { %v246_v7 = vld [vmem:[#allocation6 + $0x50] sm:$0xff]  ;;  %v13066_v8 = vpack.c.bf16 %v239_v5, %v236_v3  ;;  %v245_v11 = vld [vmem:[#allocation6 + $0x48] sm:$0xff]  ;;  %v252_v13 = vld [vmem:[#allocation6 + $0x80] sm:$0xff]  ;;  %s13680_s20 = smov 64   ;;  %s13681_s29 = smov 32   ;;  %vm5958_vm4 = vcmask 523520  }
  0x70   : > { %v13068_v9 = vpack.c.bf16 %v246_v7, %v243_v6  ;;  %v242_v10 = vld [vmem:[#allocation6 + $0x30] sm:$0xff]  ;;  %v249_v12 = vld [vmem:[#allocation6 + $0x68] sm:$0xff]  ;;  %13065 = vmatprep.subr.bf16.mxu0 %v13064_v4  ;;  %v248_v16 = vld [vmem:[#allocation6 + $0x60] sm:$0xff]  ;;  %vm8711_vm5 = vcmask 785920   ;;  %vm11464_vm6 = vcmask 1048320   ;;  %s16111_s30 = scalar_lea.vmem [#allocation9], %s11789_s5 }
  0x71   : > { %13067 = vmatpush1.bf16.msra.mxu0 %v13066_v8  ;;  %v13070_v14 = vpack.c.bf16 %v245_v11, %v242_v10  ;;  %v13072_v15 = vpack.c.bf16 %v252_v13, %v249_v12  ;;  %v251_v17 = vld [vmem:[#allocation6 + $0x78] sm:$0xff]  ;;  %v258_v19 = vld [vmem:[#allocation6 + $0xb0] sm:$0xff]  ;;  %v257_v23 = vld [vmem:[#allocation6 + $0xa8] sm:$0xff]  ;;  %s11991_s24 = sshll.u32 %s13726_s16, 11  ;;  %s11688_s27 = sshll.u32 %s16111_s30, 4  ;;  %s16134_s27 = int_to_ptr.vmem [resolvable:$true] %s11688_s27 }
  0x72   : > { %13069 = vmatprep.subr.bf16.mxu0 %v13068_v9  ;;  %v255_v18 = vld [vmem:[#allocation6 + $0x98] sm:$0xff]  ;;  %v13074_v20 = vpack.c.bf16 %v251_v17, %v248_v16  ;;  %v254_v22 = vld [vmem:[#allocation6 + $0x90] sm:$0xff]  ;;  %v261_v24 = vld [vmem:[#allocation6 + $0xc8] sm:$0xff]  ;;  %s16132_s11 = scalar_lea.hbm %s16183_s3, %s11991_s24  ;;  %s11675_s25 = scalar_lea.sflag [#allocation5], %s13883_s4 }
  0x73   : > { %v13076_v21 = vpack.c.bf16 %v258_v19, %v255_v18  ;;  %v264_v25 = vld [vmem:[#allocation6 + $0xe0] sm:$0xff]  ;;  %v13078_v27 = vpack.c.bf16 %v257_v23, %v254_v22  ;;  %v263_v30 = vld [vmem:[#allocation6 + $0xd8] sm:$0xff]  ;;  %v270_v32 = vld [vmem:[#allocation6 + $0x110] sm:$0xff]  ;;  %s13597_s10 = scalar_lea.vmem %s16134_s27, 2048  ;;  %p16445_p0 = scmp.ne.s32.totalorder %s16248_s23, 0 }
  0x74   : > { %v13901_v26 = vld [vmem:[%s13889_s28] sm:$0xff]  ;;  %v13080_v28 = vpack.c.bf16 %v264_v25, %v261_v24  ;;  %v267_v31 = vld [vmem:[#allocation6 + $0xf8] sm:$0xff]  ;;  %v266_v33 = vld [vmem:[#allocation6 + $0xf0] sm:$0xff]  ;;  %p13598_p11 = scmp.ne.s32.totalorder %s16134_s27, %s13597_s10  ;;  %s13682_s16 = smov [#allocation9]  }
  0x75   : > { %13071 = vmatpush1.bf16.msra.mxu0 %v13070_v14  ;;  %12344 = vmatprep.mubr.f32.mxu1 %v13901_v26  ;;  %v260_v29 = vld [vmem:[#allocation6 + $0xc0] sm:$0xff]  ;;  %v238_v35 = vld [vmem:[#allocation6 + $0x10] sm:$0xff]  ;;  %v241_v36 = vld [vmem:[#allocation6 + $0x28] sm:$0xff]  ;;  %v13084_v38 = vpack.c.bf16 %v270_v32, %v267_v31  ;;  %s13601_s17 = sshll.u32 %s13682_s16, 4  ;;  %s13602_s17 = int_to_ptr.vmem [resolvable:$false] %s13601_s17 }
  0x76   : > { %13073 = vmatprep.subr.bf16.mxu0 %v13072_v15  ;;  %v13082_v34 = vpack.c.bf16 %v263_v30, %v260_v29  ;;  %v244_v37 = vld [vmem:[#allocation6 + $0x40] sm:$0xff]  ;;  %v269_v39 = vld [vmem:[#allocation6 + $0x108] sm:$0xff]  ;;  %v13096_v41 = vpack.c.bf16 %v241_v36, %v238_v35  ;;  %v247_v42 = vld [vmem:[#allocation6 + $0x58] sm:$0xff]  ;;  %p13599_p1 = pnand %p13598_p11, %p16445_p0  ;;  %s13603_s21 = scalar_lea.vmem %s13602_s17, 4096 }
  0x77   : > { %v273_v40 = vld [vmem:[#allocation6 + $0x128] sm:$0xff]  ;;  %v276_v43 = vld [vmem:[#allocation6 + $0x140] sm:$0xff]  ;;  %v13100_v44 = vpack.c.bf16 %v247_v42, %v244_v37  ;;  %v250_v45 = vld [vmem:[#allocation6 + $0x70] sm:$0xff]  ;;  %v13086_v47 = vpack.c.bf16 %v269_v39, %v266_v33  ;;  %p13604_p5 = scmp.lt.s32.totalorder %s16134_s27, %s13602_s17  ;;  %p13605_p9 = scmp.lt.s32.totalorder %s13603_s21, %s13597_s10 }
  0x78   : > { %v253_v46 = vld [vmem:[#allocation6 + $0x88] sm:$0xff]  ;;  %13097 = vmatprep.subr.bf16.mxu1 %v13096_v41  ;;  %v13088_v48 = vpack.c.bf16 %v276_v43, %v273_v40  ;;  %v272_v49 = vld [vmem:[#allocation6 + $0x120] sm:$0xff]  ;;  %v275_v50 = vld [vmem:[#allocation6 + $0x138] sm:$0xff]  ;;  %p13600_p3 = pneg %p13599_p1 }
  0x79   : > { %13075 = vmatpush1.bf16.msra.mxu0 %v13074_v20  ;;  %13099 = vmatpush3.bf16.msra.mxu1 %v13096_v41  ;;  %v279_v51 = vld [vmem:[#allocation6 + $0x158] sm:$0xff]  ;;  %v13104_v52 = vpack.c.bf16 %v253_v46, %v250_v45  ;;  %v282_v53 = vld [vmem:[#allocation6 + $0x170] sm:$0xff]  ;;  %v256_v54 = vld [vmem:[#allocation6 + $0xa0] sm:$0xff]  ;;  %v13090_v56 = vpack.c.bf16 %v275_v50, %v272_v49  ;;  %p13606_p12 = por %p13605_p9, %p13604_p5 }
  0x7a   : > { %13077 = vmatprep.subr.bf16.mxu0 %v13076_v21  ;;  %13101 = vmatprep.subr.bf16.mxu1 %v13100_v44  ;;  %v259_v55 = vld [vmem:[#allocation6 + $0xb8] sm:$0xff]  ;;  %v13092_v57 = vpack.c.bf16 %v282_v53, %v279_v51  ;;  %v278_v58 = vld [vmem:[#allocation6 + $0x150] sm:$0xff]  ;;  %v281_v59 = vld [vmem:[#allocation6 + $0x168] sm:$0xff] }
  0x7b   : > { %v13108_v60 = vpack.c.bf16 %v259_v55, %v256_v54  ;;  %v262_v61 = vld [vmem:[#allocation6 + $0xd0] sm:$0xff]  ;;  %v265_v62 = vld [vmem:[#allocation6 + $0xe8] sm:$0xff]  ;;  %v13094_v63 = vpack.c.bf16 %v281_v59, %v278_v58  ;;  %v268_v2 = vld [vmem:[#allocation6 + $0x100] sm:$0xff]  ;;  %p13607_p2 = pnand %p13606_p12, %p13600_p3 }
  0x7c   : > { %v13112_v1 = vpack.c.bf16 %v265_v62, %v262_v61  ;;  %v271_v3 = vld [vmem:[#allocation6 + $0x118] sm:$0xff]  ;;  %v274_v5 = vld [vmem:[#allocation6 + $0x130] sm:$0xff]  ;;  %v277_v6 = vld [vmem:[#allocation6 + $0x148] sm:$0xff] }
  0x7d   : > { %13079 = vmatpush1.bf16.msra.mxu0 %v13078_v27  ;;  %13103 = vmatpush3.bf16.msra.mxu1 %v13100_v44  ;;  %v13116_v4 = vpack.c.bf16 %v271_v3, %v268_v2  ;;  %v221_v7 = vld [vmem:[%s13889_s28 + $0x8] sm:$0xff]  ;;  %v13120_v8 = vpack.c.bf16 %v277_v6, %v274_v5  ;;  %v280_v9 = vld [vmem:[#allocation6 + $0x160] sm:$0xff]  ;;  %v283_v10 = vld [vmem:[#allocation6 + $0x178] sm:$0xff] }
  0x7e   : > { %13081 = vmatprep.subr.bf16.mxu0 %v13080_v28  ;;  %13105 = vmatprep.subr.bf16.mxu1 %v13104_v52  ;;  %v222_v11 = vld [vmem:[%s13889_s28 + $0x10] sm:$0xff]  ;;  %v13124_v12 = vpack.c.bf16 %v283_v10, %v280_v9  ;;  %v223_v13 = vld [vmem:[%s13889_s28 + $0x18] sm:$0xff]  ;;  %v224_v14 = vld [vmem:[%s13889_s28 + $0x20] sm:$0xff] }
  0x7f   : > { %v225_v15 = vld [vmem:[%s13889_s28 + $0x28] sm:$0xff]  ;;  %v226_v16 = vld [vmem:[%s13889_s28 + $0x30] sm:$0xff]  ;;  %v227_v17 = vld [vmem:[%s13889_s28 + $0x38] sm:$0xff] }
  0x80   : > { %v228_v18 = vld [vmem:[%s13889_s28 + $0x40] sm:$0xff]  ;;  %v229_v19 = vld [vmem:[%s13889_s28 + $0x48] sm:$0xff]  ;;  %v230_v20 = vld [vmem:[%s13889_s28 + $0x50] sm:$0xff] }
  0x81   : > { %13083 = vmatpush1.bf16.msra.mxu0 %v13082_v34  ;;  %13107 = vmatpush3.bf16.msra.mxu1 %v13104_v52  ;;  %v231_v21 = vld [vmem:[%s13889_s28 + $0x58] sm:$0xff]  ;;  %v232_v22 = vld [vmem:[%s13889_s28 + $0x60] sm:$0xff]  ;;  %v233_v23 = vld [vmem:[%s13889_s28 + $0x68] sm:$0xff] }
  0x82   : > { %13085 = vmatprep.subr.bf16.mxu0 %v13084_v38  ;;  %13109 = vmatprep.subr.bf16.mxu1 %v13108_v60  ;;  %v234_v24 = vld [vmem:[%s13889_s28 + $0x70] sm:$0xff]  ;;  %v235_v25 = vld [vmem:[%s13889_s28 + $0x78] sm:$0xff] }
  0x85   : > { %13087 = vmatpush1.bf16.msra.mxu0 %v13086_v47  ;;  %13111 = vmatpush3.bf16.msra.mxu1 %v13108_v60 }
  0x86   : > { %13089 = vmatprep.subr.bf16.mxu0 %v13088_v48  ;;  %13113 = vmatprep.subr.bf16.mxu1 %v13112_v1 }
  0x89   : > { %13091 = vmatpush1.bf16.msra.mxu0 %v13090_v56  ;;  %13115 = vmatpush3.bf16.msra.mxu1 %v13112_v1 }
  0x8a   : > { %13093 = vmatprep.subr.bf16.mxu0 %v13092_v57  ;;  %13117 = vmatprep.subr.bf16.mxu1 %v13116_v4 }
  0x8d   : > { %13095 = vmatpush1.bf16.msra.mxu0 %v13094_v63  ;;  %13119 = vmatpush3.bf16.msra.mxu1 %v13116_v4 }
  0x8e   : > { %12408 = vmatprep.subr.mxu0 %v16187_v0  ;;  %13121 = vmatprep.subr.bf16.mxu1 %v13120_v8 }
  0x90   : > { %349 = vmatmul.mubr.f32.vlgmr.msra.gmra.mrb[0].mxu0 %v13901_v26 }
  0x91   : > { %354 = vmatprep.mubr.f32.mxu0 %v16187_v0  ;;  %13123 = vmatpush3.bf16.msra.mxu1 %v13120_v8 }
  0x92   : > { %13125 = vmatprep.subr.bf16.mxu1 %v13124_v12 }
  0x94   : > { %355 = vmatmul.mubr.f32.gmra.mrb[2].mxu0 %v221_v7 }
  0x95   : > { %360 = vmatprep.mubr.f32.mxu0 %v16187_v0  ;;  %13127 = vmatpush3.bf16.msra.mxu1 %v13124_v12 }
  0x96   : > { %12368 = vmatprep.subr.mxu1 %v16187_v0 }
  0x98   : > { %361 = vmatmul.mubr.f32.gmra.mrb[4].mxu0 %v222_v11  ;;  %12345 = vmatmul.mubr.f32.vlgmr.msra.gmra.mrb[0].mxu1 %v221_v7 }
  0x99   : > { %366 = vmatprep.mubr.f32.mxu0 %v16187_v0  ;;  %12347 = vmatprep.mubr.f32.mxu1 %v222_v11  ;;  %v590_v11 = vlaneseq }
  0x9b   : > { %v591_v12 = vshrl.u32 %v590_v11, 7 }
  0x9c   : > { %367 = vmatmul.mubr.f32.gmra.mrb[6].mxu0 %v223_v13  ;;  %12348 = vmatmul.mubr.f32.gmra.mrb[2].mxu1 %v223_v13  ;;  %v593_v13 = vand.u32 127, %v590_v11 }
  0x9d   : > { %372 = vmatprep.mubr.f32.mxu0 %v16187_v0  ;;  %12350 = vmatprep.mubr.f32.mxu1 %v224_v14 }
  0x9e   : > { %vm594_vm2 = vcmp.le.s32.totalorder %v593_v13, %v591_v12 }
  0xa0   : > { %373 = vmatmul.mubr.f32.gmra.mrb[8].mxu0 %v224_v14  ;;  %12351 = vmatmul.mubr.f32.gmra.mrb[4].mxu1 %v225_v15 }
  0xa1   : > { %378 = vmatprep.mubr.f32.mxu0 %v16187_v0  ;;  %12353 = vmatprep.mubr.f32.mxu1 %v226_v16 }
  0xa4   : > { %379 = vmatmul.mubr.f32.gmra.mrb[10].mxu0 %v225_v15  ;;  %12354 = vmatmul.mubr.f32.gmra.mrb[6].mxu1 %v227_v17  ;;  %v13679_v15 = vmov -1e+30  }
  0xa5   : > { %384 = vmatprep.mubr.f32.mxu0 %v16187_v0  ;;  %12356 = vmatprep.mubr.f32.mxu1 %v228_v18 }
  0xa8   : > { %385 = vmatmul.mubr.f32.gmra.mrb[12].mxu0 %v226_v16  ;;  %12357 = vmatmul.mubr.f32.gmra.mrb[8].mxu1 %v229_v19  ;;  %v14167_v16 = vsel %vm594_vm2, 0.0, %v13679_v15 }
  0xa9   : > { %390 = vmatprep.mubr.f32.mxu0 %v16187_v0  ;;  %12359 = vmatprep.mubr.f32.mxu1 %v230_v20  ;;  %16280 = vst [vmem:[#allocation40_spill] sm:$0xff] %v14167_v16 }
  0xac   : > { %391 = vmatmul.mubr.f32.gmra.mrb[14].mxu0 %v227_v17  ;;  %12360 = vmatmul.mubr.f32.gmra.mrb[10].mxu1 %v231_v21 }
  0xad   : > { %396 = vmatprep.mubr.f32.mxu0 %v16187_v0  ;;  %12362 = vmatprep.mubr.f32.mxu1 %v232_v22 }
  0xb0   : > { %397 = vmatmul.mubr.f32.gmra.mrb[16].mxu0 %v228_v18  ;;  %12363 = vmatmul.mubr.f32.gmra.mrb[12].mxu1 %v233_v23 }
  0xb1   : > { %402 = vmatprep.mubr.f32.mxu0 %v16187_v0  ;;  %12365 = vmatprep.mubr.f32.mxu1 %v234_v24 }
  0xb4   : > { %403 = vmatmul.mubr.f32.gmra.mrb[18].mxu0 %v229_v19  ;;  %12366 = vmatmul.mubr.f32.gmra.mrb[14].mxu1 %v235_v25 }
  0xb5   : > { %408 = vmatprep.mubr.f32.mxu0 %v16187_v0  ;;  %12370 = vmatprep.mubr.msk.f32.mxu1 %vm13677_vm0, %v16187_v0 }
  0xb8   : > { %409 = vmatmul.mubr.f32.gmra.mrb[20].mxu0 %v230_v20 }
  0xb9   : > { %414 = vmatprep.mubr.f32.mxu0 %v16187_v0 }
  0xbc   : > { %415 = vmatmul.mubr.f32.gmra.mrb[22].mxu0 %v231_v21 }
  0xbd   : > { %420 = vmatprep.mubr.f32.mxu0 %v16187_v0 }
  0xc0   : > { %421 = vmatmul.mubr.f32.gmra.mrb[24].mxu0 %v232_v22 }
  0xc1   : > { %426 = vmatprep.mubr.f32.mxu0 %v16187_v0 }
  0xc4   : > { %427 = vmatmul.mubr.f32.gmra.mrb[26].mxu0 %v233_v23 }
  0xc5   : > { %432 = vmatprep.mubr.f32.mxu0 %v16187_v0 }
  0xc8   : > { %433 = vmatmul.mubr.f32.gmra.mrb[28].mxu0 %v234_v24 }
  0xc9   : > { %438 = vmatprep.mubr.f32.mxu0 %v16187_v0 }
  0xcc   : > { %439 = vmatmul.mubr.f32.gmra.mrb[30].mxu0 %v235_v25 }
  0xcd   : > { %12410 = vmatprep.mubr.msk.f32.mxu0 %vm13677_vm0, %v16187_v0 }
 0x163   : > { %v13941_v26 = vpop.f32.mrb[0].mxu0 }
 0x164   : > { %16253 = vst [vmem:[#allocation13_spill] sm:$0xff] %v13941_v26  ;;  %3206 = vrot.lane.b32.xlu1 %v13941_v26, %s13678_s18  ;;  %v13945_v27 = vpop.f32.mrb[1].mxu0 }
 0x165   : > { %16254 = vst [vmem:[#allocation14_spill] sm:$0xff] %v13945_v27  ;;  %3208 = vrot.lane.b32.xlu0 %v13945_v27, %s13678_s18  ;;  %12369 = vmatpush3.xpose.msk.msra.mxu1 %vm596_vm1, %v13945_v27 }
 0x166   : > { %12373 = vmatprep.subr.mxu1 %v16187_v0 }
 0x167   : > { %v13952_v28 = vpop.f32.mrb[2].mxu0 }
 0x168   : > { %16255 = vst [vmem:[#allocation15_spill] sm:$0xff] %v13952_v28  ;;  %v13954_v29 = vpop.f32.mrb[3].mxu0  ;;  %12371 = vmatmul.mubr.msk.f32.vlgmr.msra.gmra.mrb[16].mxu1 %vm596_vm1, %v13941_v26  ;;  %3284 = vrot.lane.b32.xlu1 %v13952_v28, %s13678_s18 }
 0x169   : > { %16256 = vst [vmem:[#allocation16_spill] sm:$0xff] %v13954_v29  ;;  %12374 = vmatpush3.xpose.msk.msra.mxu1 %vm596_vm1, %v13954_v29  ;;  %12375 = vmatprep.mubr.msk.f32.mxu1 %vm13677_vm0, %v16187_v0 }
 0x16a   : > { %12378 = vmatprep.subr.mxu1 %v16187_v0 }
 0x16b   : > { %v13965_v30 = vpop.f32.mrb[4].mxu0  ;;  %v13995_v35 = vpop.f32.mrb[0].mxu1 }
 0x16c   : > { %16257 = vst [vmem:[#allocation17_spill] sm:$0xff] %v13965_v30  ;;  %v13967_v31 = vpop.f32.mrb[5].mxu0  ;;  %12376 = vmatmul.mubr.msk.f32.vlgmr.msra.gmra.mrb[18].mxu1 %vm596_vm1, %v13952_v28  ;;  %3286 = vrot.lane.b32.xlu1 %v13954_v29, %s13678_s18  ;;  %v14001_v37 = vpop.f32.mrb[1].mxu1 }
 0x16d   : > { %16258 = vst [vmem:[#allocation18_spill] sm:$0xff] %v13967_v31  ;;  %12379 = vmatpush3.xpose.msk.msra.mxu1 %vm596_vm1, %v13967_v31  ;;  %12380 = vmatprep.mubr.msk.f32.mxu1 %vm13677_vm0, %v16187_v0  ;;  %16263 = vst [vmem:[#allocation23_spill] sm:$0xff] %v14001_v37 }
 0x16e   : > { %12383 = vmatprep.subr.mxu1 %v16187_v0  ;;  %3364 = vrot.lane.b32.xlu0 %v13967_v31, %s13678_s18 }
 0x16f   : > { %v13980_v32 = vpop.f32.mrb[6].mxu0  ;;  %v14012_v39 = vpop.f32.mrb[2].mxu1 }
 0x170   : > { %16259 = vst [vmem:[#allocation19_spill] sm:$0xff] %v13980_v32  ;;  %v13982_v33 = vpop.f32.mrb[7].mxu0  ;;  %12381 = vmatmul.mubr.msk.f32.vlgmr.msra.gmra.mrb[20].mxu1 %vm596_vm1, %v13965_v30  ;;  %v14018_v41 = vpop.f32.mrb[3].mxu1 }
 0x171   : > { %16260 = vst [vmem:[#allocation20_spill] sm:$0xff] %v13982_v33  ;;  %12384 = vmatpush3.xpose.msk.msra.mxu1 %vm596_vm1, %v13982_v33  ;;  %12385 = vmatprep.mubr.msk.f32.mxu1 %vm13677_vm0, %v16187_v0  ;;  %16266 = vst [vmem:[#allocation26_spill] sm:$0xff] %v14018_v41 }
 0x172   : > { %12388 = vmatprep.subr.mxu1 %v16187_v0  ;;  %3442 = vrot.lane.b32.xlu1 %v13982_v33, %s13678_s18 }
 0x173   : > { %v13993_v34 = vpop.f32.mrb[8].mxu0  ;;  %v14027_v43 = vpop.f32.mrb[4].mxu1 }
 0x174   : > { %16261 = vst [vmem:[#allocation21_spill] sm:$0xff] %v13993_v34  ;;  %v13997_v36 = vpop.f32.mrb[9].mxu0  ;;  %12386 = vmatmul.mubr.msk.f32.vlgmr.msra.gmra.mrb[22].mxu1 %vm596_vm1, %v13980_v32  ;;  %v14033_v45 = vpop.f32.mrb[5].mxu1 }
 0x175   : > { %16262 = vst [vmem:[#allocation22_spill] sm:$0xff] %v13997_v36  ;;  %12389 = vmatpush3.xpose.msk.msra.mxu1 %vm596_vm1, %v13997_v36  ;;  %12390 = vmatprep.mubr.msk.f32.mxu1 %vm13677_vm0, %v16187_v0  ;;  %16268 = vst [vmem:[#allocation28_spill] sm:$0xff] %v14033_v45 }
 0x176   : > { %12393 = vmatprep.subr.mxu1 %v16187_v0  ;;  %3440 = vrot.lane.b32.xlu1 %v13980_v32, %s13678_s18 }
 0x177   : > { %v14010_v38 = vpop.f32.mrb[10].mxu0  ;;  %v14042_v47 = vpop.f32.mrb[6].mxu1 }
 0x178   : > { %16264 = vst [vmem:[#allocation24_spill] sm:$0xff] %v14010_v38  ;;  %v14014_v40 = vpop.f32.mrb[11].mxu0  ;;  %12391 = vmatmul.mubr.msk.f32.vlgmr.msra.gmra.mrb[24].mxu1 %vm596_vm1, %v13993_v34  ;;  %16269 = vst [vmem:[#allocation29_spill] sm:$0xff] %v14042_v47  ;;  %v14048_v49 = vpop.f32.mrb[7].mxu1 }
 0x179   : > { %16265 = vst [vmem:[#allocation25_spill] sm:$0xff] %v14014_v40  ;;  %12394 = vmatpush3.xpose.msk.msra.mxu1 %vm596_vm1, %v14014_v40  ;;  %12395 = vmatprep.mubr.msk.f32.mxu1 %vm13677_vm0, %v16187_v0 }
 0x17a   : > { %12398 = vmatprep.subr.mxu1 %v16187_v0 }
 0x17b   : > { %v14025_v42 = vpop.f32.mrb[12].mxu0  ;;  %v14057_v51 = vpop.f32.mrb[8].mxu1 }
 0x17c   : > { %v14029_v44 = vpop.f32.mrb[13].mxu0  ;;  %12396 = vmatmul.mubr.msk.f32.vlgmr.msra.gmra.mrb[26].mxu1 %vm596_vm1, %v14010_v38  ;;  %16271 = vst [vmem:[#allocation31_spill] sm:$0xff] %v14057_v51  ;;  %v14063_v53 = vpop.f32.mrb[9].mxu1 }
 0x17d   : > { %16267 = vst [vmem:[#allocation27_spill] sm:$0xff] %v14029_v44  ;;  %12399 = vmatpush3.xpose.msk.msra.mxu1 %vm596_vm1, %v14029_v44  ;;  %12400 = vmatprep.mubr.msk.f32.mxu1 %vm13677_vm0, %v16187_v0  ;;  %16272 = vst [vmem:[#allocation32_spill] sm:$0xff] %v14063_v53 }
 0x17e   : > { %12403 = vmatprep.subr.mxu1 %v16187_v0 }
 0x17f   : > { %v14040_v46 = vpop.f32.mrb[14].mxu0  ;;  %v14072_v55 = vpop.f32.mrb[10].mxu1 }
 0x180   : > { %v14044_v48 = vpop.f32.mrb[15].mxu0  ;;  %12401 = vmatmul.mubr.msk.f32.vlgmr.msra.gmra.mrb[28].mxu1 %vm596_vm1, %v14025_v42  ;;  %16273 = vst [vmem:[#allocation33_spill] sm:$0xff] %v14072_v55  ;;  %v14078_v57 = vpop.f32.mrb[11].mxu1 }
 0x181   : > { %16270 = vst [vmem:[#allocation30_spill] sm:$0xff] %v14044_v48  ;;  %12404 = vmatpush3.xpose.msk.msra.mxu1 %vm596_vm1, %v14044_v48  ;;  %12405 = vmatprep.mubr.msk.f32.mxu1 %vm13677_vm0, %v16187_v0  ;;  %16274 = vst [vmem:[#allocation34_spill] sm:$0xff] %v14078_v57 }
 0x182   : > { %12413 = vmatprep.subr.mxu1 %v16187_v0 }
 0x183   : > { %v14055_v50 = vpop.f32.mrb[16].mxu0  ;;  %v14087_v59 = vpop.f32.mrb[12].mxu1 }
 0x184   : > { %12406 = vmatmul.mubr.msk.f32.vlgmr.msra.gmra.mrb[30].mxu1 %vm596_vm1, %v14040_v46  ;;  %v14061_v52 = vpop.f32.mrb[17].mxu0  ;;  %16275 = vst [vmem:[#allocation35_spill] sm:$0xff] %v14087_v59  ;;  %v14093_v61 = vpop.f32.mrb[13].mxu1 }
 0x185   : > { %12415 = vmatprep.mubr.msk.f32.mxu1 %vm13677_vm0, %v16187_v0  ;;  %12409 = vmatpush3.xpose.msk.msra.mxu0 %vm596_vm1, %v14061_v52  ;;  %16276 = vst [vmem:[#allocation36_spill] sm:$0xff] %v14093_v61 }
 0x186   : > { %12418 = vmatprep.subr.mxu0 %v16187_v0 }
 0x187   : > { %v14070_v54 = vpop.f32.mrb[18].mxu0  ;;  %v14102_v63 = vpop.f32.mrb[14].mxu1 }
 0x188   : > { %v14074_v56 = vpop.f32.mrb[19].mxu0  ;;  %12411 = vmatmul.mubr.msk.f32.vlgmr.msra.gmra.mrb[32].mxu0 %vm596_vm1, %v14055_v50  ;;  %16277 = vst [vmem:[#allocation37_spill] sm:$0xff] %v14102_v63  ;;  %v14108_v2 = vpop.f32.mrb[15].mxu1 }
 0x189   : > { %12414 = vmatpush3.xpose.msk.msra.mxu1 %vm596_vm1, %v14074_v56  ;;  %12420 = vmatprep.mubr.msk.f32.mxu0 %vm13677_vm0, %v16187_v0  ;;  %16278 = vst [vmem:[#allocation38_spill] sm:$0xff] %v14108_v2 }
 0x18a   : > { %12423 = vmatprep.subr.mxu1 %v16187_v0 }
 0x18b   : > { %v14085_v58 = vpop.f32.mrb[20].mxu0 }
 0x18c   : > { %12416 = vmatmul.mubr.msk.f32.vlgmr.msra.gmra.mrb[32].mxu1 %vm596_vm1, %v14070_v54  ;;  %v14091_v60 = vpop.f32.mrb[21].mxu0 }
 0x18d   : > { %12425 = vmatprep.mubr.msk.f32.mxu1 %vm13677_vm0, %v16187_v0  ;;  %12419 = vmatpush3.xpose.msk.msra.mxu0 %vm596_vm1, %v14091_v60 }
 0x18e   : > { %12428 = vmatprep.subr.mxu0 %v16187_v0 }
 0x18f   : > { %v14100_v62 = vpop.f32.mrb[22].mxu0 }
 0x190   : > { %v14104_v1 = vpop.f32.mrb[23].mxu0  ;;  %12421 = vmatmul.mubr.msk.f32.vlgmr.msra.gmra.mrb[34].mxu0 %vm596_vm1, %v14085_v58 }
 0x191   : > { %12424 = vmatpush3.xpose.msk.msra.mxu1 %vm596_vm1, %v14104_v1  ;;  %12430 = vmatprep.mubr.msk.f32.mxu0 %vm13677_vm0, %v16187_v0 }
 0x192   : > { %12433 = vmatprep.subr.mxu1 %v16187_v0 }
 0x193   : > { %v14115_v3 = vpop.f32.mrb[24].mxu0 }
 0x194   : > { %12426 = vmatmul.mubr.msk.f32.vlgmr.msra.gmra.mrb[34].mxu1 %vm596_vm1, %v14100_v62  ;;  %v14119_v4 = vpop.f32.mrb[25].mxu0 }
 0x195   : > { %12435 = vmatprep.mubr.msk.f32.mxu1 %vm13677_vm0, %v16187_v0  ;;  %12429 = vmatpush3.xpose.msk.msra.mxu0 %vm596_vm1, %v14119_v4 }
 0x196   : > { %12438 = vmatprep.subr.mxu0 %v16187_v0 }
 0x197   : > { %v14126_v5 = vpop.f32.mrb[26].mxu0 }
 0x198   : > { %v14128_v6 = vpop.f32.mrb[27].mxu0  ;;  %12431 = vmatmul.mubr.msk.f32.vlgmr.msra.gmra.mrb[36].mxu0 %vm596_vm1, %v14115_v3 }
 0x199   : > { %12434 = vmatpush3.xpose.msk.msra.mxu1 %vm596_vm1, %v14128_v6  ;;  %12440 = vmatprep.mubr.msk.f32.mxu0 %vm13677_vm0, %v16187_v0 }
 0x19a   : > { %12443 = vmatprep.subr.mxu1 %v16187_v0 }
 0x19b   : > { %v14137_v7 = vpop.f32.mrb[28].mxu0 }
 0x19c   : > { %16279 = vst [vmem:[#allocation39_spill] sm:$0xff] %v14137_v7  ;;  %12436 = vmatmul.mubr.msk.f32.vlgmr.msra.gmra.mrb[36].mxu1 %vm596_vm1, %v14126_v5  ;;  %v14141_v8 = vpop.f32.mrb[29].mxu0 }
 0x19d   : > { %12439 = vmatpush3.xpose.msk.msra.mxu0 %vm596_vm1, %v14141_v8  ;;  %12445 = vmatprep.mubr.msk.f32.mxu1 %vm13677_vm0, %v16187_v0 }
 0x19e   : > { %12448 = vmatprep.subr.mxu0 %v16187_v0 }
 0x19f   : > { %v14148_v9 = vpop.f32.mrb[30].mxu0 }
 0x1a0   : > { %12441 = vmatmul.mubr.msk.f32.vlgmr.msra.gmra.mrb[38].mxu0 %vm596_vm1, %v14137_v7  ;;  %v14152_v10 = vpop.f32.mrb[31].mxu0 }
 0x1a1   : > { %12444 = vmatpush3.xpose.msk.msra.mxu1 %vm596_vm1, %v14152_v10  ;;  %12449 = vmatpush3.msra.mxu0 %v14001_v37 }
 0x1a2   : > { %12453 = vmatprep.subr.mxu1 %v16187_v0  ;;  %12450 = vmatprep.mubr.msk.f32.mxu0 %vm13677_vm0, %v16187_v0 }
 0x1a3   : > { %12458 = vmatprep.subr.mxu0 %v16187_v0 }
 0x1a4   : > { %12446 = vmatmul.mubr.msk.f32.vlgmr.msra.gmra.mrb[38].mxu1 %vm596_vm1, %v14148_v9 }
 0x1a5   : > { %12454 = vmatpush3.msra.mxu1 %v13995_v35  ;;  %12455 = vmatprep.mubr.msk.f32.mxu1 %vm13677_vm0, %v16187_v0 }
 0x1a6   : > { %12463 = vmatprep.subr.mxu1 %v16187_v0 }
 0x23b   : > { %v669_v14 = vpop.f32.mrb[16].mxu1 }
 0x23c   : > { %v1813_v17 = vmul.f32 0.17677669, %v669_v14  ;;  %v12372_v18 = vpop.f32.mrb[17].mxu1 }
 0x23e   : > { %v14170_v19 = vadd.f32 %v1813_v17, %v14167_v16 }
 0x23f   : > { %v745_v20 = vpop.f32.mrb[18].mxu1 }
 0x240   : > { %v1814_v21 = vmul.f32 0.17677669, %v745_v20  ;;  %v1846_v22 = vsel %vm1845_vm3, %v14170_v19, -inf  ;;  %v12377_v23 = vpop.f32.mrb[19].mxu1 }
 0x241   : > { %1847 = vmax.xlane.f32.xlu0 %v1846_v22 }
 0x242   : > { %v14175_v24 = vadd.f32 %v1814_v21, %v14167_v16 }
 0x243   : > { %v821_v25 = vpop.f32.mrb[20].mxu1 }
 0x244   : > { %v1815_v11 = vmul.f32 0.17677669, %v821_v25  ;;  %v1849_v12 = vsel %vm1845_vm3, %v14175_v24, -inf  ;;  %v12382_v13 = vpop.f32.mrb[21].mxu1 }
 0x245   : > { %1850 = vmax.xlane.f32.xlu0 %v1849_v12 }
 0x246   : > { %v14180_v14 = vadd.f32 %v1815_v11, %v14167_v16 }
 0x247   : > { %v897_v15 = vpop.f32.mrb[22].mxu1 }
 0x248   : > { %v1816_v17 = vmul.f32 0.17677669, %v897_v15  ;;  %v1852_v18 = vsel %vm1845_vm3, %v14180_v14, -inf  ;;  %v12387_v20 = vpop.f32.mrb[23].mxu1 }
 0x249   : > { %1853 = vmax.xlane.f32.xlu1 %v1852_v18 }
 0x24a   : > { %v14185_v21 = vadd.f32 %v1816_v17, %v14167_v16 }
 0x24b   : > { %v973_v22 = vpop.f32.mrb[24].mxu1 }
 0x24c   : > { %v1855_v23 = vsel %vm1845_vm3, %v14185_v21, -inf  ;;  %v12392_v25 = vpop.f32.mrb[25].mxu1 }
 0x24d   : > { %1856 = vmax.xlane.f32.xlu1 %v1855_v23 }
 0x24f   : > { %v1049_v12 = vpop.f32.mrb[26].mxu1 }
 0x250   : > { %v1818_v13 = vmul.f32 0.17677669, %v1049_v12  ;;  %v12397_v11 = vpop.f32.mrb[27].mxu1 }
 0x252   : > { %v14190_v0 = vadd.f32 %v1818_v13, %v14167_v16 }
 0x253   : > { %v1125_v15 = vpop.f32.mrb[28].mxu1 }
 0x254   : > { %v1861_v20 = vsel %vm1845_vm3, %v14190_v0, -inf  ;;  %v12402_v18 = vpop.f32.mrb[29].mxu1 }
 0x255   : > { %1862 = vmax.xlane.f32.xlu1 %v1861_v20 }
 0x257   : > { %v1201_v17 = vpop.f32.mrb[30].mxu1 }
 0x258   : > { %v1820_v32 = vmul.f32 0.17677669, %v1201_v17  ;;  %v12407_v33 = vpop.f32.mrb[31].mxu1 }
 0x25a   : > { %v14195_v28 = vadd.f32 %v1820_v32, %v14167_v16 }
 0x25b   : > { %3362 = vrot.lane.b32.xlu0 %v13965_v30, %s13678_s18  ;;  %v1277_v23 = vpop.f32.mrb[32].mxu0  ;;  %v1817_v30 = vmul.f32 0.17677669, %v973_v22 }
 0x25c   : > { %v1867_v25 = vsel %vm1845_vm3, %v14195_v28, -inf  ;;  %v12412_v12 = vpop.f32.mrb[33].mxu0 }
 0x25d   : > { %1868 = vmax.xlane.f32.xlu1 %v1867_v25 }
 0x25f   : > { %v1353_v13 = vpop.f32.mrb[32].mxu1 }
 0x260   : > { %v1822_v11 = vmul.f32 0.17677669, %v1353_v13  ;;  %v12417_v29 = vpop.f32.mrb[33].mxu1 }
 0x262   : > { %v14202_v20 = vadd.f32 %v1822_v11, %v14167_v16 }
 0x263   : > { %v1429_v18 = vpop.f32.mrb[34].mxu0 }
 0x264   : > { %v1873_v32 = vsel %vm1845_vm3, %v14202_v20, -inf  ;;  %v12422_v33 = vpop.f32.mrb[35].mxu0 }
 0x265   : > { %1874 = vmax.xlane.f32.xlu1 %v1873_v32 }
 0x267   : > { %v1505_v17 = vpop.f32.mrb[34].mxu1 }
 0x268   : > { %v1824_v63 = vmul.f32 0.17677669, %v1505_v17  ;;  %v12427_v59 = vpop.f32.mrb[35].mxu1  ;;  %v14217_v17 = vadd.f32 %v1817_v30, %v14167_v16 }
 0x26a   : > { %v14207_v55 = vadd.f32 %v1824_v63, %v14167_v16  ;;  %v1819_v63 = vmul.f32 0.17677669, %v1125_v15 }
 0x26b   : > { %v1581_v12 = vpop.f32.mrb[36].mxu0 }
 0x26c   : > { %v1879_v25 = vsel %vm1845_vm3, %v14207_v55, -inf  ;;  %v12432_v29 = vpop.f32.mrb[37].mxu0  ;;  %v14222_v22 = vadd.f32 %v1819_v63, %v14167_v16  ;;  %v1825_v30 = vmul.f32 0.17677669, %v1581_v12 }
 0x26d   : > { %1880 = vmax.xlane.f32.xlu1 %v1879_v25  ;;  %v1821_v25 = vmul.f32 0.17677669, %v1277_v23 }
 0x26f   : > { %v1657_v13 = vpop.f32.mrb[36].mxu1  ;;  %v14227_v15 = vadd.f32 %v1821_v25, %v14167_v16 }
 0x270   : > { %v1826_v11 = vmul.f32 0.17677669, %v1657_v13  ;;  %v12437_v51 = vpop.f32.mrb[37].mxu1  ;;  %v1823_v13 = vmul.f32 0.17677669, %v1429_v18  ;;  %v14237_v18 = vadd.f32 %v1825_v30, %v14167_v16 }
 0x271   : > { %v1858_v51 = vsel %vm1845_vm3, %v14217_v17, -inf }
 0x272   : > { %v14212_v47 = vadd.f32 %v1826_v11, %v14167_v16  ;;  %v1864_v11 = vsel %vm1845_vm3, %v14222_v22, -inf  ;;  %v14232_v23 = vadd.f32 %v1823_v13, %v14167_v16 }
 0x273   : > { %v1733_v32 = vpop.f32.mrb[38].mxu0 }
 0x274   : > { %v1885_v59 = vsel %vm1845_vm3, %v14212_v47, -inf  ;;  %v12442_v33 = vpop.f32.mrb[39].mxu0  ;;  %v1876_v63 = vsel %vm1845_vm3, %v14232_v23, -inf }
 0x275   : > { %1886 = vmax.xlane.f32.xlu1 %v1885_v59  ;;  %v1870_v59 = vsel %vm1845_vm3, %v14227_v15, -inf  ;;  %v1827_v33 = vmul.f32 0.17677669, %v1733_v32 }
 0x277   : > { %v1809_v31 = vpop.f32.mrb[38].mxu1  ;;  %v14242_v12 = vadd.f32 %v1827_v33, %v14167_v16 }
 0x278   : > { %v12447_v29 = vpop.f32.mrb[39].mxu1  ;;  %v1828_v25 = vmul.f32 0.17677669, %v1809_v31  ;;  %v14267_v31 = vpop.permute.xlu0 %3208 }
 0x279   : > { %v1882_v29 = vsel %vm1845_vm3, %v14237_v18, -inf  ;;  %v1888_v32 = vsel %vm1845_vm3, %v14242_v12, -inf }
 0x27a   : > { %1859 = vmax.xlane.f32.xlu0 %v1858_v51  ;;  %v14255_v51 = vadd.f32 %v1828_v25, %v14167_v16 }
 0x27c   : > { %v1891_v13 = vsel %vm1845_vm3, %v14255_v51, -inf  ;;  %v14271_v33 = vpop.permute.xlu0 %3364 }
 0x27e   : > { %1865 = vmax.xlane.f32.xlu0 %v1864_v11  ;;  %v14261_v11 = vpop.permute.xlu1 %3206 }
 0x282   : > { %1871 = vmax.xlane.f32.xlu0 %v1870_v59  ;;  %v14265_v30 = vpop.permute.xlu1 %3284 }
 0x283   : > { %16281 = vst [vmem:[#allocation41_spill] sm:$0xff] %v14265_v30 }
 0x286   : > { %3598 = vrot.lane.b32.xlu1 %v14014_v40, %s13678_s18  ;;  %1877 = vmax.xlane.f32.xlu0 %v1876_v63  ;;  %v14269_v59 = vpop.permute.xlu1 %3286 }
 0x28a   : > { %3596 = vrot.lane.b32.xlu1 %v14010_v38, %s13678_s18  ;;  %1883 = vmax.xlane.f32.xlu0 %v1882_v29  ;;  %v14273_v63 = vpop.permute.xlu1 %3442 }
 0x28b   : > { %16282 = vst [vmem:[#allocation42_spill] sm:$0xff] %v14273_v63 }
 0x28e   : > { %1889 = vmax.xlane.f32.xlu0 %v1888_v32 }
 0x2a4   : > { %3520 = vrot.lane.b32.xlu0 %v13997_v36, %s13678_s18 }
 0x2a8   : > { %3518 = vrot.lane.b32.xlu0 %v13993_v34, %s13678_s18 }
 0x2ac   : > { %3676 = vrot.lane.b32.xlu0 %v14029_v44, %s13678_s18 }
 0x2ae   : > { %1892 = vmax.xlane.f32.xlu1 %v1891_v13  ;;  %v14276_v13 = vpop.permute.xlu1 %3440 }
 0x2af   : > { %16283 = vst [vmem:[#allocation43_spill] sm:$0xff] %v14276_v13 }
 0x2bf   : > { %3754 = vrot.lane.b32.xlu1 %v14044_v48, %s13678_s18 }
 0x2ce   : > { %v1848_v29 = vpop.xlane.xlu0 %1847 }
 0x2cf   : > { %v1894_v32 = vsub.f32 %v14170_v19, %v1848_v29 }
 0x2d1   : > { %v1910_v25 = vmul.f32 1.442695, %v1894_v32 }
 0x2d2   : > { %v1851_v44 = vpop.xlane.xlu0 %1850 }
 0x2d3   : > { %13255 = vpow2.f32 %v1910_v25  ;;  %v1895_v48 = vsub.f32 %v14175_v24, %v1851_v44 }
 0x2d5   : > { %v1912_v34 = vmul.f32 1.442695, %v1895_v48 }
 0x2d6   : > { %v1854_v36 = vpop.xlane.xlu1 %1853 }
 0x2d7   : > { %13257 = vpow2.f32 %v1912_v34  ;;  %v1896_v38 = vsub.f32 %v14180_v14, %v1854_v36 }
 0x2d9   : > { %v1914_v40 = vmul.f32 1.442695, %v1896_v38 }
 0x2da   : > { %v1857_v16 = vpop.xlane.xlu1 %1856 }
 0x2db   : > { %13259 = vpow2.f32 %v1914_v40  ;;  %v1897_v63 = vsub.f32 %v14185_v21, %v1857_v16 }
 0x2dd   : > { %v14281_v30 = vpop.eup %13255  ;;  %v1916_v19 = vmul.f32 1.442695, %v1897_v63 }
 0x2de   : > { %v1942_v29 = vsel %vm1845_vm3, %v14281_v30, 0.0 }
 0x2df   : > { %13261 = vpow2.f32 %v1916_v19  ;;  %1943 = vadd.xlane.f32.xlu0 %v1942_v29 }
 0x2e1   : > { %v14285_v32 = vpop.eup %13257 }
 0x2e2   : > { %v1863_v44 = vpop.xlane.xlu1 %1862  ;;  %v1945_v34 = vsel %vm1845_vm3, %v14285_v32, 0.0 }
 0x2e3   : > { %v1899_v36 = vsub.f32 %v14190_v0, %v1863_v44  ;;  %1946 = vadd.xlane.f32.xlu1 %v1945_v34 }
 0x2e5   : > { %v14290_v38 = vpop.eup %13259  ;;  %v1920_v40 = vmul.f32 1.442695, %v1899_v36 }
 0x2e6   : > { %v1948_v48 = vsel %vm1845_vm3, %v14290_v38, 0.0 }
 0x2e7   : > { %13263 = vpow2.f32 %v1920_v40  ;;  %1949 = vadd.xlane.f32.xlu0 %v1948_v48 }
 0x2e9   : > { %v14294_v16 = vpop.eup %13261 }
 0x2ea   : > { %v1869_v24 = vpop.xlane.xlu1 %1868  ;;  %v1951_v14 = vsel %vm1845_vm3, %v14294_v16, 0.0 }
 0x2eb   : > { %v1901_v21 = vsub.f32 %v14195_v28, %v1869_v24  ;;  %1952 = vadd.xlane.f32.xlu1 %v1951_v14 }
 0x2ed   : > { %v1924_v63 = vmul.f32 1.442695, %v1901_v21  ;;  %v14313_v21 = vpop.permute.xlu0 %3362 }
 0x2ef   : > { %13265 = vpow2.f32 %v1924_v63 }
 0x2f1   : > { %v14299_v0 = vpop.eup %13263 }
 0x2f2   : > { %v1875_v25 = vpop.xlane.xlu1 %1874  ;;  %v1957_v19 = vsel %vm1845_vm3, %v14299_v0, 0.0 }
 0x2f3   : > { %v1903_v29 = vsub.f32 %v14202_v20, %v1875_v25  ;;  %1958 = vadd.xlane.f32.xlu1 %v1957_v19 }
 0x2f5   : > { %v1928_v44 = vmul.f32 1.442695, %v1903_v29 }
 0x2f7   : > { %13267 = vpow2.f32 %v1928_v44 }
 0x2f9   : > { %v14304_v34 = vpop.eup %13265 }
 0x2fa   : > { %v1881_v36 = vpop.xlane.xlu1 %1880  ;;  %v1963_v28 = vsel %vm1845_vm3, %v14304_v34, 0.0 }
 0x2fb   : > { %v1905_v40 = vsub.f32 %v14207_v55, %v1881_v36  ;;  %1964 = vadd.xlane.f32.xlu1 %v1963_v28 }
 0x2fd   : > { %v1932_v48 = vmul.f32 1.442695, %v1905_v40 }
 0x2ff   : > { %13269 = vpow2.f32 %v1932_v48 }
 0x301   : > { %v14309_v24 = vpop.eup %13267 }
 0x302   : > { %v1887_v14 = vpop.xlane.xlu1 %1886  ;;  %v1969_v20 = vsel %vm1845_vm3, %v14309_v24, 0.0 }
 0x303   : > { %v1907_v63 = vsub.f32 %v14212_v47, %v1887_v14  ;;  %1970 = vadd.xlane.f32.xlu1 %v1969_v20 }
 0x305   : > { %v1936_v25 = vmul.f32 1.442695, %v1907_v63 }
 0x307   : > { %13271 = vpow2.f32 %v1936_v25  ;;  %v1860_v19 = vpop.xlane.xlu0 %1859 }
 0x308   : > { %v1898_v29 = vsub.f32 %v14217_v17, %v1860_v19 }
 0x309   : > { %v14317_v55 = vpop.eup %13269 }
 0x30a   : > { %v1918_v44 = vmul.f32 1.442695, %v1898_v29  ;;  %v1975_v36 = vsel %vm1845_vm3, %v14317_v55, 0.0 }
 0x30b   : > { %v1866_v28 = vpop.xlane.xlu0 %1865  ;;  %1976 = vadd.xlane.f32.xlu1 %v1975_v36 }
 0x30c   : > { %13273 = vpow2.f32 %v1918_v44  ;;  %v1900_v40 = vsub.f32 %v14222_v22, %v1866_v28 }
 0x30e   : > { %v1922_v48 = vmul.f32 1.442695, %v1900_v40 }
 0x30f   : > { %v1872_v13 = vpop.xlane.xlu0 %1871 }
 0x310   : > { %13275 = vpow2.f32 %v1922_v48  ;;  %v1902_v47 = vsub.f32 %v14227_v15, %v1872_v13 }
 0x311   : > { %v14323_v14 = vpop.eup %13271 }
 0x312   : > { %v1926_v20 = vmul.f32 1.442695, %v1902_v47  ;;  %v1981_v17 = vsel %vm1845_vm3, %v14323_v14, 0.0 }
 0x313   : > { %1982 = vadd.xlane.f32.xlu1 %v1981_v17  ;;  %v1878_v63 = vpop.xlane.xlu0 %1877 }
 0x314   : > { %13277 = vpow2.f32 %v1926_v20  ;;  %v1904_v25 = vsub.f32 %v14232_v23, %v1878_v63 }
 0x316   : > { %v14328_v19 = vpop.eup %13273  ;;  %v1930_v29 = vmul.f32 1.442695, %v1904_v25 }
 0x317   : > { %v1884_v22 = vpop.xlane.xlu0 %1883  ;;  %v1954_v44 = vsel %vm1845_vm3, %v14328_v19, 0.0 }
 0x318   : > { %13279 = vpow2.f32 %v1930_v29  ;;  %v1906_v15 = vsub.f32 %v14237_v18, %v1884_v22  ;;  %1955 = vadd.xlane.f32.xlu0 %v1954_v44  ;;  %v14356_v22 = vpop.permute.xlu1 %3598 }
 0x31a   : > { %v14333_v13 = vpop.eup %13275  ;;  %v1934_v36 = vmul.f32 1.442695, %v1906_v15 }
 0x31b   : > { %v1890_v28 = vpop.xlane.xlu0 %1889  ;;  %v1960_v40 = vsel %vm1845_vm3, %v14333_v13, 0.0 }
 0x31c   : > { %13281 = vpow2.f32 %v1934_v36  ;;  %v1908_v23 = vsub.f32 %v14242_v12, %v1890_v28  ;;  %1961 = vadd.xlane.f32.xlu0 %v1960_v40  ;;  %v14358_v44 = vpop.permute.xlu1 %3596 }
 0x31e   : > { %v14338_v48 = vpop.eup %13277  ;;  %v1938_v47 = vmul.f32 1.442695, %v1908_v23 }
 0x31f   : > { %v1966_v20 = vsel %vm1845_vm3, %v14338_v48, 0.0 }
 0x320   : > { %13283 = vpow2.f32 %v1938_v47  ;;  %1967 = vadd.xlane.f32.xlu0 %v1966_v20 }
 0x322   : > { %v14342_v18 = vpop.eup %13279 }
 0x323   : > { %v1972_v17 = vsel %vm1845_vm3, %v14342_v18, 0.0 }
 0x324   : > { %3752 = vrot.lane.b32.xlu1 %v14040_v46, %s13678_s18  ;;  %1973 = vadd.xlane.f32.xlu0 %v1972_v17 }
 0x326   : > { %v14348_v63 = vpop.eup %13281 }
 0x327   : > { %v1978_v12 = vsel %vm1845_vm3, %v14348_v63, 0.0 }
 0x328   : > { %1979 = vadd.xlane.f32.xlu0 %v1978_v12 }
 0x32a   : > { %v14352_v25 = vpop.eup %13283 }
 0x32b   : > { %v1984_v29 = vsel %vm1845_vm3, %v14352_v25, 0.0 }
 0x32c   : > { %1985 = vadd.xlane.f32.xlu0 %v1984_v29 }
 0x33b   : > { %v1893_v15 = vpop.xlane.xlu1 %1892 }
 0x33c   : > { %v1909_v36 = vsub.f32 %v14255_v51, %v1893_v15  ;;  %v14379_v51 = vpop.permute.xlu0 %3520 }
 0x33e   : > { %v1940_v28 = vmul.f32 1.442695, %v1909_v36 }
 0x33f   : > { %v14401_v17 = vpop.permute.xlu1 %3754 }
 0x340   : > { %13285 = vpow2.f32 %v1940_v28  ;;  %v14387_v47 = vpop.permute.xlu0 %3518 }
 0x342   : > { %3674 = vrot.lane.b32.xlu0 %v14025_v42, %s13678_s18 }
 0x344   : > { %v14395_v20 = vpop.permute.xlu0 %3676 }
 0x346   : > { %3832 = vrot.lane.b32.xlu0 %v14061_v52, %s13678_s18 }
 0x34a   : > { %v14365_v40 = vpop.eup %13285  ;;  %3830 = vrot.lane.b32.xlu0 %v14055_v50, %s13678_s18 }
 0x34b   : > { %v1987_v23 = vsel %vm1845_vm3, %v14365_v40, 0.0 }
 0x34c   : > { %1988 = vadd.xlane.f32.xlu1 %v1987_v23 }
 0x34e   : > { %3988 = vrot.lane.b32.xlu0 %v14091_v60, %s13678_s18 }
 0x352   : > { %3986 = vrot.lane.b32.xlu0 %v14085_v58, %s13678_s18 }
 0x356   : > { %4144 = vrot.lane.b32.xlu0 %v14119_v4, %s13678_s18 }
 0x35a   : > { %4142 = vrot.lane.b32.xlu0 %v14115_v3, %s13678_s18 }
 0x35d   : > { %3910 = vrot.lane.b32.xlu1 %v14074_v56, %s13678_s18 }
 0x35e   : > { %4300 = vrot.lane.b32.xlu0 %v14141_v8, %s13678_s18 }
 0x361   : > { %3908 = vrot.lane.b32.xlu1 %v14070_v54, %s13678_s18 }
 0x362   : > { %4298 = vrot.lane.b32.xlu0 %v14137_v7, %s13678_s18 }
 0x365   : > { %4066 = vrot.lane.b32.xlu1 %v14104_v1, %s13678_s18 }
 0x366   : > { %4663 = vrot.lane.b32.xlu0 %v14001_v37, %s13678_s18 }
 0x369   : > { %4064 = vrot.lane.b32.xlu1 %v14100_v62, %s13678_s18 }
 0x36a   : > { %4817 = vrot.lane.b32.xlu0 %v14018_v41, %s13678_s18 }
 0x36c   : > { %v1944_v12 = vpop.xlane.xlu0 %1943 }
 0x36d   : > { %13287 = vrcp.f32 %v1944_v12  ;;  %4222 = vrot.lane.b32.xlu1 %v14128_v6, %s13678_s18 }
 0x36e   : > { %4971 = vrot.lane.b32.xlu0 %v14033_v45, %s13678_s18 }
 0x370   : > { %v1947_v29 = vpop.xlane.xlu1 %1946 }
 0x371   : > { %13289 = vrcp.f32 %v1947_v29  ;;  %4220 = vrot.lane.b32.xlu1 %v14126_v5, %s13678_s18  ;;  %v16284_v29 = vmov 0.0  }
 0x372   : > { %5279 = vrot.lane.b32.xlu0 %v14063_v53, %s13678_s18 }
 0x374   : > { %v1950_v15 = vpop.xlane.xlu0 %1949 }
 0x375   : > { %13291 = vrcp.f32 %v1950_v15  ;;  %4378 = vrot.lane.b32.xlu1 %v14152_v10, %s13678_s18 }
 0x376   : > { %5433 = vrot.lane.b32.xlu0 %v14078_v57, %s13678_s18 }
 0x377   : > { %v13288_v36 = vpop.eup %13287 }
 0x378   : > { %v1953_v28 = vpop.xlane.xlu1 %1952  ;;  %v2006_v23 = vmul.f32 %v13288_v36, %v14281_v30 }
 0x379   : > { %13293 = vrcp.f32 %v1953_v28  ;;  %4376 = vrot.lane.b32.xlu1 %v14148_v9, %s13678_s18 }
 0x37a   : > { %5587 = vrot.lane.b32.xlu0 %v14093_v61, %s13678_s18  ;;  %12451 = vmatmul.mubr.msk.f32.vlgmr.msra.gmra.mrb[40].mxu0 %vm1845_vm3, %v2006_v23 }
 0x37b   : > { %v13290_v12 = vpop.eup %13289  ;;  %12459 = vmatpush3.msra.mxu0 %v14018_v41  ;;  %12460 = vmatprep.mubr.msk.f32.mxu0 %vm13677_vm0, %v16284_v29 }
 0x37c   : > { %v2007_v15 = vmul.f32 %v13290_v12, %v14285_v32  ;;  %12468 = vmatprep.subr.mxu0 %v16284_v29 }
 0x37d   : > { %4740 = vrot.lane.b32.xlu1 %v13995_v35, %s13678_s18 }
 0x37e   : > { %12456 = vmatmul.mubr.msk.f32.vlgmr.msra.gmra.mrb[40].mxu1 %vm1845_vm3, %v2007_v15  ;;  %5741 = vrot.lane.b32.xlu0 %v14108_v2, %s13678_s18 }
 0x37f   : > { %v13292_v30 = vpop.eup %13291  ;;  %12464 = vmatpush3.msra.mxu1 %v14012_v39  ;;  %12465 = vmatprep.mubr.msk.f32.mxu1 %vm13677_vm0, %v16284_v29 }
 0x380   : > { %v1959_v36 = vpop.xlane.xlu1 %1958  ;;  %v2008_v28 = vmul.f32 %v13292_v30, %v14290_v38  ;;  %12473 = vmatprep.subr.mxu1 %v16284_v29  ;;  %v16286_v30 = vld [vmem:[#allocation29_spill] sm:$0xff] }
 0x381   : > { %13295 = vrcp.f32 %v1959_v36  ;;  %4894 = vrot.lane.b32.xlu1 %v14012_v39, %s13678_s18  ;;  %v16287_v36 = vld [vmem:[#allocation17_spill] sm:$0xff] }
 0x382   : > { %5977 = vrot.lane.b32.xlu0 %v13945_v27, %s13680_s20  ;;  %12461 = vmatmul.mubr.msk.f32.vlgmr.msra.gmra.mrb[42].mxu0 %vm1845_vm3, %v2008_v28 }
 0x383   : > { %v13294_v32 = vpop.eup %13293  ;;  %12469 = vmatpush3.msra.mxu0 %v14033_v45  ;;  %12470 = vmatprep.mubr.msk.f32.mxu0 %vm13677_vm0, %v16284_v29 }
 0x384   : > { %v2009_v38 = vmul.f32 %v13294_v32, %v14294_v16  ;;  %12478 = vmatprep.subr.mxu0 %v16284_v29  ;;  %v16285_v16 = vld [vmem:[#allocation18_spill] sm:$0xff]  ;;  %v16288_v32 = vld [vmem:[#allocation31_spill] sm:$0xff] }
 0x385   : > { %5048 = vrot.lane.b32.xlu1 %v14027_v43, %s13678_s18 }
 0x386   : > { %12466 = vmatmul.mubr.msk.f32.vlgmr.msra.gmra.mrb[42].mxu1 %vm1845_vm3, %v2009_v38  ;;  %5975 = vrot.lane.b32.xlu0 %v13941_v26, %s13680_s20  ;;  %v16295_v26 = vld [vmem:[#allocation19_spill] sm:$0xff] }
 0x387   : > { %12474 = vmatpush3.msra.mxu1 %v14027_v43  ;;  %12475 = vmatprep.mubr.msk.f32.mxu1 %vm13677_vm0, %v16284_v29 }
 0x388   : > { %v1965_v23 = vpop.xlane.xlu1 %1964  ;;  %12483 = vmatprep.subr.mxu1 %v16284_v29 }
 0x389   : > { %13297 = vrcp.f32 %v1965_v23  ;;  %5125 = vrot.lane.b32.xlu1 %v14048_v49, %s13678_s18  ;;  %v16289_v23 = vld [vmem:[#allocation33_spill] sm:$0xff] }
 0x38a   : > { %6133 = vrot.lane.b32.xlu0 %v16285_v16, %s13680_s20 }
 0x38b   : > { %v13296_v12 = vpop.eup %13295 }
 0x38c   : > { %v2011_v15 = vmul.f32 %v13296_v12, %v14299_v0 }
 0x38d   : > { %5202 = vrot.lane.b32.xlu1 %v16286_v30, %s13678_s18 }
 0x38e   : > { %12476 = vmatmul.mubr.msk.f32.vlgmr.msra.gmra.mrb[44].mxu1 %vm1845_vm3, %v2011_v15  ;;  %6131 = vrot.lane.b32.xlu0 %v16287_v36, %s13680_s20  ;;  %v16290_v15 = vld [vmem:[#allocation35_spill] sm:$0xff] }
 0x38f   : > { %12484 = vmatpush3.msra.mxu1 %v16286_v30  ;;  %12485 = vmatprep.mubr.msk.f32.mxu1 %vm13677_vm0, %v16284_v29 }
 0x390   : > { %v1971_v28 = vpop.xlane.xlu1 %1970  ;;  %12493 = vmatprep.subr.mxu1 %v16284_v29 }
 0x391   : > { %13299 = vrcp.f32 %v1971_v28  ;;  %5356 = vrot.lane.b32.xlu1 %v16288_v32, %s13678_s18 }
 0x393   : > { %v13298_v0 = vpop.eup %13297 }
 0x394   : > { %v2013_v38 = vmul.f32 %v13298_v0, %v14304_v34  ;;  %v16291_v0 = vld [vmem:[#allocation37_spill] sm:$0xff] }
 0x395   : > { %5510 = vrot.lane.b32.xlu1 %v16289_v23, %s13678_s18 }
 0x396   : > { %12486 = vmatmul.mubr.msk.f32.vlgmr.msra.gmra.mrb[46].mxu1 %vm1845_vm3, %v2013_v38 }
 0x397   : > { %12494 = vmatpush3.msra.mxu1 %v16288_v32  ;;  %12495 = vmatprep.mubr.msk.f32.mxu1 %vm13677_vm0, %v16284_v29 }
 0x398   : > { %v1977_v12 = vpop.xlane.xlu1 %1976  ;;  %12503 = vmatprep.subr.mxu1 %v16284_v29 }
 0x399   : > { %13301 = vrcp.f32 %v1977_v12  ;;  %5664 = vrot.lane.b32.xlu1 %v16290_v15, %s13678_s18  ;;  %v16292_v12 = vld [vmem:[#allocation16_spill] sm:$0xff] }
 0x39b   : > { %v13300_v28 = vpop.eup %13299 }
 0x39c   : > { %v2015_v34 = vmul.f32 %v13300_v28, %v14309_v24  ;;  %v16293_v28 = vld [vmem:[#allocation15_spill] sm:$0xff] }
 0x39d   : > { %5818 = vrot.lane.b32.xlu1 %v16291_v0, %s13678_s18 }
 0x39e   : > { %12496 = vmatmul.mubr.msk.f32.vlgmr.msra.gmra.mrb[48].mxu1 %vm1845_vm3, %v2015_v34  ;;  %v16294_v34 = vld [vmem:[#allocation20_spill] sm:$0xff] }
 0x39f   : > { %12504 = vmatpush3.msra.mxu1 %v16289_v23  ;;  %12505 = vmatprep.mubr.msk.f32.mxu1 %vm13677_vm0, %v16284_v29 }
 0x3a0   : > { %v1983_v38 = vpop.xlane.xlu1 %1982  ;;  %12513 = vmatprep.subr.mxu1 %v16284_v29 }
 0x3a1   : > { %13303 = vrcp.f32 %v1983_v38  ;;  %6055 = vrot.lane.b32.xlu1 %v16292_v12, %s13680_s20 }
 0x3a3   : > { %v13302_v36 = vpop.eup %13301 }
 0x3a4   : > { %v2017_v24 = vmul.f32 %v13302_v36, %v14317_v55 }
 0x3a5   : > { %6053 = vrot.lane.b32.xlu1 %v16293_v28, %s13680_s20  ;;  %v1956_v16 = vpop.xlane.xlu0 %1955 }
 0x3a6   : > { %13305 = vrcp.f32 %v1956_v16  ;;  %12506 = vmatmul.mubr.msk.f32.vlgmr.msra.gmra.mrb[50].mxu1 %vm1845_vm3, %v2017_v24 }
 0x3a7   : > { %12514 = vmatpush3.msra.mxu1 %v16290_v15  ;;  %12515 = vmatprep.mubr.msk.f32.mxu1 %vm13677_vm0, %v16284_v29 }
 0x3a8   : > { %12523 = vmatprep.subr.mxu1 %v16284_v29 }
 0x3a9   : > { %6211 = vrot.lane.b32.xlu1 %v16294_v34, %s13680_s20  ;;  %v1962_v38 = vpop.xlane.xlu0 %1961 }
 0x3aa   : > { %13307 = vrcp.f32 %v1962_v38 }
 0x3ab   : > { %v13304_v55 = vpop.eup %13303 }
 0x3ac   : > { %v2019_v36 = vmul.f32 %v13304_v55, %v14323_v14 }
 0x3ad   : > { %6209 = vrot.lane.b32.xlu1 %v16295_v26, %s13680_s20  ;;  %v1968_v16 = vpop.xlane.xlu0 %1967 }
 0x3ae   : > { %13309 = vrcp.f32 %v1968_v16  ;;  %12516 = vmatmul.mubr.msk.f32.vlgmr.msra.gmra.mrb[52].mxu1 %vm1845_vm3, %v2019_v36 }
 0x3af   : > { %12524 = vmatpush3.msra.mxu1 %v16291_v0  ;;  %12525 = vmatprep.mubr.msk.f32.mxu1 %vm13677_vm0, %v16284_v29 }
 0x3b0   : > { %v13306_v24 = vpop.eup %13305  ;;  %12533 = vmatprep.subr.mxu1 %v16284_v29 }
 0x3b1   : > { %v1974_v27 = vpop.xlane.xlu0 %1973  ;;  %v2010_v38 = vmul.f32 %v13306_v24, %v14328_v19 }
 0x3b2   : > { %13311 = vrcp.f32 %v1974_v27 }
 0x3b3   : > { %12471 = vmatmul.mubr.msk.f32.vlgmr.msra.gmra.mrb[44].mxu0 %vm1845_vm3, %v2010_v38 }
 0x3b4   : > { %v13308_v14 = vpop.eup %13307  ;;  %12479 = vmatpush3.msra.mxu0 %v14048_v49  ;;  %12480 = vmatprep.mubr.msk.f32.mxu0 %vm13677_vm0, %v16284_v29 }
 0x3b5   : > { %v1980_v55 = vpop.xlane.xlu0 %1979  ;;  %12488 = vmatprep.subr.mxu0 %v16284_v29  ;;  %v2012_v36 = vmul.f32 %v13308_v14, %v14333_v13 }
 0x3b6   : > { %13313 = vrcp.f32 %v1980_v55 }
 0x3b7   : > { %12481 = vmatmul.mubr.msk.f32.vlgmr.msra.gmra.mrb[46].mxu0 %vm1845_vm3, %v2012_v36 }
 0x3b8   : > { %v13310_v16 = vpop.eup %13309  ;;  %12489 = vmatpush3.msra.mxu0 %v14063_v53  ;;  %12490 = vmatprep.mubr.msk.f32.mxu0 %vm13677_vm0, %v16284_v29 }
 0x3b9   : > { %v1986_v27 = vpop.xlane.xlu0 %1985  ;;  %12498 = vmatprep.subr.mxu0 %v16284_v29  ;;  %v2014_v19 = vmul.f32 %v13310_v16, %v14338_v48 }
 0x3ba   : > { %13315 = vrcp.f32 %v1986_v27 }
 0x3bb   : > { %12491 = vmatmul.mubr.msk.f32.vlgmr.msra.gmra.mrb[48].mxu0 %vm1845_vm3, %v2014_v19 }
 0x3bc   : > { %v13312_v24 = vpop.eup %13311  ;;  %12499 = vmatpush3.msra.mxu0 %v14078_v57  ;;  %12500 = vmatprep.mubr.msk.f32.mxu0 %vm13677_vm0, %v16284_v29 }
 0x3bd   : > { %v3675_v13 = vpop.permute.xlu0 %3674  ;;  %12508 = vmatprep.subr.mxu0 %v16284_v29  ;;  %v2016_v38 = vmul.f32 %v13312_v24, %v14342_v18 }
 0x3bf   : > { %12501 = vmatmul.mubr.msk.f32.vlgmr.msra.gmra.mrb[50].mxu0 %vm1845_vm3, %v2016_v38 }
 0x3c0   : > { %v13314_v14 = vpop.eup %13313  ;;  %12509 = vmatpush3.msra.mxu0 %v14093_v61  ;;  %12510 = vmatprep.mubr.msk.f32.mxu0 %vm13677_vm0, %v16284_v29 }
 0x3c1   : > { %v3833_v48 = vpop.permute.xlu0 %3832  ;;  %12518 = vmatprep.subr.mxu0 %v16284_v29  ;;  %v2018_v55 = vmul.f32 %v13314_v14, %v14348_v63 }
 0x3c3   : > { %12511 = vmatmul.mubr.msk.f32.vlgmr.msra.gmra.mrb[52].mxu0 %vm1845_vm3, %v2018_v55  ;;  %v16298_v55 = vld [vmem:[#allocation43_spill] sm:$0xff] }
 0x3c4   : > { %v13316_v36 = vpop.eup %13315  ;;  %12519 = vmatpush3.msra.mxu0 %v14108_v2  ;;  %12520 = vmatprep.mubr.msk.f32.mxu0 %vm13677_vm0, %v16284_v29 }
 0x3c5   : > { %v3831_v18 = vpop.permute.xlu0 %3830  ;;  %v2020_v16 = vmul.f32 %v13316_v36, %v14352_v25  ;;  %12528 = vmatprep.subr.mxu0 %v16284_v29 }
 0x3c7   : > { %12521 = vmatmul.mubr.msk.f32.vlgmr.msra.gmra.mrb[54].mxu0 %vm1845_vm3, %v2020_v16 }
 0x3c8   : > { %12530 = vmatprep.mubr.msk.f32.mxu0 %vm13677_vm0, %v16284_v29 }
 0x3c9   : > { %v3989_v27 = vpop.permute.xlu0 %3988 }
 0x3cb   : > { %12529 = vmatpush3.xpose.msk.msra.mxu0 %vm596_vm1, %v14267_v31 }
 0x3cc   : > { %12538 = vmatprep.subr.mxu0 %v16284_v29 }
 0x3cd   : > { %v3987_v63 = vpop.permute.xlu0 %3986 }
 0x3ce   : > { %12531 = vmatmul.mubr.msk.f32.vlgmr.msra.gmra.mrb[56].mxu0 %vm596_vm1, %v14261_v11  ;;  %v3753_v11 = vpop.permute.xlu1 %3752 }
 0x3cf   : > { %12539 = vmatpush3.xpose.msk.msra.mxu0 %vm596_vm1, %v14271_v33  ;;  %12540 = vmatprep.mubr.msk.f32.mxu0 %vm13677_vm0, %v16284_v29 }
 0x3d0   : > { %12548 = vmatprep.subr.mxu0 %v16284_v29 }
 0x3d1   : > { %v4145_v25 = vpop.permute.xlu0 %4144 }
 0x3d2   : > { %12541 = vmatmul.mubr.msk.f32.vlgmr.msra.gmra.mrb[58].mxu0 %vm596_vm1, %v14313_v21 }
 0x3d3   : > { %12549 = vmatpush3.xpose.msk.msra.mxu0 %vm596_vm1, %v14379_v51  ;;  %12550 = vmatprep.mubr.msk.f32.mxu0 %vm13677_vm0, %v16284_v29 }
 0x3d4   : > { %12558 = vmatprep.subr.mxu0 %v16284_v29 }
 0x3d5   : > { %v4143_v31 = vpop.permute.xlu0 %4142 }
 0x3d6   : > { %12551 = vmatmul.mubr.msk.f32.vlgmr.msra.gmra.mrb[60].mxu0 %vm596_vm1, %v14387_v47 }
 0x3d7   : > { %12559 = vmatpush3.xpose.msk.msra.mxu0 %vm596_vm1, %v14395_v20  ;;  %12560 = vmatprep.mubr.msk.f32.mxu0 %vm13677_vm0, %v16284_v29 }
 0x3d8   : > { %12568 = vmatprep.subr.mxu0 %v16284_v29 }
 0x3d9   : > { %v1989_v33 = vpop.xlane.xlu1 %1988  ;;  %v4301_v51 = vpop.permute.xlu0 %4300 }
 0x3da   : > { %13317 = vrcp.f32 %v1989_v33  ;;  %12561 = vmatmul.mubr.msk.f32.vlgmr.msra.gmra.mrb[62].mxu0 %vm596_vm1, %v3675_v13 }
 0x3db   : > { %12569 = vmatpush3.xpose.msk.msra.mxu0 %vm596_vm1, %v3833_v48  ;;  %12570 = vmatprep.mubr.msk.f32.mxu0 %vm13677_vm0, %v16284_v29  ;;  %v16297_v48 = vld [vmem:[#allocation42_spill] sm:$0xff] }
 0x3dc   : > { %12578 = vmatprep.subr.mxu0 %v16284_v29 }
 0x3dd   : > { %v3911_v21 = vpop.permute.xlu1 %3910  ;;  %v4299_v19 = vpop.permute.xlu0 %4298 }
 0x3de   : > { %12571 = vmatmul.mubr.msk.f32.vlgmr.msra.gmra.mrb[64].mxu0 %vm596_vm1, %v3831_v18 }
 0x3df   : > { %12579 = vmatpush3.xpose.msk.msra.mxu0 %vm596_vm1, %v3989_v27  ;;  %12580 = vmatprep.mubr.msk.f32.mxu0 %vm13677_vm0, %v16284_v29 }
 0x3e0   : > { %12588 = vmatprep.subr.mxu0 %v16284_v29 }
 0x3e1   : > { %v3909_v47 = vpop.permute.xlu1 %3908  ;;  %v4664_v14 = vpop.permute.xlu0 %4663 }
 0x3e2   : > { %12581 = vmatmul.mubr.msk.f32.vlgmr.msra.gmra.mrb[66].mxu0 %vm596_vm1, %v3987_v63 }
 0x3e3   : > { %12589 = vmatpush3.xpose.msk.msra.mxu0 %vm596_vm1, %v4145_v25  ;;  %12590 = vmatprep.mubr.msk.f32.mxu0 %vm13677_vm0, %v16284_v29 }
 0x3e4   : > { %v13318_v20 = vpop.eup %13317  ;;  %12598 = vmatprep.subr.mxu0 %v16284_v29 }
 0x3e5   : > { %v4067_v24 = vpop.permute.xlu1 %4066  ;;  %v2021_v13 = vmul.f32 %v13318_v20, %v14365_v40  ;;  %v16296_v40 = vld [vmem:[#allocation41_spill] sm:$0xff] }
 0x3e6   : > { %12591 = vmatmul.mubr.msk.f32.vlgmr.msra.gmra.mrb[68].mxu0 %vm596_vm1, %v4143_v31 }
 0x3e7   : > { %12599 = vmatpush3.xpose.msk.msra.mxu0 %vm596_vm1, %v4301_v51  ;;  %12526 = vmatmul.mubr.msk.f32.vlgmr.msra.gmra.mrb[54].mxu1 %vm1845_vm3, %v2021_v13 }
 0x3e8   : > { %12534 = vmatpush3.xpose.msk.msra.mxu1 %vm596_vm1, %v14269_v59  ;;  %12600 = vmatprep.mubr.msk.f32.mxu0 %vm13677_vm0, %v16284_v29 }
 0x3e9   : > { %v4065_v38 = vpop.permute.xlu1 %4064  ;;  %12608 = vmatprep.subr.mxu0 %v16284_v29  ;;  %12535 = vmatprep.mubr.msk.f32.mxu1 %vm13677_vm0, %v16284_v29 }
 0x3ea   : > { %12601 = vmatmul.mubr.msk.f32.vlgmr.msra.gmra.mrb[70].mxu0 %vm596_vm1, %v4299_v19  ;;  %12543 = vmatprep.subr.mxu1 %v16284_v29 }
 0x3eb   : > { %12609 = vmatpush3.msra.mxu0 %v4664_v14  ;;  %12536 = vmatmul.mubr.msk.f32.vlgmr.msra.gmra.mrb[56].mxu1 %vm596_vm1, %v16296_v40 }
 0x3ec   : > { %12544 = vmatpush3.xpose.msk.msra.mxu1 %vm596_vm1, %v16297_v48  ;;  %12545 = vmatprep.mubr.msk.f32.mxu1 %vm13677_vm0, %v16284_v29 }
 0x3ed   : > { %12553 = vmatprep.subr.mxu1 %v16284_v29  ;;  %12610 = vmatprep.mubr.msk.f32.mxu0 %vm13677_vm0, %v16284_v29  ;;  %v4223_v59 = vpop.permute.xlu1 %4222 }
 0x3ee   : > { %12618 = vmatprep.subr.mxu0 %v16284_v29 }
 0x3ef   : > { %12546 = vmatmul.mubr.msk.f32.vlgmr.msra.gmra.mrb[58].mxu1 %vm596_vm1, %v16298_v55 }
 0x3f0   : > { %12554 = vmatpush3.xpose.msk.msra.mxu1 %vm596_vm1, %v14356_v22  ;;  %12555 = vmatprep.mubr.msk.f32.mxu1 %vm13677_vm0, %v16284_v29 }
 0x3f1   : > { %12563 = vmatprep.subr.mxu1 %v16284_v29  ;;  %v4221_v36 = vpop.permute.xlu1 %4220 }
 0x3f3   : > { %12556 = vmatmul.mubr.msk.f32.vlgmr.msra.gmra.mrb[60].mxu1 %vm596_vm1, %v14358_v44 }
 0x3f4   : > { %12564 = vmatpush3.xpose.msk.msra.mxu1 %vm596_vm1, %v14401_v17  ;;  %12565 = vmatprep.mubr.msk.f32.mxu1 %vm13677_vm0, %v16284_v29 }
 0x3f5   : > { %12573 = vmatprep.subr.mxu1 %v16284_v29  ;;  %v4379_v22 = vpop.permute.xlu1 %4378 }
 0x3f7   : > { %12566 = vmatmul.mubr.msk.f32.vlgmr.msra.gmra.mrb[62].mxu1 %vm596_vm1, %v3753_v11 }
 0x3f8   : > { %12574 = vmatpush3.xpose.msk.msra.mxu1 %vm596_vm1, %v3911_v21  ;;  %12575 = vmatprep.mubr.msk.f32.mxu1 %vm13677_vm0, %v16284_v29 }
 0x3f9   : > { %12583 = vmatprep.subr.mxu1 %v16284_v29  ;;  %v4377_v44 = vpop.permute.xlu1 %4376 }
 0x3fb   : > { %12576 = vmatmul.mubr.msk.f32.vlgmr.msra.gmra.mrb[64].mxu1 %vm596_vm1, %v3909_v47 }
 0x3fc   : > { %12584 = vmatpush3.xpose.msk.msra.mxu1 %vm596_vm1, %v4067_v24  ;;  %12585 = vmatprep.mubr.msk.f32.mxu1 %vm13677_vm0, %v16284_v29 }
 0x3fd   : > { %12593 = vmatprep.subr.mxu1 %v16284_v29  ;;  %v4741_v17 = vpop.permute.xlu1 %4740 }
 0x3ff   : > { %12586 = vmatmul.mubr.msk.f32.vlgmr.msra.gmra.mrb[66].mxu1 %vm596_vm1, %v4065_v38 }
 0x400   : > { %12594 = vmatpush3.xpose.msk.msra.mxu1 %vm596_vm1, %v4223_v59  ;;  %12595 = vmatprep.mubr.msk.f32.mxu1 %vm13677_vm0, %v16284_v29 }
 0x401   : > { %12603 = vmatprep.subr.mxu1 %v16284_v29 }
 0x403   : > { %12596 = vmatmul.mubr.msk.f32.vlgmr.msra.gmra.mrb[68].mxu1 %vm596_vm1, %v4221_v36 }
 0x404   : > { %12604 = vmatpush3.xpose.msk.msra.mxu1 %vm596_vm1, %v4379_v22  ;;  %12605 = vmatprep.mubr.msk.f32.mxu1 %vm13677_vm0, %v16284_v29 }
 0x405   : > { %12613 = vmatprep.subr.mxu1 %v16284_v29 }
 0x407   : > { %12606 = vmatmul.mubr.msk.f32.vlgmr.msra.gmra.mrb[70].mxu1 %vm596_vm1, %v4377_v44 }
 0x408   : > { %12614 = vmatpush3.msra.mxu1 %v4741_v17  ;;  %12615 = vmatprep.mubr.msk.f32.mxu1 %vm13677_vm0, %v16284_v29 }
 0x409   : > { %12623 = vmatprep.subr.mxu1 %v16284_v29 }
 0x44d   : > { %v2091_v18 = vpop.f32.mrb[40].mxu0 }
 0x44e   : > { %3190 = vst.msk [vmem:[#allocation2] sm:$0xff] %vm596_vm1, %v2091_v18  ;;  %v12452_v16 = vpop.f32.mrb[41].mxu0 }
 0x451   : > { %v2164_v27 = vpop.f32.mrb[40].mxu1 }
 0x452   : > { %3191 = vst.msk [vmem:[#allocation2 + $0x8] sm:$0xff] %vm596_vm1, %v2164_v27  ;;  %v12457_v63 = vpop.f32.mrb[41].mxu1 }
 0x455   : > { %v2237_v25 = vpop.f32.mrb[42].mxu0 }
 0x456   : > { %3192 = vst.msk [vmem:[#allocation2 + $0x10] sm:$0xff] %vm596_vm1, %v2237_v25  ;;  %v12462_v11 = vpop.f32.mrb[43].mxu0 }
 0x459   : > { %v2310_v31 = vpop.f32.mrb[42].mxu1 }
 0x45a   : > { %3193 = vst.msk [vmem:[#allocation2 + $0x18] sm:$0xff] %vm596_vm1, %v2310_v31  ;;  %v12467_v33 = vpop.f32.mrb[43].mxu1 }
 0x461   : > { %v2456_v21 = vpop.f32.mrb[44].mxu1 }
 0x462   : > { %3195 = vst.msk [vmem:[#allocation2 + $0x28] sm:$0xff] %vm596_vm1, %v2456_v21  ;;  %v12477_v51 = vpop.f32.mrb[45].mxu1  ;;  %v16299_v21 = vld [vmem:[#allocation40_spill] sm:$0xff] }
 0x469   : > { %v2602_v47 = vpop.f32.mrb[46].mxu1 }
 0x46a   : > { %3197 = vst.msk [vmem:[#allocation2 + $0x38] sm:$0xff] %vm596_vm1, %v2602_v47  ;;  %v12487_v20 = vpop.f32.mrb[47].mxu1 }
 0x471   : > { %v2748_v19 = vpop.f32.mrb[48].mxu1 }
 0x472   : > { %3199 = vst.msk [vmem:[#allocation2 + $0x48] sm:$0xff] %vm596_vm1, %v2748_v19  ;;  %v12497_v24 = vpop.f32.mrb[49].mxu1 }
 0x479   : > { %v2894_v13 = vpop.f32.mrb[50].mxu1 }
 0x47a   : > { %3201 = vst.msk [vmem:[#allocation2 + $0x58] sm:$0xff] %vm596_vm1, %v2894_v13  ;;  %v12507_v38 = vpop.f32.mrb[51].mxu1 }
 0x481   : > { %v3040_v14 = vpop.f32.mrb[52].mxu1 }
 0x482   : > { %3203 = vst.msk [vmem:[#allocation2 + $0x68] sm:$0xff] %vm596_vm1, %v3040_v14  ;;  %v12517_v40 = vpop.f32.mrb[53].mxu1 }
 0x486   : > { %v2383_v48 = vpop.f32.mrb[44].mxu0 }
 0x487   : > { %3194 = vst.msk [vmem:[#allocation2 + $0x20] sm:$0xff] %vm596_vm1, %v2383_v48  ;;  %v12472_v59 = vpop.f32.mrb[45].mxu0 }
 0x48a   : > { %v2529_v55 = vpop.f32.mrb[46].mxu0 }
 0x48b   : > { %3196 = vst.msk [vmem:[#allocation2 + $0x30] sm:$0xff] %vm596_vm1, %v2529_v55  ;;  %v12482_v36 = vpop.f32.mrb[47].mxu0 }
 0x48e   : > { %v2675_v22 = vpop.f32.mrb[48].mxu0 }
 0x48f   : > { %3198 = vst.msk [vmem:[#allocation2 + $0x40] sm:$0xff] %vm596_vm1, %v2675_v22  ;;  %v12492_v44 = vpop.f32.mrb[49].mxu0 }
 0x492   : > { %v2821_v17 = vpop.f32.mrb[50].mxu0 }
 0x493   : > { %3200 = vst.msk [vmem:[#allocation2 + $0x50] sm:$0xff] %vm596_vm1, %v2821_v17  ;;  %v12502_v18 = vpop.f32.mrb[51].mxu0 }
 0x496   : > { %v2967_v16 = vpop.f32.mrb[52].mxu0 }
 0x497   : > { %3202 = vst.msk [vmem:[#allocation2 + $0x60] sm:$0xff] %vm596_vm1, %v2967_v16  ;;  %v12512_v27 = vpop.f32.mrb[53].mxu0 }
 0x49a   : > { %v3113_v63 = vpop.f32.mrb[54].mxu0 }
 0x49b   : > { %3204 = vst.msk [vmem:[#allocation2 + $0x70] sm:$0xff] %vm596_vm1, %v3113_v63  ;;  %v12522_v25 = vpop.f32.mrb[55].mxu0 }
 0x4a1   : > { %v3280_v11 = vpop.f32.mrb[56].mxu0 }
 0x4a2   : > { %v4454_v31 = vmul.f32 0.17677669, %v3280_v11  ;;  %v12532_v33 = vpop.f32.mrb[57].mxu0 }
 0x4a4   : > { %v14659_v51 = vadd.f32 %v4454_v31, %v16299_v21 }
 0x4a5   : > { %v3436_v47 = vpop.f32.mrb[58].mxu0 }
 0x4a6   : > { %v4456_v20 = vmul.f32 0.17677669, %v3436_v47  ;;  %v12542_v19 = vpop.f32.mrb[59].mxu0  ;;  %v4486_v24 = vsel %vm1845_vm3, %v14659_v51, -inf }
 0x4a7   : > { %4487 = vmax.xlane.f32.xlu0 %v4486_v24 }
 0x4a8   : > { %v14664_v13 = vadd.f32 %v4456_v20, %v16299_v21 }
 0x4a9   : > { %v3592_v38 = vpop.f32.mrb[60].mxu0 }
 0x4aa   : > { %v12552_v14 = vpop.f32.mrb[61].mxu0  ;;  %v4492_v40 = vsel %vm1845_vm3, %v14664_v13, -inf  ;;  %v4458_v19 = vmul.f32 0.17677669, %v3592_v38 }
 0x4ab   : > { %4493 = vmax.xlane.f32.xlu0 %v4492_v40 }
 0x4ad   : > { %v3748_v48 = vpop.f32.mrb[62].mxu0 }
 0x4ae   : > { %v12562_v59 = vpop.f32.mrb[63].mxu0 }
 0x4b1   : > { %v3904_v55 = vpop.f32.mrb[64].mxu0 }
 0x4b2   : > { %v12572_v36 = vpop.f32.mrb[65].mxu0 }
 0x4b5   : > { %v4060_v22 = vpop.f32.mrb[66].mxu0 }
 0x4b6   : > { %v12582_v44 = vpop.f32.mrb[67].mxu0 }
 0x4b7   : > { %v4460_v44 = vmul.f32 0.17677669, %v3748_v48 }
 0x4b9   : > { %v4216_v17 = vpop.f32.mrb[68].mxu0 }
 0x4ba   : > { %v12592_v18 = vpop.f32.mrb[69].mxu0  ;;  %v3186_v16 = vpop.f32.mrb[54].mxu1 }
 0x4bb   : > { %3205 = vst.msk [vmem:[#allocation2 + $0x78] sm:$0xff] %vm596_vm1, %v3186_v16  ;;  %v12527_v27 = vpop.f32.mrb[55].mxu1 }
 0x4bd   : > { %v4372_v63 = vpop.f32.mrb[70].mxu0 }
 0x4be   : > { %v12602_v25 = vpop.f32.mrb[71].mxu0  ;;  %v3358_v11 = vpop.f32.mrb[56].mxu1 }
 0x4bf   : > { %v4455_v31 = vmul.f32 0.17677669, %v3358_v11  ;;  %v12537_v33 = vpop.f32.mrb[57].mxu1  ;;  %v14680_v25 = vadd.f32 %v4458_v19, %v16299_v21  ;;  %v4462_v11 = vmul.f32 0.17677669, %v3904_v55 }
 0x4c1   : > { %v14670_v47 = vadd.f32 %v4455_v31, %v16299_v21  ;;  %v4498_v48 = vsel %vm1845_vm3, %v14680_v25, -inf  ;;  %v14696_v55 = vadd.f32 %v4462_v11, %v16299_v21 }
 0x4c2   : > { %v3514_v20 = vpop.f32.mrb[58].mxu1 }
 0x4c3   : > { %v4457_v24 = vmul.f32 0.17677669, %v3514_v20  ;;  %v12547_v14 = vpop.f32.mrb[59].mxu1  ;;  %v4489_v40 = vsel %vm1845_vm3, %v14670_v47, -inf }
 0x4c4   : > { %4490 = vmax.xlane.f32.xlu1 %v4489_v40  ;;  %v14690_v14 = vadd.f32 %v4460_v44, %v16299_v21  ;;  %v4464_v40 = vmul.f32 0.17677669, %v4060_v22  ;;  %v4510_v22 = vsel %vm1845_vm3, %v14696_v55, -inf }
 0x4c5   : > { %v14675_v59 = vadd.f32 %v4457_v24, %v16299_v21 }
 0x4c6   : > { %v3670_v36 = vpop.f32.mrb[60].mxu1  ;;  %v14708_v11 = vadd.f32 %v4464_v40, %v16299_v21  ;;  %v4468_v40 = vmul.f32 0.17677669, %v4372_v63 }
 0x4c7   : > { %v4459_v18 = vmul.f32 0.17677669, %v3670_v36  ;;  %v12557_v16 = vpop.f32.mrb[61].mxu1  ;;  %v4495_v27 = vsel %vm1845_vm3, %v14675_v59, -inf }
 0x4c8   : > { %4496 = vmax.xlane.f32.xlu0 %v4495_v27 }
 0x4c9   : > { %v14683_v38 = vadd.f32 %v4459_v18, %v16299_v21 }
 0x4ca   : > { %v3826_v31 = vpop.f32.mrb[62].mxu1 }
 0x4cb   : > { %v4461_v33 = vmul.f32 0.17677669, %v3826_v31  ;;  %v12567_v20 = vpop.f32.mrb[63].mxu1  ;;  %v4501_v24 = vsel %vm1845_vm3, %v14683_v38, -inf  ;;  %v4504_v31 = vsel %vm1845_vm3, %v14690_v14, -inf }
 0x4cc   : > { %4502 = vmax.xlane.f32.xlu1 %v4501_v24  ;;  %4499 = vmax.xlane.f32.xlu0 %v4498_v48  ;;  %v4466_v20 = vmul.f32 0.17677669, %v4216_v17 }
 0x4cd   : > { %v14693_v19 = vadd.f32 %v4461_v33, %v16299_v21 }
 0x4ce   : > { %v3982_v36 = vpop.f32.mrb[64].mxu1 }
 0x4cf   : > { %v4463_v18 = vmul.f32 0.17677669, %v3982_v36  ;;  %v12577_v16 = vpop.f32.mrb[65].mxu1  ;;  %v4507_v27 = vsel %vm1845_vm3, %v14693_v19, -inf }
 0x4d0   : > { %4508 = vmax.xlane.f32.xlu1 %v4507_v27  ;;  %4505 = vmax.xlane.f32.xlu0 %v4504_v31  ;;  %v4516_v27 = vsel %vm1845_vm3, %v14708_v11, -inf  ;;  %v14718_v31 = vadd.f32 %v4466_v20, %v16299_v21 }
 0x4d1   : > { %v14703_v44 = vadd.f32 %v4463_v18, %v16299_v21 }
 0x4d2   : > { %v4138_v33 = vpop.f32.mrb[66].mxu1  ;;  %v4522_v63 = vsel %vm1845_vm3, %v14718_v31, -inf }
 0x4d3   : > { %v4465_v24 = vmul.f32 0.17677669, %v4138_v33  ;;  %v12587_v48 = vpop.f32.mrb[67].mxu1  ;;  %v4513_v36 = vsel %vm1845_vm3, %v14703_v44, -inf }
 0x4d4   : > { %4514 = vmax.xlane.f32.xlu1 %v4513_v36  ;;  %4511 = vmax.xlane.f32.xlu0 %v4510_v22  ;;  %v14726_v48 = vadd.f32 %v4468_v40, %v16299_v21  ;;  %v16302_v40 = vld [vmem:[#allocation22_spill] sm:$0xff] }
 0x4d5   : > { %v14713_v16 = vadd.f32 %v4465_v24, %v16299_v21 }
 0x4d6   : > { %v4294_v18 = vpop.f32.mrb[68].mxu1 }
 0x4d7   : > { %v4467_v2 = vmul.f32 0.17677669, %v4294_v18  ;;  %v12597_v17 = vpop.f32.mrb[69].mxu1  ;;  %v4519_v33 = vsel %vm1845_vm3, %v14713_v16, -inf  ;;  %v4528_v18 = vsel %vm1845_vm3, %v14726_v48, -inf }
 0x4d8   : > { %4520 = vmax.xlane.f32.xlu1 %v4519_v33  ;;  %4517 = vmax.xlane.f32.xlu0 %v4516_v27  ;;  %v16301_v27 = vld [vmem:[#allocation24_spill] sm:$0xff]  ;;  %v14740_v17 = vpop.permute.xlu0 %4817  ;;  %v16303_v33 = vld [vmem:[#allocation21_spill] sm:$0xff] }
 0x4d9   : > { %v14723_v22 = vadd.f32 %v4467_v2, %v16299_v21  ;;  %v16300_v2 = vld [vmem:[#allocation25_spill] sm:$0xff] }
 0x4da   : > { %v4450_v24 = vpop.f32.mrb[70].mxu1 }
 0x4db   : > { %v12607_v36 = vpop.f32.mrb[71].mxu1  ;;  %v4525_v20 = vsel %vm1845_vm3, %v14723_v22, -inf  ;;  %v4469_v57 = vmul.f32 0.17677669, %v4450_v24 }
 0x4dc   : > { %4526 = vmax.xlane.f32.xlu1 %v4525_v20  ;;  %4523 = vmax.xlane.f32.xlu0 %v4522_v63  ;;  %v16304_v36 = vld [vmem:[#allocation27_spill] sm:$0xff]  ;;  %v14746_v20 = vpop.permute.xlu0 %4971 }
 0x4dd   : > { %v14755_v53 = vadd.f32 %v4469_v57, %v16299_v21  ;;  %v16316_v21 = vld [vmem:[#allocation30_spill] sm:$0xff] }
 0x4e0   : > { %4529 = vmax.xlane.f32.xlu0 %v4528_v18  ;;  %v14748_v63 = vpop.permute.xlu0 %5279  ;;  %v14750_v18 = vpop.permute.xlu1 %4894 }
 0x4e1   : > { %16305 = vst [vmem:[#allocation29_spill] sm:$0xff] %v14748_v63  ;;  %16306 = vst [vmem:[#allocation31_spill] sm:$0xff] %v14750_v18 }
 0x4e4   : > { %v14752_v61 = vpop.permute.xlu0 %5433 }
 0x4e5   : > { %16307 = vst [vmem:[#allocation16_spill] sm:$0xff] %v14752_v61 }
 0x4e8   : > { %v14759_v45 = vpop.permute.xlu0 %5587 }
 0x4e9   : > { %16309 = vst [vmem:[#allocation20_spill] sm:$0xff] %v14759_v45 }
 0x4ec   : > { %v14765_v41 = vpop.permute.xlu0 %5741 }
 0x4ed   : > { %6367 = vrot.lane.b32.xlu1 %v16300_v2, %s13680_s20  ;;  %16311 = vst [vmem:[#allocation41_spill] sm:$0xff] %v14765_v41 }
 0x4f0   : > { %v14769_v18 = vpop.permute.xlu0 %5977 }
 0x4f1   : > { %6365 = vrot.lane.b32.xlu1 %v16301_v27, %s13680_s20  ;;  %16313 = vst [vmem:[#allocation43_spill] sm:$0xff] %v14769_v18 }
 0x4f4   : > { %v14773_v57 = vpop.permute.xlu0 %5975 }
 0x4f5   : > { %16315 = vst [vmem:[#allocation44_spill] sm:$0xff] %v14773_v57 }
 0x4f6   : > { %6289 = vrot.lane.b32.xlu0 %v16302_v40, %s13680_s20  ;;  %v14757_v40 = vpop.permute.xlu1 %5048 }
 0x4f7   : > { %16308 = vst [vmem:[#allocation15_spill] sm:$0xff] %v14757_v40 }
 0x4f8   : > { %v14779_v61 = vpop.permute.xlu0 %6133 }
 0x4f9   : > { %16318 = vst [vmem:[#allocation46_spill] sm:$0xff] %v14779_v61 }
 0x4fa   : > { %6287 = vrot.lane.b32.xlu0 %v16303_v33, %s13680_s20  ;;  %v4531_v33 = vsel %vm1845_vm3, %v14755_v53, -inf }
 0x4fe   : > { %6445 = vrot.lane.b32.xlu0 %v16304_v36, %s13680_s20  ;;  %v14763_v36 = vpop.permute.xlu1 %5125 }
 0x4ff   : > { %16310 = vst [vmem:[#allocation19_spill] sm:$0xff] %v14763_v36  ;;  %v14783_v36 = vpop.permute.xlu0 %6131 }
 0x500   : > { %16320 = vst [vmem:[#allocation48_spill] sm:$0xff] %v14783_v36 }
 0x502   : > { %v14767_v63 = vpop.permute.xlu1 %5202 }
 0x503   : > { %16312 = vst [vmem:[#allocation42_spill] sm:$0xff] %v14767_v63 }
 0x506   : > { %v14771_v24 = vpop.permute.xlu1 %5356 }
 0x507   : > { %16314 = vst [vmem:[#allocation25_spill] sm:$0xff] %v14771_v24 }
 0x50a   : > { %v14777_v45 = vpop.permute.xlu1 %5510 }
 0x50b   : > { %16317 = vst [vmem:[#allocation45_spill] sm:$0xff] %v14777_v45 }
 0x515   : > { %4532 = vmax.xlane.f32.xlu1 %v4531_v33  ;;  %v14781_v33 = vpop.permute.xlu1 %5664 }
 0x516   : > { %16319 = vst [vmem:[#allocation47_spill] sm:$0xff] %v14781_v33 }
 0x519   : > { %v14785_v40 = vpop.permute.xlu1 %5818 }
 0x51a   : > { %16321 = vst [vmem:[#allocation49_spill] sm:$0xff] %v14785_v40 }
 0x51d   : > { %v14789_v37 = vpop.permute.xlu1 %6055 }
 0x51e   : > { %16322 = vst [vmem:[#allocation50_spill] sm:$0xff] %v14789_v37 }
 0x521   : > { %v14791_v45 = vpop.permute.xlu1 %6053 }
 0x522   : > { %16323 = vst [vmem:[#allocation51_spill] sm:$0xff] %v14791_v45 }
 0x526   : > { %6523 = vrot.lane.b32.xlu1 %v16316_v21, %s13680_s20 }
 0x534   : > { %v4488_v41 = vpop.xlane.xlu0 %4487 }
 0x535   : > { %v4534_v18 = vsub.f32 %v14659_v51, %v4488_v41  ;;  %v14799_v41 = vpop.permute.xlu1 %6211 }
 0x536   : > { %16324 = vst [vmem:[#allocation52_spill] sm:$0xff] %v14799_v41 }
 0x537   : > { %v4550_v63 = vmul.f32 1.442695, %v4534_v18 }
 0x538   : > { %v4494_v24 = vpop.xlane.xlu0 %4493 }
 0x539   : > { %13319 = vpow2.f32 %v4550_v63  ;;  %v4536_v57 = vsub.f32 %v14664_v13, %v4494_v24  ;;  %v14803_v13 = vpop.permute.xlu1 %6209 }
 0x53a   : > { %16325 = vst [vmem:[#allocation53_spill] sm:$0xff] %v14803_v13 }
 0x53b   : > { %v4554_v21 = vmul.f32 1.442695, %v4536_v57 }
 0x53d   : > { %13321 = vpow2.f32 %v4554_v21 }
 0x543   : > { %v14793_v61 = vpop.eup %13319 }
 0x544   : > { %v4582_v36 = vsel %vm1845_vm3, %v14793_v61, 0.0 }
 0x545   : > { %4583 = vadd.xlane.f32.xlu0 %v4582_v36 }
 0x547   : > { %v14797_v40 = vpop.eup %13321 }
 0x548   : > { %v4588_v51 = vsel %vm1845_vm3, %v14797_v40, 0.0 }
 0x549   : > { %4589 = vadd.xlane.f32.xlu0 %v4588_v51 }
 0x551   : > { %v4491_v63 = vpop.xlane.xlu1 %4490 }
 0x552   : > { %v4535_v21 = vsub.f32 %v14670_v47, %v4491_v63 }
 0x554   : > { %v4552_v18 = vmul.f32 1.442695, %v4535_v21 }
 0x555   : > { %v4497_v24 = vpop.xlane.xlu0 %4496 }
 0x556   : > { %13323 = vpow2.f32 %v4552_v18  ;;  %v4537_v57 = vsub.f32 %v14675_v59, %v4497_v24 }
 0x558   : > { %v4556_v45 = vmul.f32 1.442695, %v4537_v57 }
 0x559   : > { %v4503_v36 = vpop.xlane.xlu1 %4502  ;;  %v4500_v37 = vpop.xlane.xlu0 %4499 }
 0x55a   : > { %13325 = vpow2.f32 %v4556_v45  ;;  %v4539_v41 = vsub.f32 %v14683_v38, %v4503_v36  ;;  %v4538_v33 = vsub.f32 %v14680_v25, %v4500_v37 }
 0x55c   : > { %v4560_v27 = vmul.f32 1.442695, %v4539_v41  ;;  %v4558_v51 = vmul.f32 1.442695, %v4538_v33 }
 0x55d   : > { %v4509_v7 = vpop.xlane.xlu1 %4508  ;;  %v4506_v13 = vpop.xlane.xlu0 %4505 }
 0x55e   : > { %13327 = vpow2.f32 %v4560_v27  ;;  %v4541_v47 = vsub.f32 %v14693_v19, %v4509_v7  ;;  %v4540_v63 = vsub.f32 %v14690_v14, %v4506_v13 }
 0x55f   : > { %13329 = vpow2.f32 %v4558_v51 }
 0x560   : > { %v14811_v21 = vpop.eup %13323  ;;  %v4564_v59 = vmul.f32 1.442695, %v4541_v47  ;;  %v4562_v18 = vmul.f32 1.442695, %v4540_v63 }
 0x561   : > { %v4515_v24 = vpop.xlane.xlu1 %4514  ;;  %v4512_v45 = vpop.xlane.xlu0 %4511  ;;  %v4585_v38 = vsel %vm1845_vm3, %v14811_v21, 0.0 }
 0x562   : > { %13331 = vpow2.f32 %v4564_v59  ;;  %v4543_v37 = vsub.f32 %v14703_v44, %v4515_v24  ;;  %v4542_v25 = vsub.f32 %v14696_v55, %v4512_v45  ;;  %4586 = vadd.xlane.f32.xlu1 %v4585_v38 }
 0x563   : > { %13333 = vpow2.f32 %v4562_v18 }
 0x564   : > { %v14817_v7 = vpop.eup %13325  ;;  %v4568_v14 = vmul.f32 1.442695, %v4543_v37  ;;  %v4566_v19 = vmul.f32 1.442695, %v4542_v25 }
 0x565   : > { %v4521_v27 = vpop.xlane.xlu1 %4520  ;;  %v4518_v33 = vpop.xlane.xlu0 %4517  ;;  %v4591_v41 = vsel %vm1845_vm3, %v14817_v7, 0.0 }
 0x566   : > { %13335 = vpow2.f32 %v4568_v14  ;;  %v4545_v13 = vsub.f32 %v14713_v16, %v4521_v27  ;;  %v4544_v57 = vsub.f32 %v14708_v11, %v4518_v33  ;;  %4592 = vadd.xlane.f32.xlu1 %v4591_v41 }
 0x567   : > { %13337 = vpow2.f32 %v4566_v19 }
 0x568   : > { %v14823_v44 = vpop.eup %13327  ;;  %v4572_v55 = vmul.f32 1.442695, %v4545_v13  ;;  %v4570_v36 = vmul.f32 1.442695, %v4544_v57 }
 0x569   : > { %v14825_v51 = vpop.eup %13329  ;;  %v4527_v47 = vpop.xlane.xlu1 %4526  ;;  %v4597_v59 = vsel %vm1845_vm3, %v14823_v44, 0.0 }
 0x56a   : > { %v4524_v63 = vpop.xlane.xlu0 %4523  ;;  %13339 = vpow2.f32 %v4572_v55  ;;  %v4547_v18 = vsub.f32 %v14723_v22, %v4527_v47  ;;  %4598 = vadd.xlane.f32.xlu1 %v4597_v59  ;;  %v4594_v11 = vsel %vm1845_vm3, %v14825_v51, 0.0 }
 0x56b   : > { %v4546_v16 = vsub.f32 %v14718_v31, %v4524_v63  ;;  %13341 = vpow2.f32 %v4570_v36  ;;  %4595 = vadd.xlane.f32.xlu0 %v4594_v11 }
 0x56c   : > { %v14833_v24 = vpop.eup %13331  ;;  %v4576_v45 = vmul.f32 1.442695, %v4547_v18 }
 0x56d   : > { %v4574_v38 = vmul.f32 1.442695, %v4546_v16  ;;  %v14835_v37 = vpop.eup %13333  ;;  %v4603_v14 = vsel %vm1845_vm3, %v14833_v24, 0.0 }
 0x56e   : > { %v4530_v25 = vpop.xlane.xlu0 %4529  ;;  %13343 = vpow2.f32 %v4576_v45  ;;  %4604 = vadd.xlane.f32.xlu1 %v4603_v14  ;;  %v4600_v31 = vsel %vm1845_vm3, %v14835_v37, 0.0  ;;  %v14876_v45 = vpop.permute.xlu1 %6367 }
 0x56f   : > { %v4548_v22 = vsub.f32 %v14726_v48, %v4530_v25  ;;  %13345 = vpow2.f32 %v4574_v38  ;;  %4601 = vadd.xlane.f32.xlu0 %v4600_v31 }
 0x570   : > { %v14842_v19 = vpop.eup %13335 }
 0x571   : > { %v4578_v27 = vmul.f32 1.442695, %v4548_v22  ;;  %v14844_v33 = vpop.eup %13337  ;;  %v4609_v41 = vsel %vm1845_vm3, %v14842_v19, 0.0 }
 0x572   : > { %4610 = vadd.xlane.f32.xlu1 %v4609_v41  ;;  %v4606_v13 = vsel %vm1845_vm3, %v14844_v33, 0.0  ;;  %v14880_v38 = vpop.permute.xlu1 %6365 }
 0x573   : > { %13347 = vpow2.f32 %v4578_v27  ;;  %4607 = vadd.xlane.f32.xlu0 %v4606_v13 }
 0x574   : > { %v14850_v48 = vpop.eup %13339 }
 0x575   : > { %v14852_v57 = vpop.eup %13341  ;;  %v4615_v55 = vsel %vm1845_vm3, %v14850_v48, 0.0 }
 0x576   : > { %4616 = vadd.xlane.f32.xlu1 %v4615_v55  ;;  %v4612_v36 = vsel %vm1845_vm3, %v14852_v57, 0.0 }
 0x577   : > { %4613 = vadd.xlane.f32.xlu0 %v4612_v36 }
 0x578   : > { %v14858_v47 = vpop.eup %13343 }
 0x579   : > { %v14860_v63 = vpop.eup %13345  ;;  %v4621_v59 = vsel %vm1845_vm3, %v14858_v47, 0.0 }
 0x57a   : > { %4622 = vadd.xlane.f32.xlu1 %v4621_v59  ;;  %v4618_v18 = vsel %vm1845_vm3, %v14860_v63, 0.0 }
 0x57b   : > { %4619 = vadd.xlane.f32.xlu0 %v4618_v18 }
 0x57d   : > { %v14866_v16 = vpop.eup %13347 }
 0x57e   : > { %v4624_v11 = vsel %vm1845_vm3, %v14866_v16, 0.0 }
 0x57f   : > { %4625 = vadd.xlane.f32.xlu1 %v4624_v11 }
 0x590   : > { %6521 = vrot.lane.b32.xlu1 %v14040_v46, %s13680_s20 }
 0x594   : > { %6679 = vrot.lane.b32.xlu1 %v14074_v56, %s13680_s20 }
 0x598   : > { %6677 = vrot.lane.b32.xlu1 %v14070_v54, %s13680_s20 }
 0x59c   : > { %6835 = vrot.lane.b32.xlu1 %v14104_v1, %s13680_s20 }
 0x5a0   : > { %6833 = vrot.lane.b32.xlu1 %v14100_v62, %s13680_s20 }
 0x5a2   : > { %v4533_v25 = vpop.xlane.xlu1 %4532 }
 0x5a3   : > { %v4549_v14 = vsub.f32 %v14755_v53, %v4533_v25  ;;  %v14905_v53 = vpop.permute.xlu0 %6289 }
 0x5a4   : > { %6991 = vrot.lane.b32.xlu1 %v14128_v6, %s13680_s20 }
 0x5a5   : > { %v4580_v22 = vmul.f32 1.442695, %v4549_v14 }
 0x5a7   : > { %13349 = vpow2.f32 %v4580_v22  ;;  %v14911_v41 = vpop.permute.xlu0 %6287  ;;  %v16331_v22 = vld [vmem:[#allocation32_spill] sm:$0xff] }
 0x5a8   : > { %6989 = vrot.lane.b32.xlu1 %v14126_v5, %s13680_s20 }
 0x5ab   : > { %v14919_v13 = vpop.permute.xlu0 %6445 }
 0x5ac   : > { %7147 = vrot.lane.b32.xlu1 %v14152_v10, %s13680_s20 }
 0x5b0   : > { %7145 = vrot.lane.b32.xlu1 %v14148_v9, %s13680_s20 }
 0x5b1   : > { %v14893_v31 = vpop.eup %13349 }
 0x5b2   : > { %v4627_v27 = vsel %vm1845_vm3, %v14893_v31, 0.0 }
 0x5b3   : > { %4628 = vadd.xlane.f32.xlu0 %v4627_v27 }
 0x5b4   : > { %7507 = vrot.lane.b32.xlu1 %v13995_v35, %s13680_s20 }
 0x5b8   : > { %7659 = vrot.lane.b32.xlu1 %v14012_v39, %s13680_s20 }
 0x5bc   : > { %7811 = vrot.lane.b32.xlu1 %v14027_v43, %s13680_s20 }
 0x5c0   : > { %7887 = vrot.lane.b32.xlu1 %v14048_v49, %s13680_s20 }
 0x5c4   : > { %7963 = vrot.lane.b32.xlu1 %v16286_v30, %s13680_s20 }
 0x5c8   : > { %8115 = vrot.lane.b32.xlu1 %v16288_v32, %s13680_s20 }
 0x5c9   : > { %6443 = vrot.lane.b32.xlu0 %v14025_v42, %s13680_s20 }
 0x5cc   : > { %8267 = vrot.lane.b32.xlu1 %v16289_v23, %s13680_s20 }
 0x5cd   : > { %6601 = vrot.lane.b32.xlu0 %v14061_v52, %s13680_s20 }
 0x5d0   : > { %8419 = vrot.lane.b32.xlu1 %v16290_v15, %s13680_s20 }
 0x5d1   : > { %6599 = vrot.lane.b32.xlu0 %v14055_v50, %s13680_s20 }
 0x5d2   : > { %v4584_v55 = vpop.xlane.xlu0 %4583 }
 0x5d3   : > { %13351 = vrcp.f32 %v4584_v55 }
 0x5d4   : > { %8571 = vrot.lane.b32.xlu1 %v16291_v0, %s13680_s20 }
 0x5d5   : > { %6757 = vrot.lane.b32.xlu0 %v14091_v60, %s13680_s20 }
 0x5d6   : > { %v4590_v36 = vpop.xlane.xlu0 %4589 }
 0x5d7   : > { %13353 = vrcp.f32 %v4590_v36 }
 0x5d8   : > { %8808 = vrot.lane.b32.xlu1 %v16292_v12, %s13681_s29 }
 0x5d9   : > { %6755 = vrot.lane.b32.xlu0 %v14085_v58, %s13680_s20 }
 0x5dc   : > { %8806 = vrot.lane.b32.xlu1 %v16293_v28, %s13681_s29  ;;  %v14961_v28 = vpop.permute.xlu1 %6523 }
 0x5dd   : > { %v13352_v59 = vpop.eup %13351  ;;  %6913 = vrot.lane.b32.xlu0 %v14119_v4, %s13680_s20 }
 0x5de   : > { %v4646_v18 = vmul.f32 %v13352_v59, %v14793_v61  ;;  %v16326_v61 = vld [vmem:[#allocation39_spill] sm:$0xff] }
 0x5e0   : > { %8964 = vrot.lane.b32.xlu1 %v16294_v34, %s13681_s29  ;;  %12611 = vmatmul.mubr.msk.f32.vlgmr.msra.gmra.mrb[72].mxu0 %vm1845_vm3, %v4646_v18  ;;  %v16328_v34 = vld [vmem:[#allocation23_spill] sm:$0xff]  ;;  %v16332_v18 = vld [vmem:[#allocation34_spill] sm:$0xff] }
 0x5e1   : > { %v13354_v11 = vpop.eup %13353  ;;  %12619 = vmatpush3.msra.mxu0 %v14740_v17  ;;  %6911 = vrot.lane.b32.xlu0 %v14115_v3, %s13680_s20  ;;  %v16329_v17 = vld [vmem:[#allocation26_spill] sm:$0xff] }
 0x5e2   : > { %12620 = vmatprep.mubr.msk.f32.mxu0 %vm13677_vm0, %v16284_v29  ;;  %12628 = vmatprep.subr.mxu0 %v16284_v29  ;;  %v4648_v12 = vmul.f32 %v13354_v11, %v14797_v40 }
 0x5e4   : > { %8962 = vrot.lane.b32.xlu1 %v16295_v26, %s13681_s29  ;;  %12621 = vmatmul.mubr.msk.f32.vlgmr.msra.gmra.mrb[74].mxu0 %vm1845_vm3, %v4648_v12  ;;  %v16327_v26 = vld [vmem:[#allocation24_spill] sm:$0xff]  ;;  %v16333_v12 = vld [vmem:[#allocation31_spill] sm:$0xff] }
 0x5e5   : > { %12629 = vmatpush3.msra.mxu0 %v14746_v20  ;;  %7069 = vrot.lane.b32.xlu0 %v14141_v8, %s13680_s20 }
 0x5e6   : > { %12630 = vmatprep.mubr.msk.f32.mxu0 %vm13677_vm0, %v16284_v29  ;;  %12638 = vmatprep.subr.mxu0 %v16284_v29 }
 0x5e8   : > { %9120 = vrot.lane.b32.xlu1 %v16300_v2, %s13681_s29  ;;  %v16330_v2 = vld [vmem:[#allocation28_spill] sm:$0xff] }
 0x5e9   : > { %7067 = vrot.lane.b32.xlu0 %v16326_v61, %s13680_s20 }
 0x5ec   : > { %9118 = vrot.lane.b32.xlu1 %v16327_v26, %s13681_s29 }
 0x5ed   : > { %7431 = vrot.lane.b32.xlu0 %v16328_v34, %s13680_s20 }
 0x5ef   : > { %v4587_v40 = vpop.xlane.xlu1 %4586 }
 0x5f0   : > { %13355 = vrcp.f32 %v4587_v40 }
 0x5f1   : > { %7583 = vrot.lane.b32.xlu0 %v16329_v17, %s13680_s20 }
 0x5f3   : > { %v4593_v20 = vpop.xlane.xlu1 %4592 }
 0x5f4   : > { %13357 = vrcp.f32 %v4593_v20  ;;  %v16334_v20 = vld [vmem:[#allocation36_spill] sm:$0xff] }
 0x5f5   : > { %7735 = vrot.lane.b32.xlu0 %v16330_v2, %s13680_s20 }
 0x5f7   : > { %v4599_v25 = vpop.xlane.xlu1 %4598 }
 0x5f8   : > { %13359 = vrcp.f32 %v4599_v25  ;;  %v4596_v14 = vpop.xlane.xlu0 %4595 }
 0x5f9   : > { %13361 = vrcp.f32 %v4596_v14  ;;  %8039 = vrot.lane.b32.xlu0 %v16331_v22, %s13680_s20  ;;  %v16335_v14 = vld [vmem:[#allocation15_spill] sm:$0xff] }
 0x5fa   : > { %v13356_v27 = vpop.eup %13355 }
 0x5fb   : > { %v4605_v55 = vpop.xlane.xlu1 %4604  ;;  %v4647_v36 = vmul.f32 %v13356_v27, %v14811_v21 }
 0x5fc   : > { %13363 = vrcp.f32 %v4605_v55  ;;  %v4602_v59 = vpop.xlane.xlu0 %4601 }
 0x5fd   : > { %13365 = vrcp.f32 %v4602_v59  ;;  %12616 = vmatmul.mubr.msk.f32.vlgmr.msra.gmra.mrb[72].mxu1 %vm1845_vm3, %v4647_v36  ;;  %8191 = vrot.lane.b32.xlu0 %v16332_v18, %s13680_s20 }
 0x5fe   : > { %v13358_v11 = vpop.eup %13357  ;;  %12624 = vmatpush3.msra.mxu1 %v16333_v12  ;;  %12625 = vmatprep.mubr.msk.f32.mxu1 %vm13677_vm0, %v16284_v29 }
 0x5ff   : > { %v4611_v26 = vpop.xlane.xlu1 %4610  ;;  %12633 = vmatprep.subr.mxu1 %v16284_v29  ;;  %v4649_v40 = vmul.f32 %v13358_v11, %v14817_v7  ;;  %v16336_v11 = vld [vmem:[#allocation38_spill] sm:$0xff] }
 0x600   : > { %13367 = vrcp.f32 %v4611_v26  ;;  %v4608_v21 = vpop.xlane.xlu0 %4607  ;;  %v16337_v26 = vld [vmem:[#allocation42_spill] sm:$0xff] }
 0x601   : > { %13369 = vrcp.f32 %v4608_v21  ;;  %12626 = vmatmul.mubr.msk.f32.vlgmr.msra.gmra.mrb[74].mxu1 %vm1845_vm3, %v4649_v40  ;;  %8343 = vrot.lane.b32.xlu0 %v16334_v20, %s13680_s20  ;;  %v16338_v21 = vld [vmem:[#allocation19_spill] sm:$0xff] }
 0x602   : > { %v13360_v25 = vpop.eup %13359  ;;  %12634 = vmatpush3.msra.mxu1 %v16335_v14  ;;  %12635 = vmatprep.mubr.msk.f32.mxu1 %vm13677_vm0, %v16284_v29 }
 0x603   : > { %v13362_v27 = vpop.eup %13361  ;;  %v4617_v55 = vpop.xlane.xlu1 %4616  ;;  %12643 = vmatprep.subr.mxu1 %v16284_v29  ;;  %v4651_v7 = vmul.f32 %v13360_v25, %v14823_v44 }
 0x604   : > { %13371 = vrcp.f32 %v4617_v55  ;;  %v4614_v36 = vpop.xlane.xlu0 %4613  ;;  %v4650_v59 = vmul.f32 %v13362_v27, %v14825_v51  ;;  %v16339_v55 = vld [vmem:[#allocation25_spill] sm:$0xff] }
 0x605   : > { %13373 = vrcp.f32 %v4614_v36  ;;  %12636 = vmatmul.mubr.msk.f32.vlgmr.msra.gmra.mrb[76].mxu1 %vm1845_vm3, %v4651_v7  ;;  %8495 = vrot.lane.b32.xlu0 %v16336_v11, %s13680_s20  ;;  %v16340_v7 = vld [vmem:[#allocation14_spill] sm:$0xff] }
 0x606   : > { %v13364_v12 = vpop.eup %13363  ;;  %12644 = vmatpush3.msra.mxu1 %v16337_v26  ;;  %12631 = vmatmul.mubr.msk.f32.vlgmr.msra.gmra.mrb[76].mxu0 %vm1845_vm3, %v4650_v59  ;;  %v16341_v59 = vld [vmem:[#allocation29_spill] sm:$0xff] }
 0x607   : > { %v13366_v40 = vpop.eup %13365  ;;  %12639 = vmatpush3.msra.mxu0 %v16338_v21  ;;  %v4623_v14 = vpop.xlane.xlu1 %4622  ;;  %12640 = vmatprep.mubr.msk.f32.mxu0 %vm13677_vm0, %v16284_v29  ;;  %v4653_v44 = vmul.f32 %v13364_v12, %v14833_v24 }
 0x608   : > { %13375 = vrcp.f32 %v4623_v14  ;;  %v4620_v51 = vpop.xlane.xlu0 %4619  ;;  %12645 = vmatprep.mubr.msk.f32.mxu1 %vm13677_vm0, %v16284_v29  ;;  %12648 = vmatprep.subr.mxu0 %v16284_v29  ;;  %v4652_v25 = vmul.f32 %v13366_v40, %v14835_v37  ;;  %v16342_v40 = vld [vmem:[#allocation13_spill] sm:$0xff] }
 0x609   : > { %13377 = vrcp.f32 %v4620_v51  ;;  %12653 = vmatprep.subr.mxu1 %v16284_v29  ;;  %12646 = vmatmul.mubr.msk.f32.vlgmr.msra.gmra.mrb[78].mxu1 %vm1845_vm3, %v4653_v44  ;;  %v16344_v44 = vld [vmem:[#allocation16_spill] sm:$0xff] }
 0x60a   : > { %v13368_v27 = vpop.eup %13367  ;;  %12654 = vmatpush3.msra.mxu1 %v16339_v55  ;;  %8730 = vrot.lane.b32.xlu0 %v16340_v7, %s13681_s29  ;;  %v16347_v7 = vld [vmem:[#allocation20_spill] sm:$0xff] }
 0x60b   : > { %v13370_v24 = vpop.eup %13369  ;;  %12641 = vmatmul.mubr.msk.f32.vlgmr.msra.gmra.mrb[78].mxu0 %vm1845_vm3, %v4652_v25  ;;  %12655 = vmatprep.mubr.msk.f32.mxu1 %vm13677_vm0, %v16284_v29  ;;  %v4655_v37 = vmul.f32 %v13368_v27, %v14842_v19  ;;  %v16343_v19 = vld [vmem:[#allocation45_spill] sm:$0xff]  ;;  %v16345_v27 = vld [vmem:[#allocation47_spill] sm:$0xff] }
 0x60c   : > { %v4626_v36 = vpop.xlane.xlu1 %4625  ;;  %12649 = vmatpush3.msra.mxu0 %v16341_v59  ;;  %12650 = vmatprep.mubr.msk.f32.mxu0 %vm13677_vm0, %v16284_v29  ;;  %v4654_v12 = vmul.f32 %v13370_v24, %v14844_v33  ;;  %v16351_v59 = vld [vmem:[#allocation22_spill] sm:$0xff] }
 0x60d   : > { %13379 = vrcp.f32 %v4626_v36  ;;  %12658 = vmatprep.subr.mxu0 %v16284_v29  ;;  %12663 = vmatprep.subr.mxu1 %v16284_v29  ;;  %v16349_v36 = vld [vmem:[#allocation49_spill] sm:$0xff] }
 0x60e   : > { %v13372_v26 = vpop.eup %13371  ;;  %12656 = vmatmul.mubr.msk.f32.vlgmr.msra.gmra.mrb[80].mxu1 %vm1845_vm3, %v4655_v37  ;;  %8728 = vrot.lane.b32.xlu0 %v16342_v40, %s13681_s29  ;;  %v16350_v37 = vld [vmem:[#allocation41_spill] sm:$0xff]  ;;  %v16355_v40 = vld [vmem:[#allocation46_spill] sm:$0xff] }
 0x60f   : > { %v13374_v21 = vpop.eup %13373  ;;  %12664 = vmatpush3.msra.mxu1 %v16343_v19  ;;  %12651 = vmatmul.mubr.msk.f32.vlgmr.msra.gmra.mrb[80].mxu0 %vm1845_vm3, %v4654_v12  ;;  %v4657_v14 = vmul.f32 %v13372_v26, %v14850_v48  ;;  %v16346_v48 = vld [vmem:[#allocation18_spill] sm:$0xff]  ;;  %v16353_v12 = vld [vmem:[#allocation43_spill] sm:$0xff]  ;;  %v16354_v26 = vld [vmem:[#allocation44_spill] sm:$0xff] }
 0x610   : > { %12659 = vmatpush3.msra.mxu0 %v16344_v44  ;;  %12660 = vmatprep.mubr.msk.f32.mxu0 %vm13677_vm0, %v16284_v29  ;;  %v4656_v33 = vmul.f32 %v13374_v21, %v14852_v57  ;;  %v16356_v21 = vld [vmem:[#allocation48_spill] sm:$0xff]  ;;  %v6522_v19 = vpop.permute.xlu1 %6521 }
 0x611   : > { %12665 = vmatprep.mubr.msk.f32.mxu1 %vm13677_vm0, %v16284_v29  ;;  %12668 = vmatprep.subr.mxu0 %v16284_v29 }
 0x612   : > { %v13376_v51 = vpop.eup %13375  ;;  %12673 = vmatprep.subr.mxu1 %v16284_v29  ;;  %12666 = vmatmul.mubr.msk.f32.vlgmr.msra.gmra.mrb[82].mxu1 %vm1845_vm3, %v4657_v14 }
 0x613   : > { %v13378_v25 = vpop.eup %13377  ;;  %12674 = vmatpush3.msra.mxu1 %v16345_v27  ;;  %8886 = vrot.lane.b32.xlu0 %v16346_v48, %s13681_s29  ;;  %v4659_v55 = vmul.f32 %v13376_v51, %v14858_v47  ;;  %v16348_v47 = vld [vmem:[#allocation17_spill] sm:$0xff]  ;;  %v16357_v48 = vld [vmem:[#allocation50_spill] sm:$0xff] }
 0x614   : > { %12661 = vmatmul.mubr.msk.f32.vlgmr.msra.gmra.mrb[82].mxu0 %vm1845_vm3, %v4656_v33  ;;  %12675 = vmatprep.mubr.msk.f32.mxu1 %vm13677_vm0, %v16284_v29  ;;  %v4658_v57 = vmul.f32 %v13378_v25, %v14860_v63  ;;  %v6680_v14 = vpop.permute.xlu1 %6679 }
 0x615   : > { %12669 = vmatpush3.msra.mxu0 %v16347_v7  ;;  %12670 = vmatprep.mubr.msk.f32.mxu0 %vm13677_vm0, %v16284_v29  ;;  %v16359_v7 = vld [vmem:[#allocation52_spill] sm:$0xff] }
 0x616   : > { %12678 = vmatprep.subr.mxu0 %v16284_v29  ;;  %12683 = vmatprep.subr.mxu1 %v16284_v29 }
 0x617   : > { %v13380_v24 = vpop.eup %13379  ;;  %12676 = vmatmul.mubr.msk.f32.vlgmr.msra.gmra.mrb[84].mxu1 %vm1845_vm3, %v4659_v55  ;;  %8884 = vrot.lane.b32.xlu0 %v16348_v47, %s13681_s29 }
 0x618   : > { %12684 = vmatpush3.msra.mxu1 %v16349_v36  ;;  %12671 = vmatmul.mubr.msk.f32.vlgmr.msra.gmra.mrb[84].mxu0 %vm1845_vm3, %v4658_v57  ;;  %v4660_v63 = vmul.f32 %v13380_v24, %v14866_v16  ;;  %v16352_v16 = vld [vmem:[#allocation21_spill] sm:$0xff] }
 0x619   : > { %12679 = vmatpush3.msra.mxu0 %v16350_v37  ;;  %12680 = vmatprep.mubr.msk.f32.mxu0 %vm13677_vm0, %v16284_v29  ;;  %v16360_v36 = vld [vmem:[#allocation53_spill] sm:$0xff] }
 0x61a   : > { %12688 = vmatprep.subr.mxu0 %v16284_v29  ;;  %12685 = vmatprep.mubr.msk.f32.mxu1 %vm13677_vm0, %v16284_v29 }
 0x61b   : > { %9042 = vrot.lane.b32.xlu0 %v16351_v59, %s13681_s29  ;;  %12693 = vmatprep.subr.mxu1 %v16284_v29 }
 0x61c   : > { %12681 = vmatmul.mubr.msk.f32.vlgmr.msra.gmra.mrb[86].mxu0 %vm1845_vm3, %v4660_v63 }
 0x61d   : > { %12690 = vmatprep.mubr.msk.f32.mxu0 %vm13677_vm0, %v16284_v29 }
 0x61f   : > { %9040 = vrot.lane.b32.xlu0 %v16352_v16, %s13681_s29 }
 0x620   : > { %12689 = vmatpush3.xpose.msk.msra.mxu0 %vm596_vm1, %v16353_v12 }
 0x621   : > { %12698 = vmatprep.subr.mxu0 %v16284_v29 }
 0x623   : > { %12691 = vmatmul.mubr.msk.f32.vlgmr.msra.gmra.mrb[88].mxu0 %vm596_vm1, %v16354_v26 }
 0x624   : > { %12699 = vmatpush3.xpose.msk.msra.mxu0 %vm596_vm1, %v16355_v40  ;;  %12700 = vmatprep.mubr.msk.f32.mxu0 %vm13677_vm0, %v16284_v29 }
 0x625   : > { %12708 = vmatprep.subr.mxu0 %v16284_v29 }
 0x627   : > { %12701 = vmatmul.mubr.msk.f32.vlgmr.msra.gmra.mrb[90].mxu0 %vm596_vm1, %v16356_v21 }
 0x628   : > { %12709 = vmatpush3.xpose.msk.msra.mxu0 %vm596_vm1, %v14905_v53  ;;  %12710 = vmatprep.mubr.msk.f32.mxu0 %vm13677_vm0, %v16284_v29  ;;  %v6678_v53 = vpop.permute.xlu1 %6677 }
 0x629   : > { %12718 = vmatprep.subr.mxu0 %v16284_v29 }
 0x62b   : > { %12711 = vmatmul.mubr.msk.f32.vlgmr.msra.gmra.mrb[92].mxu0 %vm596_vm1, %v14911_v41 }
 0x62c   : > { %12719 = vmatpush3.xpose.msk.msra.mxu0 %vm596_vm1, %v14919_v13  ;;  %12720 = vmatprep.mubr.msk.f32.mxu0 %vm13677_vm0, %v16284_v29  ;;  %v6836_v13 = vpop.permute.xlu1 %6835 }
 0x62d   : > { %12728 = vmatprep.subr.mxu0 %v16284_v29 }
 0x630   : > { %v6834_v55 = vpop.permute.xlu1 %6833 }
 0x634   : > { %v6992_v47 = vpop.permute.xlu1 %6991 }
 0x640   : > { %v4629_v44 = vpop.xlane.xlu0 %4628 }
 0x641   : > { %13381 = vrcp.f32 %v4629_v44 }
 0x644   : > { %v6444_v33 = vpop.permute.xlu0 %6443 }
 0x645   : > { %12721 = vmatmul.mubr.msk.f32.vlgmr.msra.gmra.mrb[94].mxu0 %vm596_vm1, %v6444_v33 }
 0x646   : > { %12730 = vmatprep.mubr.msk.f32.mxu0 %vm13677_vm0, %v16284_v29 }
 0x648   : > { %v6602_v41 = vpop.permute.xlu0 %6601 }
 0x649   : > { %12729 = vmatpush3.xpose.msk.msra.mxu0 %vm596_vm1, %v6602_v41 }
 0x64a   : > { %12738 = vmatprep.subr.mxu0 %v16284_v29 }
 0x64b   : > { %v13382_v51 = vpop.eup %13381 }
 0x64c   : > { %v6600_v25 = vpop.permute.xlu0 %6599  ;;  %v4661_v27 = vmul.f32 %v13382_v51, %v14893_v31  ;;  %v16358_v31 = vld [vmem:[#allocation51_spill] sm:$0xff] }
 0x64d   : > { %12731 = vmatmul.mubr.msk.f32.vlgmr.msra.gmra.mrb[96].mxu0 %vm596_vm1, %v6600_v25 }
 0x64e   : > { %12686 = vmatmul.mubr.msk.f32.vlgmr.msra.gmra.mrb[86].mxu1 %vm1845_vm3, %v4661_v27  ;;  %12740 = vmatprep.mubr.msk.f32.mxu0 %vm13677_vm0, %v16284_v29 }
 0x64f   : > { %12694 = vmatpush3.xpose.msk.msra.mxu1 %vm596_vm1, %v16357_v48  ;;  %12695 = vmatprep.mubr.msk.f32.mxu1 %vm13677_vm0, %v16284_v29 }
 0x650   : > { %v6758_v57 = vpop.permute.xlu0 %6757  ;;  %12703 = vmatprep.subr.mxu1 %v16284_v29 }
 0x651   : > { %12739 = vmatpush3.xpose.msk.msra.mxu0 %vm596_vm1, %v6758_v57 }
 0x652   : > { %12696 = vmatmul.mubr.msk.f32.vlgmr.msra.gmra.mrb[88].mxu1 %vm596_vm1, %v16358_v31  ;;  %12748 = vmatprep.subr.mxu0 %v16284_v29 }
 0x653   : > { %12704 = vmatpush3.xpose.msk.msra.mxu1 %vm596_vm1, %v16359_v7  ;;  %12705 = vmatprep.mubr.msk.f32.mxu1 %vm13677_vm0, %v16284_v29 }
 0x654   : > { %v6756_v24 = vpop.permute.xlu0 %6755  ;;  %12713 = vmatprep.subr.mxu1 %v16284_v29 }
 0x655   : > { %12741 = vmatmul.mubr.msk.f32.vlgmr.msra.gmra.mrb[98].mxu0 %vm596_vm1, %v6756_v24 }
 0x656   : > { %12706 = vmatmul.mubr.msk.f32.vlgmr.msra.gmra.mrb[90].mxu1 %vm596_vm1, %v16360_v36  ;;  %12750 = vmatprep.mubr.msk.f32.mxu0 %vm13677_vm0, %v16284_v29 }
 0x657   : > { %12714 = vmatpush3.xpose.msk.msra.mxu1 %vm596_vm1, %v14876_v45  ;;  %12715 = vmatprep.mubr.msk.f32.mxu1 %vm13677_vm0, %v16284_v29  ;;  %v6990_v45 = vpop.permute.xlu1 %6989 }
 0x658   : > { %v6914_v63 = vpop.permute.xlu0 %6913  ;;  %12723 = vmatprep.subr.mxu1 %v16284_v29 }
 0x659   : > { %12749 = vmatpush3.xpose.msk.msra.mxu0 %vm596_vm1, %v6914_v63 }
 0x65a   : > { %12716 = vmatmul.mubr.msk.f32.vlgmr.msra.gmra.mrb[92].mxu1 %vm596_vm1, %v14880_v38  ;;  %12758 = vmatprep.subr.mxu0 %v16284_v29 }
 0x65b   : > { %12724 = vmatpush3.xpose.msk.msra.mxu1 %vm596_vm1, %v14961_v28  ;;  %12725 = vmatprep.mubr.msk.f32.mxu1 %vm13677_vm0, %v16284_v29  ;;  %v7148_v28 = vpop.permute.xlu1 %7147 }
 0x65c   : > { %v6912_v37 = vpop.permute.xlu0 %6911  ;;  %12733 = vmatprep.subr.mxu1 %v16284_v29 }
 0x65d   : > { %12751 = vmatmul.mubr.msk.f32.vlgmr.msra.gmra.mrb[100].mxu0 %vm596_vm1, %v6912_v37 }
 0x65e   : > { %12726 = vmatmul.mubr.msk.f32.vlgmr.msra.gmra.mrb[94].mxu1 %vm596_vm1, %v6522_v19  ;;  %12760 = vmatprep.mubr.msk.f32.mxu0 %vm13677_vm0, %v16284_v29 }
 0x65f   : > { %12734 = vmatpush3.xpose.msk.msra.mxu1 %vm596_vm1, %v6680_v14  ;;  %12735 = vmatprep.mubr.msk.f32.mxu1 %vm13677_vm0, %v16284_v29  ;;  %v7146_v16 = vpop.permute.xlu1 %7145 }
 0x660   : > { %v7070_v38 = vpop.permute.xlu0 %7069  ;;  %12743 = vmatprep.subr.mxu1 %v16284_v29 }
 0x661   : > { %12759 = vmatpush3.xpose.msk.msra.mxu0 %vm596_vm1, %v7070_v38 }
 0x662   : > { %12736 = vmatmul.mubr.msk.f32.vlgmr.msra.gmra.mrb[96].mxu1 %vm596_vm1, %v6678_v53  ;;  %12768 = vmatprep.subr.mxu0 %v16284_v29 }
 0x663   : > { %12744 = vmatpush3.xpose.msk.msra.mxu1 %vm596_vm1, %v6836_v13  ;;  %12745 = vmatprep.mubr.msk.f32.mxu1 %vm13677_vm0, %v16284_v29  ;;  %v7508_v26 = vpop.permute.xlu1 %7507 }
 0x664   : > { %v7068_v59 = vpop.permute.xlu0 %7067  ;;  %12753 = vmatprep.subr.mxu1 %v16284_v29 }
 0x665   : > { %12761 = vmatmul.mubr.msk.f32.vlgmr.msra.gmra.mrb[102].mxu0 %vm596_vm1, %v7068_v59 }
 0x666   : > { %12746 = vmatmul.mubr.msk.f32.vlgmr.msra.gmra.mrb[98].mxu1 %vm596_vm1, %v6834_v55  ;;  %12770 = vmatprep.mubr.msk.f32.mxu0 %vm13677_vm0, %v16284_v29 }
 0x667   : > { %12754 = vmatpush3.xpose.msk.msra.mxu1 %vm596_vm1, %v6992_v47  ;;  %12755 = vmatprep.mubr.msk.f32.mxu1 %vm13677_vm0, %v16284_v29 }
 0x668   : > { %v7432_v12 = vpop.permute.xlu0 %7431  ;;  %12763 = vmatprep.subr.mxu1 %v16284_v29 }
 0x669   : > { %12769 = vmatpush3.msra.mxu0 %v7432_v12 }
 0x66a   : > { %12756 = vmatmul.mubr.msk.f32.vlgmr.msra.gmra.mrb[100].mxu1 %vm596_vm1, %v6990_v45  ;;  %12778 = vmatprep.subr.mxu0 %v16284_v29 }
 0x66b   : > { %12764 = vmatpush3.xpose.msk.msra.mxu1 %vm596_vm1, %v7148_v28  ;;  %12765 = vmatprep.mubr.msk.f32.mxu1 %vm13677_vm0, %v16284_v29 }
 0x66c   : > { %12773 = vmatprep.subr.mxu1 %v16284_v29 }
 0x66e   : > { %12766 = vmatmul.mubr.msk.f32.vlgmr.msra.gmra.mrb[102].mxu1 %vm596_vm1, %v7146_v16 }
 0x66f   : > { %12774 = vmatpush3.msra.mxu1 %v7508_v26  ;;  %12775 = vmatprep.mubr.msk.f32.mxu1 %vm13677_vm0, %v16284_v29 }
 0x670   : > { %12783 = vmatprep.subr.mxu1 %v16284_v29 }
 0x6b3   : > { %v15167_v40 = vpop.f32.mrb[72].mxu0 }
 0x6b4   : > { %16361 = vst [vmem:[#allocation39_spill] sm:$0xff] %v15167_v40  ;;  %v12612_v21 = vpop.f32.mrb[73].mxu0 }
 0x6b7   : > { %v15169_v19 = vpop.f32.mrb[74].mxu0 }
 0x6b8   : > { %16362 = vst [vmem:[#allocation24_spill] sm:$0xff] %v15169_v19  ;;  %v12622_v14 = vpop.f32.mrb[75].mxu0 }
 0x6d0   : > { %v15171_v44 = vpop.f32.mrb[72].mxu1 }
 0x6d1   : > { %16363 = vst [vmem:[#allocation23_spill] sm:$0xff] %v15171_v44  ;;  %v12617_v53 = vpop.f32.mrb[73].mxu1 }
 0x6d4   : > { %v15173_v33 = vpop.f32.mrb[74].mxu1 }
 0x6d5   : > { %16364 = vst [vmem:[#allocation26_spill] sm:$0xff] %v15173_v33  ;;  %v12627_v41 = vpop.f32.mrb[75].mxu1 }
 0x6d8   : > { %v15175_v13 = vpop.f32.mrb[76].mxu1 }
 0x6d9   : > { %16365 = vst [vmem:[#allocation28_spill] sm:$0xff] %v15175_v13  ;;  %v15177_v51 = vpop.f32.mrb[76].mxu0  ;;  %v12637_v25 = vpop.f32.mrb[77].mxu1 }
 0x6da   : > { %16366 = vst [vmem:[#allocation32_spill] sm:$0xff] %v15177_v51  ;;  %v12632_v27 = vpop.f32.mrb[77].mxu0  ;;  %v16376_v25 = vld [vmem:[#allocation40_spill] sm:$0xff] }
 0x6dc   : > { %v15179_v48 = vpop.f32.mrb[78].mxu1 }
 0x6dd   : > { %16367 = vst [vmem:[#allocation31_spill] sm:$0xff] %v15179_v48  ;;  %v12647_v55 = vpop.f32.mrb[79].mxu1 }
 0x6de   : > { %v15181_v57 = vpop.f32.mrb[78].mxu0 }
 0x6df   : > { %16368 = vst [vmem:[#allocation15_spill] sm:$0xff] %v15181_v57  ;;  %v12642_v31 = vpop.f32.mrb[79].mxu0 }
 0x6e1   : > { %v15183_v7 = vpop.f32.mrb[80].mxu1 }
 0x6e2   : > { %16369 = vst [vmem:[#allocation42_spill] sm:$0xff] %v15183_v7  ;;  %v15185_v24 = vpop.f32.mrb[80].mxu0  ;;  %v12657_v47 = vpop.f32.mrb[81].mxu1 }
 0x6e3   : > { %16370 = vst [vmem:[#allocation19_spill] sm:$0xff] %v15185_v24  ;;  %v12652_v36 = vpop.f32.mrb[81].mxu0 }
 0x6e5   : > { %v15187_v63 = vpop.f32.mrb[82].mxu1 }
 0x6e6   : > { %16371 = vst [vmem:[#allocation25_spill] sm:$0xff] %v15187_v63  ;;  %v12667_v45 = vpop.f32.mrb[83].mxu1 }
 0x6e7   : > { %v15189_v37 = vpop.f32.mrb[82].mxu0 }
 0x6e8   : > { %16372 = vst [vmem:[#allocation14_spill] sm:$0xff] %v15189_v37  ;;  %v12662_v38 = vpop.f32.mrb[83].mxu0  ;;  %v15295_v37 = vpop.permute.xlu1 %7659 }
 0x6ea   : > { %v15191_v28 = vpop.f32.mrb[84].mxu1 }
 0x6eb   : > { %16373 = vst [vmem:[#allocation29_spill] sm:$0xff] %v15191_v28  ;;  %v15193_v59 = vpop.f32.mrb[84].mxu0  ;;  %v12677_v16 = vpop.f32.mrb[85].mxu1 }
 0x6ec   : > { %16374 = vst [vmem:[#allocation13_spill] sm:$0xff] %v15193_v59  ;;  %v12672_v12 = vpop.f32.mrb[85].mxu0 }
 0x6ef   : > { %v15195_v26 = vpop.f32.mrb[86].mxu0 }
 0x6f0   : > { %16375 = vst [vmem:[#allocation45_spill] sm:$0xff] %v15195_v26  ;;  %v12682_v21 = vpop.f32.mrb[87].mxu0 }
 0x6f6   : > { %v6049_v14 = vpop.f32.mrb[88].mxu0 }
 0x6f7   : > { %v7223_v53 = vmul.f32 0.17677669, %v6049_v14  ;;  %v12692_v41 = vpop.f32.mrb[89].mxu0 }
 0x6f9   : > { %v15198_v27 = vadd.f32 %v7223_v53, %v16376_v25 }
 0x6fa   : > { %v6205_v55 = vpop.f32.mrb[90].mxu0 }
 0x6fb   : > { %v7225_v31 = vmul.f32 0.17677669, %v6205_v55  ;;  %v12702_v47 = vpop.f32.mrb[91].mxu0  ;;  %v7255_v36 = vsel %vm1845_vm3, %v15198_v27, -inf }
 0x6fc   : > { %7256 = vmax.xlane.f32.xlu0 %v7255_v36 }
 0x6fd   : > { %v15203_v45 = vadd.f32 %v7225_v31, %v16376_v25 }
 0x6fe   : > { %v6361_v38 = vpop.f32.mrb[92].mxu0 }
 0x6ff   : > { %v12712_v16 = vpop.f32.mrb[93].mxu0  ;;  %v7261_v12 = vsel %vm1845_vm3, %v15203_v45, -inf  ;;  %v7227_v33 = vmul.f32 0.17677669, %v6361_v38 }
 0x700   : > { %7262 = vmax.xlane.f32.xlu0 %v7261_v12 }
 0x718   : > { %v6517_v21 = vpop.f32.mrb[94].mxu0 }
 0x719   : > { %v12722_v14 = vpop.f32.mrb[95].mxu0 }
 0x720   : > { %v6673_v53 = vpop.f32.mrb[96].mxu0 }
 0x721   : > { %v15207_v41 = vpop.f32.mrb[86].mxu1  ;;  %v12732_v55 = vpop.f32.mrb[97].mxu0  ;;  %v7231_v38 = vmul.f32 0.17677669, %v6673_v53 }
 0x722   : > { %16377 = vst [vmem:[#allocation16_spill] sm:$0xff] %v15207_v41  ;;  %v12687_v47 = vpop.f32.mrb[87].mxu1 }
 0x723   : > { %v15236_v53 = vadd.f32 %v7231_v38, %v16376_v25 }
 0x725   : > { %v6127_v48 = vpop.f32.mrb[88].mxu1 }
 0x726   : > { %v7224_v57 = vmul.f32 0.17677669, %v6127_v48  ;;  %v12697_v13 = vpop.f32.mrb[89].mxu1  ;;  %v15218_v48 = vadd.f32 %v7227_v33, %v16376_v25 }
 0x727   : > { %v7229_v13 = vmul.f32 0.17677669, %v6517_v21 }
 0x728   : > { %v15210_v36 = vadd.f32 %v7224_v57, %v16376_v25  ;;  %v6829_v31 = vpop.f32.mrb[98].mxu0 }
 0x729   : > { %v6283_v51 = vpop.f32.mrb[90].mxu1  ;;  %v12742_v16 = vpop.f32.mrb[99].mxu0 }
 0x72a   : > { %v7226_v19 = vmul.f32 0.17677669, %v6283_v51  ;;  %v12707_v44 = vpop.f32.mrb[91].mxu1  ;;  %v7258_v12 = vsel %vm1845_vm3, %v15210_v36, -inf }
 0x72b   : > { %7259 = vmax.xlane.f32.xlu1 %v7258_v12 }
 0x72c   : > { %v15215_v14 = vadd.f32 %v7226_v19, %v16376_v25  ;;  %v15226_v19 = vadd.f32 %v7229_v13, %v16376_v25 }
 0x72d   : > { %v6439_v55 = vpop.f32.mrb[92].mxu1 }
 0x72e   : > { %v7228_v57 = vmul.f32 0.17677669, %v6439_v55  ;;  %v12717_v47 = vpop.f32.mrb[93].mxu1  ;;  %v7264_v16 = vsel %vm1845_vm3, %v15215_v14, -inf  ;;  %v7267_v55 = vsel %vm1845_vm3, %v15218_v48, -inf }
 0x72f   : > { %7265 = vmax.xlane.f32.xlu0 %v7264_v16 }
 0x730   : > { %v15223_v44 = vadd.f32 %v7228_v57, %v16376_v25  ;;  %v6985_v51 = vpop.f32.mrb[100].mxu0 }
 0x731   : > { %v6595_v12 = vpop.f32.mrb[94].mxu1  ;;  %v12752_v40 = vpop.f32.mrb[101].mxu0 }
 0x732   : > { %v7230_v41 = vmul.f32 0.17677669, %v6595_v12  ;;  %v12727_v33 = vpop.f32.mrb[95].mxu1  ;;  %v7270_v21 = vsel %vm1845_vm3, %v15223_v44, -inf  ;;  %v7233_v40 = vmul.f32 0.17677669, %v6829_v31 }
 0x733   : > { %7271 = vmax.xlane.f32.xlu1 %v7270_v21  ;;  %7268 = vmax.xlane.f32.xlu0 %v7267_v55  ;;  %v7273_v33 = vsel %vm1845_vm3, %v15226_v19, -inf }
 0x734   : > { %v15233_v57 = vadd.f32 %v7230_v41, %v16376_v25  ;;  %v15246_v55 = vadd.f32 %v7233_v40, %v16376_v25 }
 0x735   : > { %v6751_v47 = vpop.f32.mrb[96].mxu1 }
 0x736   : > { %v7232_v13 = vmul.f32 0.17677669, %v6751_v47  ;;  %v12737_v16 = vpop.f32.mrb[97].mxu1  ;;  %v7276_v12 = vsel %vm1845_vm3, %v15233_v57, -inf  ;;  %v7279_v47 = vsel %vm1845_vm3, %v15236_v53, -inf  ;;  %v7285_v40 = vsel %vm1845_vm3, %v15246_v55, -inf }
 0x737   : > { %7277 = vmax.xlane.f32.xlu1 %v7276_v12  ;;  %7274 = vmax.xlane.f32.xlu0 %v7273_v33  ;;  %v7235_v16 = vmul.f32 0.17677669, %v6985_v51 }
 0x738   : > { %v15243_v21 = vadd.f32 %v7232_v13, %v16376_v25  ;;  %v7141_v41 = vpop.f32.mrb[102].mxu0 }
 0x739   : > { %v6907_v38 = vpop.f32.mrb[98].mxu1  ;;  %v12762_v31 = vpop.f32.mrb[103].mxu0  ;;  %v15258_v33 = vadd.f32 %v7235_v16, %v16376_v25 }
 0x73a   : > { %v7234_v11 = vmul.f32 0.17677669, %v6907_v38  ;;  %v12747_v26 = vpop.f32.mrb[99].mxu1  ;;  %v7282_v28 = vsel %vm1845_vm3, %v15243_v21, -inf  ;;  %v7237_v31 = vmul.f32 0.17677669, %v7141_v41 }
 0x73b   : > { %7283 = vmax.xlane.f32.xlu1 %v7282_v28  ;;  %7280 = vmax.xlane.f32.xlu0 %v7279_v47  ;;  %v7291_v41 = vsel %vm1845_vm3, %v15258_v33, -inf }
 0x73c   : > { %v15253_v13 = vadd.f32 %v7234_v11, %v16376_v25  ;;  %v15266_v38 = vadd.f32 %v7237_v31, %v16376_v25 }
 0x73d   : > { %v7063_v12 = vpop.f32.mrb[100].mxu1 }
 0x73e   : > { %v7236_v59 = vmul.f32 0.17677669, %v7063_v12  ;;  %v12757_v51 = vpop.f32.mrb[101].mxu1  ;;  %v7288_v26 = vsel %vm1845_vm3, %v15253_v13, -inf  ;;  %v15272_v12 = vpop.permute.xlu0 %7583  ;;  %v7297_v31 = vsel %vm1845_vm3, %v15266_v38, -inf }
 0x73f   : > { %7289 = vmax.xlane.f32.xlu1 %v7288_v26  ;;  %7286 = vmax.xlane.f32.xlu0 %v7285_v40 }
 0x740   : > { %v15263_v28 = vadd.f32 %v7236_v59, %v16376_v25 }
 0x741   : > { %v7219_v11 = vpop.f32.mrb[102].mxu1 }
 0x742   : > { %v7238_v47 = vmul.f32 0.17677669, %v7219_v11  ;;  %v12767_v63 = vpop.f32.mrb[103].mxu1  ;;  %v7294_v16 = vsel %vm1845_vm3, %v15263_v28, -inf  ;;  %v16380_v11 = vld [vmem:[#allocation30_spill] sm:$0xff] }
 0x743   : > { %7295 = vmax.xlane.f32.xlu1 %v7294_v16  ;;  %7292 = vmax.xlane.f32.xlu0 %v7291_v41  ;;  %v15281_v63 = vpop.permute.xlu0 %7735 }
 0x744   : > { %v15275_v40 = vadd.f32 %v7238_v47, %v16376_v25  ;;  %v16382_v47 = vld [vmem:[#allocation27_spill] sm:$0xff] }
 0x746   : > { %v7300_v59 = vsel %vm1845_vm3, %v15275_v40, -inf }
 0x747   : > { %7301 = vmax.xlane.f32.xlu1 %v7300_v59  ;;  %7298 = vmax.xlane.f32.xlu0 %v7297_v31  ;;  %v15283_v51 = vpop.permute.xlu0 %8039  ;;  %v15299_v31 = vpop.permute.xlu1 %7811 }
 0x748   : > { %16378 = vst [vmem:[#allocation47_spill] sm:$0xff] %v15283_v51 }
 0x74b   : > { %v15285_v26 = vpop.permute.xlu0 %8191  ;;  %v15303_v24 = vpop.permute.xlu1 %7887 }
 0x74c   : > { %16379 = vst [vmem:[#allocation18_spill] sm:$0xff] %v15285_v26  ;;  %16386 = vst [vmem:[#allocation22_spill] sm:$0xff] %v15303_v24 }
 0x74f   : > { %v15289_v16 = vpop.permute.xlu0 %8343 }
 0x750   : > { %16381 = vst [vmem:[#allocation20_spill] sm:$0xff] %v15289_v16 }
 0x753   : > { %v15293_v41 = vpop.permute.xlu0 %8495 }
 0x754   : > { %16383 = vst [vmem:[#allocation17_spill] sm:$0xff] %v15293_v41 }
 0x757   : > { %v15297_v59 = vpop.permute.xlu0 %8730 }
 0x758   : > { %9276 = vrot.lane.b32.xlu1 %v16380_v11, %s13681_s29  ;;  %16384 = vst [vmem:[#allocation49_spill] sm:$0xff] %v15297_v59  ;;  %v15307_v11 = vpop.permute.xlu1 %7963 }
 0x75b   : > { %v15301_v7 = vpop.permute.xlu0 %8728 }
 0x75c   : > { %16385 = vst [vmem:[#allocation41_spill] sm:$0xff] %v15301_v7  ;;  %v15311_v20 = vpop.permute.xlu1 %8115 }
 0x75d   : > { %9198 = vrot.lane.b32.xlu0 %v16382_v47, %s13681_s29  ;;  %16389 = vst [vmem:[#allocation44_spill] sm:$0xff] %v15311_v20 }
 0x75f   : > { %v15305_v0 = vpop.permute.xlu0 %8886 }
 0x760   : > { %16387 = vst [vmem:[#allocation21_spill] sm:$0xff] %v15305_v0  ;;  %v15315_v18 = vpop.permute.xlu1 %8267 }
 0x761   : > { %16391 = vst [vmem:[#allocation48_spill] sm:$0xff] %v15315_v18 }
 0x763   : > { %v15309_v15 = vpop.permute.xlu0 %8884 }
 0x764   : > { %16388 = vst [vmem:[#allocation43_spill] sm:$0xff] %v15309_v15  ;;  %v15319_v59 = vpop.permute.xlu1 %8419 }
 0x765   : > { %16393 = vst [vmem:[#allocation51_spill] sm:$0xff] %v15319_v59 }
 0x767   : > { %v15313_v47 = vpop.permute.xlu0 %9042 }
 0x768   : > { %16390 = vst [vmem:[#allocation46_spill] sm:$0xff] %v15313_v47  ;;  %v15323_v26 = vpop.permute.xlu1 %8571 }
 0x769   : > { %16394 = vst [vmem:[#allocation52_spill] sm:$0xff] %v15323_v26 }
 0x76b   : > { %v15317_v23 = vpop.permute.xlu0 %9040 }
 0x76c   : > { %16392 = vst [vmem:[#allocation50_spill] sm:$0xff] %v15317_v23  ;;  %v15325_v51 = vpop.permute.xlu1 %8808 }
 0x76d   : > { %16395 = vst [vmem:[#allocation53_spill] sm:$0xff] %v15325_v51 }
 0x789   : > { %v7257_v25 = vpop.xlane.xlu0 %7256 }
 0x78a   : > { %v7303_v7 = vsub.f32 %v15198_v27, %v7257_v25  ;;  %v15333_v25 = vpop.permute.xlu1 %8806 }
 0x78b   : > { %16396 = vst [vmem:[#allocation30_spill] sm:$0xff] %v15333_v25 }
 0x78c   : > { %v7319_v41 = vmul.f32 1.442695, %v7303_v7 }
 0x78d   : > { %v7263_v16 = vpop.xlane.xlu0 %7262 }
 0x78e   : > { %13383 = vpow2.f32 %v7319_v41  ;;  %v7305_v0 = vsub.f32 %v15203_v45, %v7263_v16  ;;  %v15337_v27 = vpop.permute.xlu1 %8964 }
 0x78f   : > { %16397 = vst [vmem:[#allocation27_spill] sm:$0xff] %v15337_v27 }
 0x790   : > { %v7323_v15 = vmul.f32 1.442695, %v7305_v0 }
 0x792   : > { %13385 = vpow2.f32 %v7323_v15  ;;  %v15339_v0 = vpop.permute.xlu1 %8962 }
 0x793   : > { %16398 = vst [vmem:[#allocation54_spill] sm:$0xff] %v15339_v0 }
 0x796   : > { %v15341_v15 = vpop.permute.xlu1 %9120 }
 0x797   : > { %16399 = vst [vmem:[#allocation55_spill] sm:$0xff] %v15341_v15 }
 0x798   : > { %v15327_v47 = vpop.eup %13383 }
 0x799   : > { %v7351_v23 = vsel %vm1845_vm3, %v15327_v47, 0.0 }
 0x79a   : > { %7352 = vadd.xlane.f32.xlu0 %v7351_v23  ;;  %v15343_v45 = vpop.permute.xlu1 %9118 }
 0x79b   : > { %16400 = vst [vmem:[#allocation56_spill] sm:$0xff] %v15343_v45 }
 0x79c   : > { %v15331_v59 = vpop.eup %13385 }
 0x79d   : > { %v7357_v7 = vsel %vm1845_vm3, %v15331_v59, 0.0 }
 0x79e   : > { %7358 = vadd.xlane.f32.xlu0 %v7357_v7 }
 0x7b8   : > { %v7260_v16 = vpop.xlane.xlu1 %7259 }
 0x7b9   : > { %v7304_v41 = vsub.f32 %v15210_v36, %v7260_v16 }
 0x7bb   : > { %v7321_v23 = vmul.f32 1.442695, %v7304_v41 }
 0x7bc   : > { %v7266_v51 = vpop.xlane.xlu0 %7265 }
 0x7bd   : > { %13387 = vpow2.f32 %v7321_v23  ;;  %v7306_v25 = vsub.f32 %v15215_v14, %v7266_v51 }
 0x7bf   : > { %v7325_v26 = vmul.f32 1.442695, %v7306_v25 }
 0x7c0   : > { %v7272_v18 = vpop.xlane.xlu1 %7271  ;;  %v7269_v20 = vpop.xlane.xlu0 %7268 }
 0x7c1   : > { %13389 = vpow2.f32 %v7325_v26  ;;  %v7308_v7 = vsub.f32 %v15223_v44, %v7272_v18  ;;  %v7307_v0 = vsub.f32 %v15218_v48, %v7269_v20 }
 0x7c3   : > { %v7329_v27 = vmul.f32 1.442695, %v7308_v7  ;;  %v7327_v15 = vmul.f32 1.442695, %v7307_v0 }
 0x7c4   : > { %v7278_v24 = vpop.xlane.xlu1 %7277  ;;  %v7275_v45 = vpop.xlane.xlu0 %7274 }
 0x7c5   : > { %13391 = vpow2.f32 %v7329_v27  ;;  %v7310_v36 = vsub.f32 %v15233_v57, %v7278_v24  ;;  %v7309_v16 = vsub.f32 %v15226_v19, %v7275_v45 }
 0x7c6   : > { %13393 = vpow2.f32 %v7327_v15 }
 0x7c7   : > { %v15351_v41 = vpop.eup %13387  ;;  %v7333_v14 = vmul.f32 1.442695, %v7310_v36  ;;  %v7331_v51 = vmul.f32 1.442695, %v7309_v16 }
 0x7c8   : > { %v7284_v25 = vpop.xlane.xlu1 %7283  ;;  %v7281_v26 = vpop.xlane.xlu0 %7280  ;;  %v7354_v18 = vsel %vm1845_vm3, %v15351_v41, 0.0 }
 0x7c9   : > { %13395 = vpow2.f32 %v7333_v14  ;;  %v7312_v20 = vsub.f32 %v15243_v21, %v7284_v25  ;;  %v7311_v48 = vsub.f32 %v15236_v53, %v7281_v26  ;;  %7355 = vadd.xlane.f32.xlu1 %v7354_v18 }
 0x7ca   : > { %13397 = vpow2.f32 %v7331_v51 }
 0x7cb   : > { %v15357_v24 = vpop.eup %13389  ;;  %v7337_v44 = vmul.f32 1.442695, %v7312_v20  ;;  %v7335_v19 = vmul.f32 1.442695, %v7311_v48 }
 0x7cc   : > { %v7290_v57 = vpop.xlane.xlu1 %7289  ;;  %v7287_v27 = vpop.xlane.xlu0 %7286  ;;  %v7360_v0 = vsel %vm1845_vm3, %v15357_v24, 0.0 }
 0x7cd   : > { %13399 = vpow2.f32 %v7337_v44  ;;  %v7314_v15 = vsub.f32 %v15253_v13, %v7290_v57  ;;  %v7313_v45 = vsub.f32 %v15246_v55, %v7287_v27  ;;  %7361 = vadd.xlane.f32.xlu1 %v7360_v0 }
 0x7ce   : > { %13401 = vpow2.f32 %v7335_v19 }
 0x7cf   : > { %v15363_v21 = vpop.eup %13391  ;;  %v7341_v53 = vmul.f32 1.442695, %v7314_v15  ;;  %v7339_v23 = vmul.f32 1.442695, %v7313_v45 }
 0x7d0   : > { %v15365_v7 = vpop.eup %13393  ;;  %v7293_v36 = vpop.xlane.xlu0 %7292  ;;  %v7366_v16 = vsel %vm1845_vm3, %v15363_v21, 0.0 }
 0x7d1   : > { %13403 = vpow2.f32 %v7341_v53  ;;  %v7315_v14 = vsub.f32 %v15258_v33, %v7293_v36  ;;  %7367 = vadd.xlane.f32.xlu1 %v7366_v16  ;;  %v7363_v13 = vsel %vm1845_vm3, %v15365_v7, 0.0  ;;  %v7296_v53 = vpop.xlane.xlu1 %7295 }
 0x7d2   : > { %13405 = vpow2.f32 %v7339_v23  ;;  %7364 = vadd.xlane.f32.xlu0 %v7363_v13  ;;  %v7316_v23 = vsub.f32 %v15263_v28, %v7296_v53 }
 0x7d3   : > { %v15372_v55 = vpop.eup %13395  ;;  %v7343_v51 = vmul.f32 1.442695, %v7315_v14 }
 0x7d4   : > { %v15374_v25 = vpop.eup %13397  ;;  %v7372_v26 = vsel %vm1845_vm3, %v15372_v55, 0.0  ;;  %v7299_v36 = vpop.xlane.xlu0 %7298  ;;  %v7345_v14 = vmul.f32 1.442695, %v7316_v23  ;;  %v16407_v23 = vld [vmem:[#allocation20_spill] sm:$0xff] }
 0x7d5   : > { %7373 = vadd.xlane.f32.xlu1 %v7372_v26  ;;  %v7369_v18 = vsel %vm1845_vm3, %v15374_v25, 0.0  ;;  %13407 = vpow2.f32 %v7343_v51  ;;  %v7302_v16 = vpop.xlane.xlu1 %7301  ;;  %v7317_v13 = vsub.f32 %v15266_v38, %v7299_v36 }
 0x7d6   : > { %7370 = vadd.xlane.f32.xlu0 %v7369_v18  ;;  %v7318_v51 = vsub.f32 %v15275_v40, %v7302_v16  ;;  %13409 = vpow2.f32 %v7345_v14 }
 0x7d7   : > { %v15380_v33 = vpop.eup %13399  ;;  %v7347_v26 = vmul.f32 1.442695, %v7317_v13 }
 0x7d8   : > { %v15382_v20 = vpop.eup %13401  ;;  %v7378_v48 = vsel %vm1845_vm3, %v15380_v33, 0.0  ;;  %v7349_v18 = vmul.f32 1.442695, %v7318_v51 }
 0x7d9   : > { %7379 = vadd.xlane.f32.xlu1 %v7378_v48  ;;  %v7375_v44 = vsel %vm1845_vm3, %v15382_v20, 0.0  ;;  %13411 = vpow2.f32 %v7347_v26 }
 0x7da   : > { %7376 = vadd.xlane.f32.xlu0 %v7375_v44  ;;  %13413 = vpow2.f32 %v7349_v18  ;;  %v15419_v44 = vpop.permute.xlu0 %9198 }
 0x7db   : > { %v15388_v19 = vpop.eup %13403 }
 0x7dc   : > { %v15390_v57 = vpop.eup %13405  ;;  %v7384_v27 = vsel %vm1845_vm3, %v15388_v19, 0.0 }
 0x7dd   : > { %7385 = vadd.xlane.f32.xlu1 %v7384_v27  ;;  %v7381_v0 = vsel %vm1845_vm3, %v15390_v57, 0.0 }
 0x7de   : > { %7382 = vadd.xlane.f32.xlu0 %v7381_v0 }
 0x7df   : > { %v15396_v15 = vpop.eup %13407 }
 0x7e0   : > { %v7387_v45 = vsel %vm1845_vm3, %v15396_v15, 0.0  ;;  %v15407_v48 = vpop.eup %13409 }
 0x7e2   : > { %7388 = vadd.xlane.f32.xlu0 %v7387_v45 }
 0x7ee   : > { %9274 = vrot.lane.b32.xlu1 %v14040_v46, %s13681_s29  ;;  %v7390_v46 = vsel %vm1845_vm3, %v15407_v48, 0.0 }
 0x7f8   : > { %9196 = vrot.lane.b32.xlu0 %v14025_v42, %s13681_s29  ;;  %v15411_v42 = vpop.eup %13411 }
 0x7f9   : > { %v15413_v28 = vpop.eup %13413  ;;  %v7393_v38 = vsel %vm1845_vm3, %v15411_v42, 0.0 }
 0x7fa   : > { %v7396_v40 = vsel %vm1845_vm3, %v15413_v28, 0.0 }
 0x812   : > { %7391 = vadd.xlane.f32.xlu1 %v7390_v46 }
 0x816   : > { %7394 = vadd.xlane.f32.xlu1 %v7393_v38 }
 0x817   : > { %7397 = vadd.xlane.f32.xlu0 %v7396_v40 }
 0x827   : > { %v7353_v27 = vpop.xlane.xlu0 %7352  ;;  %9432 = vrot.lane.b32.xlu1 %v14074_v56, %s13681_s29 }
 0x828   : > { %13415 = vrcp.f32 %v7353_v27 }
 0x82b   : > { %v7359_v0 = vpop.xlane.xlu0 %7358  ;;  %9430 = vrot.lane.b32.xlu1 %v14070_v54, %s13681_s29 }
 0x82c   : > { %13417 = vrcp.f32 %v7359_v0  ;;  %v16409_v0 = vld [vmem:[#allocation52_spill] sm:$0xff] }
 0x82d   : > { %9354 = vrot.lane.b32.xlu0 %v14061_v52, %s13681_s29  ;;  %v15475_v52 = vpop.permute.xlu1 %9276 }
 0x82f   : > { %9588 = vrot.lane.b32.xlu1 %v14104_v1, %s13681_s29 }
 0x831   : > { %9352 = vrot.lane.b32.xlu0 %v14055_v50, %s13681_s29 }
 0x832   : > { %v13416_v45 = vpop.eup %13415 }
 0x833   : > { %v7415_v53 = vmul.f32 %v13416_v45, %v15327_v47  ;;  %9586 = vrot.lane.b32.xlu1 %v14100_v62, %s13681_s29 }
 0x835   : > { %12771 = vmatmul.mubr.msk.f32.vlgmr.msra.gmra.mrb[104].mxu0 %vm1845_vm3, %v7415_v53  ;;  %9510 = vrot.lane.b32.xlu0 %v14091_v60, %s13681_s29 }
 0x836   : > { %v13418_v54 = vpop.eup %13417  ;;  %12779 = vmatpush3.msra.mxu0 %v15272_v12  ;;  %12780 = vmatprep.mubr.msk.f32.mxu0 %vm13677_vm0, %v16284_v29 }
 0x837   : > { %12788 = vmatprep.subr.mxu0 %v16284_v29  ;;  %v7417_v50 = vmul.f32 %v13418_v54, %v15331_v59  ;;  %9744 = vrot.lane.b32.xlu1 %v14128_v6, %s13681_s29 }
 0x839   : > { %12781 = vmatmul.mubr.msk.f32.vlgmr.msra.gmra.mrb[106].mxu0 %vm1845_vm3, %v7417_v50  ;;  %9508 = vrot.lane.b32.xlu0 %v14085_v58, %s13681_s29 }
 0x83a   : > { %12789 = vmatpush3.msra.mxu0 %v15281_v63  ;;  %12790 = vmatprep.mubr.msk.f32.mxu0 %vm13677_vm0, %v16284_v29  ;;  %v16402_v63 = vld [vmem:[#allocation44_spill] sm:$0xff] }
 0x83b   : > { %9742 = vrot.lane.b32.xlu1 %v14126_v5, %s13681_s29  ;;  %12798 = vmatprep.subr.mxu0 %v16284_v29 }
 0x83d   : > { %9666 = vrot.lane.b32.xlu0 %v14119_v4, %s13681_s29 }
 0x83f   : > { %9900 = vrot.lane.b32.xlu1 %v14152_v10, %s13681_s29 }
 0x841   : > { %9664 = vrot.lane.b32.xlu0 %v14115_v3, %s13681_s29 }
 0x843   : > { %9898 = vrot.lane.b32.xlu1 %v14148_v9, %s13681_s29 }
 0x845   : > { %9822 = vrot.lane.b32.xlu0 %v14141_v8, %s13681_s29 }
 0x847   : > { %10260 = vrot.lane.b32.xlu1 %v13995_v35, %s13681_s29 }
 0x849   : > { %9820 = vrot.lane.b32.xlu0 %v16326_v61, %s13681_s29 }
 0x84b   : > { %10412 = vrot.lane.b32.xlu1 %v14012_v39, %s13681_s29 }
 0x84d   : > { %10184 = vrot.lane.b32.xlu0 %v16328_v34, %s13681_s29 }
 0x84f   : > { %10488 = vrot.lane.b32.xlu1 %v16330_v2, %s13681_s29 }
 0x851   : > { %10336 = vrot.lane.b32.xlu0 %v16329_v17, %s13681_s29  ;;  %v16401_v17 = vld [vmem:[#allocation22_spill] sm:$0xff] }
 0x853   : > { %10564 = vrot.lane.b32.xlu1 %v14027_v43, %s13681_s29 }
 0x855   : > { %10640 = vrot.lane.b32.xlu0 %v14048_v49, %s13681_s29 }
 0x856   : > { %v7356_v35 = vpop.xlane.xlu1 %7355 }
 0x857   : > { %13419 = vrcp.f32 %v7356_v35  ;;  %10716 = vrot.lane.b32.xlu1 %v16286_v30, %s13681_s29 }
 0x859   : > { %10792 = vrot.lane.b32.xlu0 %v16331_v22, %s13681_s29 }
 0x85a   : > { %v7362_v39 = vpop.xlane.xlu1 %7361 }
 0x85b   : > { %13421 = vrcp.f32 %v7362_v39  ;;  %10868 = vrot.lane.b32.xlu1 %v16288_v32, %s13681_s29 }
 0x85e   : > { %v7368_v56 = vpop.xlane.xlu1 %7367 }
 0x85f   : > { %13423 = vrcp.f32 %v7368_v56  ;;  %v7365_v58 = vpop.xlane.xlu0 %7364 }
 0x860   : > { %13425 = vrcp.f32 %v7365_v58  ;;  %v16413_v58 = vld [vmem:[#allocation21_spill] sm:$0xff] }
 0x861   : > { %v13420_v43 = vpop.eup %13419 }
 0x862   : > { %v7374_v60 = vpop.xlane.xlu1 %7373  ;;  %v7416_v49 = vmul.f32 %v13420_v43, %v15351_v41  ;;  %v16414_v43 = vld [vmem:[#allocation30_spill] sm:$0xff] }
 0x863   : > { %13427 = vrcp.f32 %v7374_v60  ;;  %v7371_v62 = vpop.xlane.xlu0 %7370 }
 0x864   : > { %13429 = vrcp.f32 %v7371_v62  ;;  %12776 = vmatmul.mubr.msk.f32.vlgmr.msra.gmra.mrb[104].mxu1 %vm1845_vm3, %v7416_v49  ;;  %v16415_v49 = vld [vmem:[#allocation27_spill] sm:$0xff] }
 0x865   : > { %v13422_v1 = vpop.eup %13421  ;;  %12784 = vmatpush3.msra.mxu1 %v15295_v37  ;;  %12785 = vmatprep.mubr.msk.f32.mxu1 %vm13677_vm0, %v16284_v29  ;;  %v16416_v62 = vld [vmem:[#allocation43_spill] sm:$0xff] }
 0x866   : > { %v7380_v3 = vpop.xlane.xlu1 %7379  ;;  %12793 = vmatprep.subr.mxu1 %v16284_v29  ;;  %v7418_v4 = vmul.f32 %v13422_v1, %v15357_v24  ;;  %v16404_v24 = vld [vmem:[#allocation48_spill] sm:$0xff]  ;;  %v16417_v1 = vld [vmem:[#allocation46_spill] sm:$0xff] }
 0x867   : > { %13431 = vrcp.f32 %v7380_v3  ;;  %v7377_v5 = vpop.xlane.xlu0 %7376 }
 0x868   : > { %13433 = vrcp.f32 %v7377_v5  ;;  %12786 = vmatmul.mubr.msk.f32.vlgmr.msra.gmra.mrb[106].mxu1 %vm1845_vm3, %v7418_v4  ;;  %v16418_v4 = vld [vmem:[#allocation54_spill] sm:$0xff]  ;;  %v16419_v5 = vld [vmem:[#allocation55_spill] sm:$0xff] }
 0x869   : > { %v13424_v6 = vpop.eup %13423  ;;  %12794 = vmatpush3.msra.mxu1 %v15299_v31  ;;  %12795 = vmatprep.mubr.msk.f32.mxu1 %vm13677_vm0, %v16284_v29  ;;  %v16403_v31 = vld [vmem:[#allocation47_spill] sm:$0xff] }
 0x86a   : > { %v13426_v8 = vpop.eup %13425  ;;  %v7386_v9 = vpop.xlane.xlu1 %7385  ;;  %12803 = vmatprep.subr.mxu1 %v16284_v29  ;;  %v7420_v10 = vmul.f32 %v13424_v6, %v15363_v21  ;;  %v16420_v6 = vld [vmem:[#allocation50_spill] sm:$0xff] }
 0x86b   : > { %13435 = vrcp.f32 %v7386_v9  ;;  %v7383_v30 = vpop.xlane.xlu0 %7382  ;;  %v7419_v32 = vmul.f32 %v13426_v8, %v15365_v7  ;;  %v16405_v7 = vld [vmem:[#allocation18_spill] sm:$0xff]  ;;  %v16421_v9 = vld [vmem:[#allocation56_spill] sm:$0xff] }
 0x86c   : > { %13437 = vrcp.f32 %v7383_v30  ;;  %12796 = vmatmul.mubr.msk.f32.vlgmr.msra.gmra.mrb[108].mxu1 %vm1845_vm3, %v7420_v10 }
 0x86d   : > { %v13428_v61 = vpop.eup %13427  ;;  %12791 = vmatmul.mubr.msk.f32.vlgmr.msra.gmra.mrb[108].mxu0 %vm1845_vm3, %v7419_v32  ;;  %12804 = vmatpush3.msra.mxu1 %v15307_v11 }
 0x86e   : > { %v13430_v34 = vpop.eup %13429  ;;  %12799 = vmatpush3.msra.mxu0 %v16401_v17  ;;  %12800 = vmatprep.mubr.msk.f32.mxu0 %vm13677_vm0, %v16284_v29  ;;  %v7422_v2 = vmul.f32 %v13428_v61, %v15372_v55  ;;  %v15553_v36 = vpop.permute.xlu1 %9274 }
 0x86f   : > { %v7389_v22 = vpop.xlane.xlu0 %7388  ;;  %12805 = vmatprep.mubr.msk.f32.mxu1 %vm13677_vm0, %v16284_v29  ;;  %12808 = vmatprep.subr.mxu0 %v16284_v29  ;;  %v7421_v37 = vmul.f32 %v13430_v34, %v15374_v25 }
 0x870   : > { %13439 = vrcp.f32 %v7389_v22  ;;  %12813 = vmatprep.subr.mxu1 %v16284_v29  ;;  %12806 = vmatmul.mubr.msk.f32.vlgmr.msra.gmra.mrb[110].mxu1 %vm1845_vm3, %v7422_v2 }
 0x871   : > { %v13432_v12 = vpop.eup %13431  ;;  %12801 = vmatmul.mubr.msk.f32.vlgmr.msra.gmra.mrb[110].mxu0 %vm1845_vm3, %v7421_v37  ;;  %12814 = vmatpush3.msra.mxu1 %v16402_v63 }
 0x872   : > { %v13434_v59 = vpop.eup %13433  ;;  %12809 = vmatpush3.msra.mxu0 %v16403_v31  ;;  %12810 = vmatprep.mubr.msk.f32.mxu0 %vm13677_vm0, %v16284_v29  ;;  %v7424_v11 = vmul.f32 %v13432_v12, %v15380_v33  ;;  %v16406_v33 = vld [vmem:[#allocation51_spill] sm:$0xff] }
 0x873   : > { %12815 = vmatprep.mubr.msk.f32.mxu1 %vm13677_vm0, %v16284_v29  ;;  %12818 = vmatprep.subr.mxu0 %v16284_v29  ;;  %v7423_v47 = vmul.f32 %v13434_v59, %v15382_v20  ;;  %v9197_v14 = vpop.permute.xlu0 %9196 }
 0x874   : > { %12823 = vmatprep.subr.mxu1 %v16284_v29  ;;  %12816 = vmatmul.mubr.msk.f32.vlgmr.msra.gmra.mrb[112].mxu1 %vm1845_vm3, %v7424_v11 }
 0x875   : > { %v13436_v41 = vpop.eup %13435  ;;  %12811 = vmatmul.mubr.msk.f32.vlgmr.msra.gmra.mrb[112].mxu0 %vm1845_vm3, %v7423_v47  ;;  %12824 = vmatpush3.msra.mxu1 %v16404_v24 }
 0x876   : > { %v13438_v21 = vpop.eup %13437  ;;  %12819 = vmatpush3.msra.mxu0 %v16405_v7  ;;  %12820 = vmatprep.mubr.msk.f32.mxu0 %vm13677_vm0, %v16284_v29  ;;  %v7426_v55 = vmul.f32 %v13436_v41, %v15388_v19 }
 0x877   : > { %12825 = vmatprep.mubr.msk.f32.mxu1 %vm13677_vm0, %v16284_v29  ;;  %12828 = vmatprep.subr.mxu0 %v16284_v29  ;;  %v7425_v25 = vmul.f32 %v13438_v21, %v15390_v57  ;;  %v16408_v57 = vld [vmem:[#allocation17_spill] sm:$0xff] }
 0x878   : > { %12833 = vmatprep.subr.mxu1 %v16284_v29  ;;  %12826 = vmatmul.mubr.msk.f32.vlgmr.msra.gmra.mrb[114].mxu1 %vm1845_vm3, %v7426_v55 }
 0x879   : > { %12821 = vmatmul.mubr.msk.f32.vlgmr.msra.gmra.mrb[114].mxu0 %vm1845_vm3, %v7425_v25  ;;  %12834 = vmatpush3.msra.mxu1 %v16406_v33 }
 0x87a   : > { %v13440_v20 = vpop.eup %13439  ;;  %12829 = vmatpush3.msra.mxu0 %v16407_v23  ;;  %12830 = vmatprep.mubr.msk.f32.mxu0 %vm13677_vm0, %v16284_v29 }
 0x87b   : > { %12838 = vmatprep.subr.mxu0 %v16284_v29  ;;  %v7427_v19 = vmul.f32 %v13440_v20, %v15396_v15  ;;  %12835 = vmatprep.mubr.msk.f32.mxu1 %vm13677_vm0, %v16284_v29 }
 0x87c   : > { %12843 = vmatprep.subr.mxu1 %v16284_v29 }
 0x87d   : > { %12831 = vmatmul.mubr.msk.f32.vlgmr.msra.gmra.mrb[116].mxu0 %vm1845_vm3, %v7427_v19 }
 0x87e   : > { %12839 = vmatpush3.msra.mxu0 %v16408_v57  ;;  %12840 = vmatprep.mubr.msk.f32.mxu0 %vm13677_vm0, %v16284_v29 }
 0x87f   : > { %12848 = vmatprep.subr.mxu0 %v16284_v29 }
 0x89f   : > { %v7392_v16 = vpop.xlane.xlu1 %7391 }
 0x8a0   : > { %13441 = vrcp.f32 %v7392_v16 }
 0x8a3   : > { %v7395_v15 = vpop.xlane.xlu1 %7394 }
 0x8a4   : > { %13443 = vrcp.f32 %v7395_v15  ;;  %v7398_v13 = vpop.xlane.xlu0 %7397 }
 0x8a5   : > { %13445 = vrcp.f32 %v7398_v13 }
 0x8a7   : > { %v9433_v51 = vpop.permute.xlu1 %9432 }
 0x8a8   : > { %v9355_v26 = vpop.permute.xlu0 %9354 }
 0x8aa   : > { %v13442_v18 = vpop.eup %13441 }
 0x8ab   : > { %v15555_v46 = vpop.permute.xlu1 %9430  ;;  %v7428_v38 = vmul.f32 %v13442_v18, %v15407_v48  ;;  %v16410_v48 = vld [vmem:[#allocation49_spill] sm:$0xff] }
 0x8ac   : > { %v9353_v40 = vpop.permute.xlu0 %9352 }
 0x8ad   : > { %12836 = vmatmul.mubr.msk.f32.vlgmr.msra.gmra.mrb[116].mxu1 %vm1845_vm3, %v7428_v38 }
 0x8ae   : > { %v13444_v27 = vpop.eup %13443  ;;  %12844 = vmatpush3.msra.mxu1 %v16409_v0  ;;  %12845 = vmatprep.mubr.msk.f32.mxu1 %vm13677_vm0, %v16284_v29 }
 0x8af   : > { %v13446_v45 = vpop.eup %13445  ;;  %v7429_v53 = vmul.f32 %v13444_v27, %v15411_v42  ;;  %12853 = vmatprep.subr.mxu1 %v16284_v29  ;;  %v9589_v54 = vpop.permute.xlu1 %9588  ;;  %v16411_v42 = vld [vmem:[#allocation53_spill] sm:$0xff] }
 0x8b0   : > { %v9511_v50 = vpop.permute.xlu0 %9510  ;;  %v7430_v35 = vmul.f32 %v13446_v45, %v15413_v28  ;;  %v16412_v28 = vld [vmem:[#allocation41_spill] sm:$0xff] }
 0x8b1   : > { %12841 = vmatmul.mubr.msk.f32.vlgmr.msra.gmra.mrb[118].mxu0 %vm1845_vm3, %v7429_v53  ;;  %v16422_v53 = vld [vmem:[#allocation40_spill] sm:$0xff] }
 0x8b2   : > { %12846 = vmatmul.mubr.msk.f32.vlgmr.msra.gmra.mrb[118].mxu1 %vm1845_vm3, %v7430_v35  ;;  %12849 = vmatpush3.xpose.msk.msra.mxu0 %vm596_vm1, %v16410_v48 }
 0x8b3   : > { %12850 = vmatprep.mubr.msk.f32.mxu0 %vm13677_vm0, %v16284_v29  ;;  %12858 = vmatprep.subr.mxu0 %v16284_v29  ;;  %v9587_v56 = vpop.permute.xlu1 %9586 }
 0x8b4   : > { %v9509_v39 = vpop.permute.xlu0 %9508  ;;  %12855 = vmatprep.mubr.msk.f32.mxu1 %vm13677_vm0, %v16284_v29 }
 0x8b5   : > { %12854 = vmatpush3.xpose.msk.msra.mxu1 %vm596_vm1, %v16411_v42  ;;  %12851 = vmatmul.mubr.msk.f32.vlgmr.msra.gmra.mrb[120].mxu0 %vm596_vm1, %v16412_v28 }
 0x8b6   : > { %12859 = vmatpush3.xpose.msk.msra.mxu0 %vm596_vm1, %v16413_v58  ;;  %12863 = vmatprep.subr.mxu1 %v16284_v29 }
 0x8b7   : > { %12860 = vmatprep.mubr.msk.f32.mxu0 %vm13677_vm0, %v16284_v29  ;;  %12868 = vmatprep.subr.mxu0 %v16284_v29  ;;  %v9745_v3 = vpop.permute.xlu1 %9744 }
 0x8b8   : > { %12856 = vmatmul.mubr.msk.f32.vlgmr.msra.gmra.mrb[120].mxu1 %vm596_vm1, %v16414_v43  ;;  %v9667_v60 = vpop.permute.xlu0 %9666 }
 0x8b9   : > { %12864 = vmatpush3.xpose.msk.msra.mxu1 %vm596_vm1, %v16415_v49  ;;  %12861 = vmatmul.mubr.msk.f32.vlgmr.msra.gmra.mrb[122].mxu0 %vm596_vm1, %v16416_v62 }
 0x8ba   : > { %12869 = vmatpush3.xpose.msk.msra.mxu0 %vm596_vm1, %v16417_v1  ;;  %12865 = vmatprep.mubr.msk.f32.mxu1 %vm13677_vm0, %v16284_v29 }
 0x8bb   : > { %12873 = vmatprep.subr.mxu1 %v16284_v29  ;;  %12870 = vmatprep.mubr.msk.f32.mxu0 %vm13677_vm0, %v16284_v29 }
 0x8bc   : > { %12866 = vmatmul.mubr.msk.f32.vlgmr.msra.gmra.mrb[122].mxu1 %vm596_vm1, %v16418_v4  ;;  %12878 = vmatprep.subr.mxu0 %v16284_v29  ;;  %v9665_v8 = vpop.permute.xlu0 %9664 }
 0x8bd   : > { %12874 = vmatpush3.xpose.msk.msra.mxu1 %vm596_vm1, %v16419_v5  ;;  %12871 = vmatmul.mubr.msk.f32.vlgmr.msra.gmra.mrb[124].mxu0 %vm596_vm1, %v16420_v6 }
 0x8be   : > { %12879 = vmatpush3.xpose.msk.msra.mxu0 %vm596_vm1, %v15419_v44  ;;  %12875 = vmatprep.mubr.msk.f32.mxu1 %vm13677_vm0, %v16284_v29  ;;  %v9743_v44 = vpop.permute.xlu1 %9742 }
 0x8bf   : > { %12883 = vmatprep.subr.mxu1 %v16284_v29  ;;  %12880 = vmatprep.mubr.msk.f32.mxu0 %vm13677_vm0, %v16284_v29 }
 0x8c0   : > { %12876 = vmatmul.mubr.msk.f32.vlgmr.msra.gmra.mrb[124].mxu1 %vm596_vm1, %v16421_v9  ;;  %12888 = vmatprep.subr.mxu0 %v16284_v29  ;;  %v9823_v10 = vpop.permute.xlu0 %9822 }
 0x8c1   : > { %12884 = vmatpush3.xpose.msk.msra.mxu1 %vm596_vm1, %v15475_v52  ;;  %12881 = vmatmul.mubr.msk.f32.vlgmr.msra.gmra.mrb[126].mxu0 %vm596_vm1, %v9197_v14 }
 0x8c2   : > { %12889 = vmatpush3.xpose.msk.msra.mxu0 %vm596_vm1, %v9355_v26  ;;  %12885 = vmatprep.mubr.msk.f32.mxu1 %vm13677_vm0, %v16284_v29  ;;  %v9901_v52 = vpop.permute.xlu1 %9900 }
 0x8c3   : > { %12893 = vmatprep.subr.mxu1 %v16284_v29  ;;  %12890 = vmatprep.mubr.msk.f32.mxu0 %vm13677_vm0, %v16284_v29 }
 0x8c4   : > { %12886 = vmatmul.mubr.msk.f32.vlgmr.msra.gmra.mrb[126].mxu1 %vm596_vm1, %v15553_v36  ;;  %12898 = vmatprep.subr.mxu0 %v16284_v29  ;;  %v9821_v30 = vpop.permute.xlu0 %9820 }
 0x8c5   : > { %12894 = vmatpush3.xpose.msk.msra.mxu1 %vm596_vm1, %v9433_v51  ;;  %12891 = vmatmul.mubr.msk.f32.vlgmr.msra.gmra.mrb[128].mxu0 %vm596_vm1, %v9353_v40 }
 0x8c6   : > { %12899 = vmatpush3.xpose.msk.msra.mxu0 %vm596_vm1, %v9511_v50  ;;  %12895 = vmatprep.mubr.msk.f32.mxu1 %vm13677_vm0, %v16284_v29  ;;  %v9899_v32 = vpop.permute.xlu1 %9898 }
 0x8c7   : > { %12903 = vmatprep.subr.mxu1 %v16284_v29  ;;  %12900 = vmatprep.mubr.msk.f32.mxu0 %vm13677_vm0, %v16284_v29 }
 0x8c8   : > { %12896 = vmatmul.mubr.msk.f32.vlgmr.msra.gmra.mrb[128].mxu1 %vm596_vm1, %v15555_v46  ;;  %12908 = vmatprep.subr.mxu0 %v16284_v29  ;;  %v10185_v61 = vpop.permute.xlu0 %10184 }
 0x8c9   : > { %12904 = vmatpush3.xpose.msk.msra.mxu1 %vm596_vm1, %v9589_v54  ;;  %12901 = vmatmul.mubr.msk.f32.vlgmr.msra.gmra.mrb[130].mxu0 %vm596_vm1, %v9509_v39 }
 0x8ca   : > { %12909 = vmatpush3.xpose.msk.msra.mxu0 %vm596_vm1, %v9667_v60  ;;  %12905 = vmatprep.mubr.msk.f32.mxu1 %vm13677_vm0, %v16284_v29  ;;  %v10261_v34 = vpop.permute.xlu1 %10260 }
 0x8cb   : > { %12913 = vmatprep.subr.mxu1 %v16284_v29  ;;  %12910 = vmatprep.mubr.msk.f32.mxu0 %vm13677_vm0, %v16284_v29 }
 0x8cc   : > { %12906 = vmatmul.mubr.msk.f32.vlgmr.msra.gmra.mrb[130].mxu1 %vm596_vm1, %v9587_v56  ;;  %12918 = vmatprep.subr.mxu0 %v16284_v29 }
 0x8cd   : > { %12914 = vmatpush3.xpose.msk.msra.mxu1 %vm596_vm1, %v9745_v3  ;;  %12911 = vmatmul.mubr.msk.f32.vlgmr.msra.gmra.mrb[132].mxu0 %vm596_vm1, %v9665_v8 }
 0x8ce   : > { %12919 = vmatpush3.xpose.msk.msra.mxu0 %vm596_vm1, %v9823_v10  ;;  %12915 = vmatprep.mubr.msk.f32.mxu1 %vm13677_vm0, %v16284_v29 }
 0x8cf   : > { %12923 = vmatprep.subr.mxu1 %v16284_v29  ;;  %12920 = vmatprep.mubr.msk.f32.mxu0 %vm13677_vm0, %v16284_v29 }
 0x8d0   : > { %12916 = vmatmul.mubr.msk.f32.vlgmr.msra.gmra.mrb[132].mxu1 %vm596_vm1, %v9743_v44  ;;  %12928 = vmatprep.subr.mxu0 %v16284_v29 }
 0x8d1   : > { %12924 = vmatpush3.xpose.msk.msra.mxu1 %vm596_vm1, %v9901_v52  ;;  %12921 = vmatmul.mubr.msk.f32.vlgmr.msra.gmra.mrb[134].mxu0 %vm596_vm1, %v9821_v30 }
 0x8d2   : > { %12929 = vmatpush3.msra.mxu0 %v10185_v61  ;;  %12925 = vmatprep.mubr.msk.f32.mxu1 %vm13677_vm0, %v16284_v29 }
 0x8d3   : > { %12933 = vmatprep.subr.mxu1 %v16284_v29  ;;  %12930 = vmatprep.mubr.msk.f32.mxu0 %vm13677_vm0, %v16284_v29 }
 0x8d4   : > { %12926 = vmatmul.mubr.msk.f32.vlgmr.msra.gmra.mrb[134].mxu1 %vm596_vm1, %v9899_v32  ;;  %12938 = vmatprep.subr.mxu0 %v16284_v29 }
 0x8d5   : > { %12934 = vmatpush3.msra.mxu1 %v10261_v34  ;;  %12935 = vmatprep.mubr.msk.f32.mxu1 %vm13677_vm0, %v16284_v29 }
 0x8d6   : > { %12943 = vmatprep.subr.mxu1 %v16284_v29 }
 0x908   : > { %v15669_v17 = vpop.f32.mrb[104].mxu0 }
 0x909   : > { %v12772_v2 = vpop.f32.mrb[105].mxu0 }
 0x90c   : > { %v15671_v22 = vpop.f32.mrb[106].mxu0 }
 0x90d   : > { %v12782_v37 = vpop.f32.mrb[107].mxu0 }
 0x937   : > { %v15673_v12 = vpop.f32.mrb[104].mxu1 }
 0x938   : > { %v12777_v63 = vpop.f32.mrb[105].mxu1 }
 0x93b   : > { %v15675_v59 = vpop.f32.mrb[106].mxu1 }
 0x93c   : > { %v12787_v31 = vpop.f32.mrb[107].mxu1 }
 0x93f   : > { %v15677_v11 = vpop.f32.mrb[108].mxu1 }
 0x940   : > { %v15679_v47 = vpop.f32.mrb[108].mxu0  ;;  %v12797_v41 = vpop.f32.mrb[109].mxu1 }
 0x941   : > { %v12792_v24 = vpop.f32.mrb[109].mxu0 }
 0x943   : > { %v15681_v21 = vpop.f32.mrb[110].mxu1 }
 0x944   : > { %v15683_v7 = vpop.f32.mrb[110].mxu0  ;;  %v12807_v55 = vpop.f32.mrb[111].mxu1 }
 0x945   : > { %v12802_v25 = vpop.f32.mrb[111].mxu0 }
 0x947   : > { %v15685_v33 = vpop.f32.mrb[112].mxu1 }
 0x948   : > { %v15687_v20 = vpop.f32.mrb[112].mxu0  ;;  %v12817_v23 = vpop.f32.mrb[113].mxu1 }
 0x949   : > { %v12812_v19 = vpop.f32.mrb[113].mxu0 }
 0x94b   : > { %v15689_v57 = vpop.f32.mrb[114].mxu1 }
 0x94c   : > { %v15691_v36 = vpop.f32.mrb[114].mxu0  ;;  %v12827_v16 = vpop.f32.mrb[115].mxu1 }
 0x94d   : > { %v12822_v14 = vpop.f32.mrb[115].mxu0 }
 0x950   : > { %v15693_v15 = vpop.f32.mrb[116].mxu0 }
 0x951   : > { %v12832_v13 = vpop.f32.mrb[117].mxu0 }
 0x980   : > { %v15695_v51 = vpop.f32.mrb[116].mxu1 }
 0x981   : > { %v12837_v26 = vpop.f32.mrb[117].mxu1 }
 0x984   : > { %v15697_v18 = vpop.f32.mrb[118].mxu0 }
 0x985   : > { %v15699_v46 = vpop.f32.mrb[118].mxu1  ;;  %v12842_v38 = vpop.f32.mrb[119].mxu0 }
 0x986   : > { %v12847_v40 = vpop.f32.mrb[119].mxu1 }
 0x988   : > { %v8802_v27 = vpop.f32.mrb[120].mxu0 }
 0x989   : > { %v9976_v0 = vmul.f32 0.17677669, %v8802_v27  ;;  %v12852_v45 = vpop.f32.mrb[121].mxu0 }
 0x98b   : > { %v15702_v54 = vadd.f32 %v9976_v0, %v16422_v53  ;;  %v8880_v50 = vpop.f32.mrb[120].mxu1 }
 0x98c   : > { %v9977_v35 = vmul.f32 0.17677669, %v8880_v50  ;;  %v12857_v48 = vpop.f32.mrb[121].mxu1  ;;  %v8958_v39 = vpop.f32.mrb[122].mxu0 }
 0x98d   : > { %v9978_v42 = vmul.f32 0.17677669, %v8958_v39  ;;  %v12862_v28 = vpop.f32.mrb[123].mxu0  ;;  %v10008_v56 = vsel %vm1845_vm3, %v15702_v54, -inf }
 0x98e   : > { %v15707_v58 = vadd.f32 %v9977_v35, %v16422_v53  ;;  %10009 = vmax.xlane.f32.xlu0 %v10008_v56 }
 0x98f   : > { %v15710_v43 = vadd.f32 %v9978_v42, %v16422_v53  ;;  %v9036_v60 = vpop.f32.mrb[122].mxu1 }
 0x990   : > { %v9979_v49 = vmul.f32 0.17677669, %v9036_v60  ;;  %v12867_v62 = vpop.f32.mrb[123].mxu1  ;;  %v10011_v1 = vsel %vm1845_vm3, %v15707_v58, -inf  ;;  %v9114_v3 = vpop.f32.mrb[124].mxu0 }
 0x991   : > { %10012 = vmax.xlane.f32.xlu1 %v10011_v1  ;;  %v9980_v4 = vmul.f32 0.17677669, %v9114_v3  ;;  %v12872_v5 = vpop.f32.mrb[125].mxu0  ;;  %v10014_v6 = vsel %vm1845_vm3, %v15710_v43, -inf }
 0x992   : > { %v15717_v8 = vadd.f32 %v9979_v49, %v16422_v53  ;;  %10015 = vmax.xlane.f32.xlu0 %v10014_v6 }
 0x993   : > { %v9192_v9 = vpop.f32.mrb[124].mxu1  ;;  %v15720_v30 = vadd.f32 %v9980_v4, %v16422_v53 }
 0x994   : > { %v9981_v44 = vmul.f32 0.17677669, %v9192_v9  ;;  %v12877_v10 = vpop.f32.mrb[125].mxu1  ;;  %v9270_v52 = vpop.f32.mrb[126].mxu0  ;;  %v10017_v34 = vsel %vm1845_vm3, %v15717_v8, -inf }
 0x995   : > { %v9982_v32 = vmul.f32 0.17677669, %v9270_v52  ;;  %v12882_v61 = vpop.f32.mrb[127].mxu0  ;;  %v10020_v19 = vsel %vm1845_vm3, %v15720_v30, -inf }
 0x996   : > { %v15725_v2 = vadd.f32 %v9981_v44, %v16422_v53  ;;  %10018 = vmax.xlane.f32.xlu0 %v10017_v34 }
 0x997   : > { %v9348_v37 = vpop.f32.mrb[126].mxu1  ;;  %v15730_v55 = vadd.f32 %v9982_v32, %v16422_v53 }
 0x998   : > { %v9983_v63 = vmul.f32 0.17677669, %v9348_v37  ;;  %v12887_v31 = vpop.f32.mrb[127].mxu1  ;;  %v10023_v41 = vsel %vm1845_vm3, %v15725_v2, -inf  ;;  %v9426_v24 = vpop.f32.mrb[128].mxu0 }
 0x999   : > { %10024 = vmax.xlane.f32.xlu1 %v10023_v41  ;;  %v9984_v25 = vmul.f32 0.17677669, %v9426_v24  ;;  %v12892_v23 = vpop.f32.mrb[129].mxu0  ;;  %v10026_v50 = vsel %vm1845_vm3, %v15730_v55, -inf }
 0x99a   : > { %v15735_v16 = vadd.f32 %v9983_v63, %v16422_v53  ;;  %10021 = vmax.xlane.f32.xlu0 %v10020_v19  ;;  %v16423_v23 = vld [vmem:[#allocation33_spill] sm:$0xff]  ;;  %v16424_v19 = vld [vmem:[#allocation34_spill] sm:$0xff] }
 0x99b   : > { %v9504_v14 = vpop.f32.mrb[128].mxu1  ;;  %v15740_v27 = vadd.f32 %v9984_v25, %v16422_v53 }
 0x99c   : > { %v9985_v13 = vmul.f32 0.17677669, %v9504_v14  ;;  %v12897_v26 = vpop.f32.mrb[129].mxu1  ;;  %v10029_v38 = vsel %vm1845_vm3, %v15735_v16, -inf  ;;  %v9582_v40 = vpop.f32.mrb[130].mxu0  ;;  %v16425_v14 = vld [vmem:[#allocation36_spill] sm:$0xff] }
 0x99d   : > { %10030 = vmax.xlane.f32.xlu1 %v10029_v38  ;;  %v9986_v0 = vmul.f32 0.17677669, %v9582_v40  ;;  %v12902_v45 = vpop.f32.mrb[131].mxu0  ;;  %v10032_v1 = vsel %vm1845_vm3, %v15740_v27, -inf  ;;  %v16426_v40 = vld [vmem:[#allocation35_spill] sm:$0xff] }
 0x99e   : > { %v15745_v35 = vadd.f32 %v9985_v13, %v16422_v53  ;;  %10027 = vmax.xlane.f32.xlu0 %v10026_v50  ;;  %v15793_v50 = vpop.permute.xlu0 %10336 }
 0x99f   : > { %v9660_v48 = vpop.f32.mrb[130].mxu1  ;;  %v15750_v60 = vadd.f32 %v9986_v0, %v16422_v53  ;;  %v15789_v0 = vpop.permute.xlu1 %10412 }
 0x9a0   : > { %v9987_v39 = vmul.f32 0.17677669, %v9660_v48  ;;  %v12907_v42 = vpop.f32.mrb[131].mxu1  ;;  %v10035_v28 = vsel %vm1845_vm3, %v15745_v35, -inf  ;;  %v9738_v56 = vpop.f32.mrb[132].mxu0 }
 0x9a1   : > { %10036 = vmax.xlane.f32.xlu1 %v10035_v28  ;;  %v9988_v49 = vmul.f32 0.17677669, %v9738_v56  ;;  %v12912_v62 = vpop.f32.mrb[133].mxu0  ;;  %v10038_v61 = vsel %vm1845_vm3, %v15750_v60, -inf }
 0x9a2   : > { %v15755_v3 = vadd.f32 %v9987_v39, %v16422_v53  ;;  %10033 = vmax.xlane.f32.xlu0 %v10032_v1  ;;  %v15797_v39 = vpop.permute.xlu0 %10640 }
 0x9a3   : > { %v9816_v4 = vpop.f32.mrb[132].mxu1  ;;  %v15760_v10 = vadd.f32 %v9988_v49, %v16422_v53  ;;  %v15791_v45 = vpop.permute.xlu1 %10488 }
 0x9a4   : > { %v9989_v5 = vmul.f32 0.17677669, %v9816_v4  ;;  %v12917_v6 = vpop.f32.mrb[133].mxu1  ;;  %v10041_v9 = vsel %vm1845_vm3, %v15755_v3, -inf  ;;  %v9894_v44 = vpop.f32.mrb[134].mxu0 }
 0x9a5   : > { %10042 = vmax.xlane.f32.xlu1 %v10041_v9  ;;  %v9990_v52 = vmul.f32 0.17677669, %v9894_v44  ;;  %v12922_v32 = vpop.f32.mrb[135].mxu0  ;;  %v10044_v24 = vsel %vm1845_vm3, %v15760_v10, -inf }
 0x9a6   : > { %v15765_v34 = vadd.f32 %v9989_v5, %v16422_v53  ;;  %10039 = vmax.xlane.f32.xlu0 %v10038_v61 }
 0x9a7   : > { %v9972_v37 = vpop.f32.mrb[134].mxu1  ;;  %v15770_v41 = vadd.f32 %v9990_v52, %v16422_v53  ;;  %v15795_v48 = vpop.permute.xlu1 %10564 }
 0x9a8   : > { %v12927_v63 = vpop.f32.mrb[135].mxu1  ;;  %v10047_v31 = vsel %vm1845_vm3, %v15765_v34, -inf  ;;  %v9991_v13 = vmul.f32 0.17677669, %v9972_v37 }
 0x9a9   : > { %10048 = vmax.xlane.f32.xlu1 %v10047_v31  ;;  %v10050_v25 = vsel %vm1845_vm3, %v15770_v41, -inf }
 0x9aa   : > { %10045 = vmax.xlane.f32.xlu0 %v10044_v24  ;;  %v15783_v26 = vadd.f32 %v9991_v13, %v16422_v53  ;;  %v15801_v53 = vpop.permute.xlu0 %10792 }
 0x9ab   : > { %v15799_v42 = vpop.permute.xlu1 %10716 }
 0x9ac   : > { %v10053_v38 = vsel %vm1845_vm3, %v15783_v26, -inf }
 0x9ae   : > { %10051 = vmax.xlane.f32.xlu0 %v10050_v25 }
 0x9af   : > { %v15803_v28 = vpop.permute.xlu1 %10868 }
 0x9ba   : > { %11020 = vrot.lane.b32.xlu1 %v16423_v23, %s13681_s29 }
 0x9c4   : > { %10944 = vrot.lane.b32.xlu0 %v16424_v19, %s13681_s29 }
 0x9c8   : > { %11096 = vrot.lane.b32.xlu0 %v16425_v14, %s13681_s29 }
 0x9de   : > { %10054 = vmax.xlane.f32.xlu1 %v10053_v38 }
 0x9ef   : > { %11172 = vrot.lane.b32.xlu1 %v16426_v40, %s13681_s29 }
 0xa1b   : > { %v10010_v56 = vpop.xlane.xlu0 %10009 }
 0xa1c   : > { %v10056_v49 = vsub.f32 %v15702_v54, %v10010_v56 }
 0xa1e   : > { %v10072_v62 = vmul.f32 1.442695, %v10056_v49  ;;  %v10013_v1 = vpop.xlane.xlu1 %10012 }
 0xa1f   : > { %v10057_v4 = vsub.f32 %v15707_v58, %v10013_v1  ;;  %v10016_v5 = vpop.xlane.xlu0 %10015 }
 0xa20   : > { %13447 = vpow2.f32 %v10072_v62  ;;  %v10058_v6 = vsub.f32 %v15710_v43, %v10016_v5 }
 0xa21   : > { %v10074_v9 = vmul.f32 1.442695, %v10057_v4 }
 0xa22   : > { %v10076_v44 = vmul.f32 1.442695, %v10058_v6 }
 0xa23   : > { %13449 = vpow2.f32 %v10074_v9  ;;  %v10019_v52 = vpop.xlane.xlu0 %10018 }
 0xa24   : > { %13451 = vpow2.f32 %v10076_v44  ;;  %v10059_v32 = vsub.f32 %v15717_v8, %v10019_v52 }
 0xa26   : > { %v10078_v61 = vmul.f32 1.442695, %v10059_v32  ;;  %v10025_v37 = vpop.xlane.xlu1 %10024 }
 0xa27   : > { %v10061_v63 = vsub.f32 %v15725_v2, %v10025_v37  ;;  %v10022_v54 = vpop.xlane.xlu0 %10021 }
 0xa28   : > { %13453 = vpow2.f32 %v10078_v61  ;;  %v10060_v31 = vsub.f32 %v15720_v30, %v10022_v54 }
 0xa29   : > { %v10082_v58 = vmul.f32 1.442695, %v10061_v63 }
 0xa2a   : > { %v15811_v24 = vpop.eup %13447  ;;  %v10080_v25 = vmul.f32 1.442695, %v10060_v31  ;;  %v10031_v43 = vpop.xlane.xlu1 %10030 }
 0xa2b   : > { %13455 = vpow2.f32 %v10082_v58  ;;  %v10063_v23 = vsub.f32 %v15735_v16, %v10031_v43  ;;  %v10028_v19 = vpop.xlane.xlu0 %10027  ;;  %v10104_v8 = vsel %vm1845_vm3, %v15811_v24, 0.0 }
 0xa2c   : > { %13457 = vpow2.f32 %v10080_v25  ;;  %v10062_v14 = vsub.f32 %v15730_v55, %v10028_v19  ;;  %10105 = vadd.xlane.f32.xlu0 %v10104_v8 }
 0xa2d   : > { %v15817_v2 = vpop.eup %13449  ;;  %v10086_v13 = vmul.f32 1.442695, %v10063_v23 }
 0xa2e   : > { %v15819_v30 = vpop.eup %13451  ;;  %v10084_v38 = vmul.f32 1.442695, %v10062_v14  ;;  %v10037_v40 = vpop.xlane.xlu1 %10036  ;;  %v10107_v56 = vsel %vm1845_vm3, %v15817_v2, 0.0 }
 0xa2f   : > { %13459 = vpow2.f32 %v10086_v13  ;;  %v10065_v16 = vsub.f32 %v15745_v35, %v10037_v40  ;;  %10108 = vadd.xlane.f32.xlu1 %v10107_v56  ;;  %v10034_v49 = vpop.xlane.xlu0 %10033  ;;  %v10110_v62 = vsel %vm1845_vm3, %v15819_v30, 0.0 }
 0xa30   : > { %13461 = vpow2.f32 %v10084_v38  ;;  %v10064_v55 = vsub.f32 %v15740_v27, %v10034_v49  ;;  %10111 = vadd.xlane.f32.xlu0 %v10110_v62 }
 0xa31   : > { %v10090_v1 = vmul.f32 1.442695, %v10065_v16 }
 0xa32   : > { %v15827_v4 = vpop.eup %13453  ;;  %v10088_v5 = vmul.f32 1.442695, %v10064_v55  ;;  %v10043_v6 = vpop.xlane.xlu1 %10042 }
 0xa33   : > { %13463 = vpow2.f32 %v10090_v1  ;;  %v10067_v9 = vsub.f32 %v15755_v3, %v10043_v6  ;;  %v10040_v44 = vpop.xlane.xlu0 %10039  ;;  %v10113_v35 = vsel %vm1845_vm3, %v15827_v4, 0.0 }
 0xa34   : > { %13465 = vpow2.f32 %v10088_v5  ;;  %v10066_v52 = vsub.f32 %v15750_v60, %v10040_v44  ;;  %10114 = vadd.xlane.f32.xlu1 %v10113_v35 }
 0xa35   : > { %v15833_v32 = vpop.eup %13455  ;;  %v10094_v27 = vmul.f32 1.442695, %v10067_v9 }
 0xa36   : > { %v15835_v61 = vpop.eup %13457  ;;  %v10092_v37 = vmul.f32 1.442695, %v10066_v52  ;;  %v10049_v63 = vpop.xlane.xlu1 %10048  ;;  %v10119_v3 = vsel %vm1845_vm3, %v15833_v32, 0.0  ;;  %v16427_v52 = vld [vmem:[#allocation37_spill] sm:$0xff] }
 0xa37   : > { %13467 = vpow2.f32 %v10094_v27  ;;  %v10069_v54 = vsub.f32 %v15765_v34, %v10049_v63  ;;  %v10046_v31 = vpop.xlane.xlu0 %10045  ;;  %v10116_v58 = vsel %vm1845_vm3, %v15835_v61, 0.0  ;;  %v16428_v27 = vld [vmem:[#allocation19_spill] sm:$0xff] }
 0xa38   : > { %13469 = vpow2.f32 %v10092_v37  ;;  %v10068_v60 = vsub.f32 %v15760_v10, %v10046_v31  ;;  %10120 = vadd.xlane.f32.xlu1 %v10119_v3  ;;  %10117 = vadd.xlane.f32.xlu0 %v10116_v58  ;;  %v16429_v37 = vld [vmem:[#allocation42_spill] sm:$0xff] }
 0xa39   : > { %v15843_v25 = vpop.eup %13459  ;;  %v10098_v43 = vmul.f32 1.442695, %v10069_v54  ;;  %v16430_v58 = vld [vmem:[#allocation14_spill] sm:$0xff] }
 0xa3a   : > { %v15845_v23 = vpop.eup %13461  ;;  %v10096_v19 = vmul.f32 1.442695, %v10068_v60  ;;  %v10125_v8 = vsel %vm1845_vm3, %v15843_v25, 0.0  ;;  %v15886_v63 = vpop.permute.xlu1 %11020  ;;  %v16431_v60 = vld [vmem:[#allocation25_spill] sm:$0xff] }
 0xa3b   : > { %13471 = vpow2.f32 %v10098_v43  ;;  %v10052_v34 = vpop.xlane.xlu0 %10051  ;;  %v10122_v14 = vsel %vm1845_vm3, %v15845_v23, 0.0 }
 0xa3c   : > { %13473 = vpow2.f32 %v10096_v19  ;;  %v10070_v13 = vsub.f32 %v15770_v41, %v10052_v34  ;;  %10126 = vadd.xlane.f32.xlu1 %v10125_v8  ;;  %10123 = vadd.xlane.f32.xlu0 %v10122_v14  ;;  %v16435_v19 = vld [vmem:[#allocation38_spill] sm:$0xff]  ;;  %v16437_v34 = vld [vmem:[#allocation39_spill] sm:$0xff] }
 0xa3d   : > { %v15852_v10 = vpop.eup %13463  ;;  %v16440_v8 = vld [vmem:[#allocation26_spill] sm:$0xff] }
 0xa3e   : > { %v15854_v38 = vpop.eup %13465  ;;  %v10100_v40 = vmul.f32 1.442695, %v10070_v13  ;;  %v10131_v56 = vsel %vm1845_vm3, %v15852_v10, 0.0  ;;  %v16442_v13 = vld [vmem:[#allocation28_spill] sm:$0xff] }
 0xa3f   : > { %v10128_v16 = vsel %vm1845_vm3, %v15854_v38, 0.0 }
 0xa40   : > { %13475 = vpow2.f32 %v10100_v40  ;;  %10132 = vadd.xlane.f32.xlu1 %v10131_v56  ;;  %10129 = vadd.xlane.f32.xlu0 %v10128_v16 }
 0xa41   : > { %v15860_v49 = vpop.eup %13467 }
 0xa42   : > { %v15862_v62 = vpop.eup %13469  ;;  %v10137_v41 = vsel %vm1845_vm3, %v15860_v49, 0.0 }
 0xa43   : > { %v10134_v55 = vsel %vm1845_vm3, %v15862_v62, 0.0 }
 0xa44   : > { %10138 = vadd.xlane.f32.xlu1 %v10137_v41  ;;  %10135 = vadd.xlane.f32.xlu0 %v10134_v55 }
 0xa45   : > { %v15868_v1 = vpop.eup %13471 }
 0xa46   : > { %v15870_v5 = vpop.eup %13473  ;;  %v10143_v6 = vsel %vm1845_vm3, %v15868_v1, 0.0 }
 0xa47   : > { %v10140_v9 = vsel %vm1845_vm3, %v15870_v5, 0.0 }
 0xa48   : > { %10144 = vadd.xlane.f32.xlu1 %v10143_v6  ;;  %10141 = vadd.xlane.f32.xlu0 %v10140_v9  ;;  %v16443_v6 = vld [vmem:[#allocation15_spill] sm:$0xff] }
 0xa4a   : > { %v15876_v44 = vpop.eup %13475 }
 0xa4b   : > { %v10146_v35 = vsel %vm1845_vm3, %v15876_v44, 0.0 }
 0xa4c   : > { %10147 = vadd.xlane.f32.xlu1 %v10146_v35 }
 0xa5d   : > { %11324 = vrot.lane.b32.xlu1 %v16427_v52, %s13681_s29 }
 0xa61   : > { %5926 = vrot.lane.b32.xlu1 %v16428_v27, %s13681_s29  ;;  %v16444_v27 = vld [vmem:[#allocation31_spill] sm:$0xff] }
 0xa65   : > { %5928 = vrot.lane.b32.xlu1 %v16429_v37, %s13681_s29 }
 0xa69   : > { %8679 = vrot.lane.b32.xlu1 %v15687_v20, %s13680_s20 }
 0xa6b   : > { %v10055_v54 = vpop.xlane.xlu1 %10054 }
 0xa6c   : > { %v10071_v31 = vsub.f32 %v15783_v26, %v10055_v54  ;;  %v16433_v26 = vld [vmem:[#allocation29_spill] sm:$0xff] }
 0xa6d   : > { %8681 = vrot.lane.b32.xlu1 %v15685_v33, %s13680_s20  ;;  %v16432_v33 = vld [vmem:[#allocation13_spill] sm:$0xff] }
 0xa6e   : > { %v10102_v3 = vmul.f32 1.442695, %v10071_v31 }
 0xa70   : > { %13477 = vpow2.f32 %v10102_v3 }
 0xa71   : > { %5930 = vrot.lane.b32.xlu1 %v16430_v58, %s13681_s29 }
 0xa75   : > { %5932 = vrot.lane.b32.xlu1 %v16431_v60, %s13681_s29 }
 0xa79   : > { %8683 = vrot.lane.b32.xlu1 %v15691_v36, %s13680_s20  ;;  %v16434_v36 = vld [vmem:[#allocation45_spill] sm:$0xff] }
 0xa7a   : > { %v15899_v43 = vpop.eup %13477 }
 0xa7b   : > { %v10149_v20 = vsel %vm1845_vm3, %v15899_v43, 0.0 }
 0xa7c   : > { %10150 = vadd.xlane.f32.xlu0 %v10149_v20 }
 0xa7d   : > { %8685 = vrot.lane.b32.xlu1 %v15689_v57, %s13680_s20  ;;  %v16436_v57 = vld [vmem:[#allocation16_spill] sm:$0xff] }
 0xa81   : > { %5934 = vrot.lane.b32.xlu1 %v16432_v33, %s13681_s29 }
 0xa85   : > { %5936 = vrot.lane.b32.xlu1 %v16433_v26, %s13681_s29 }
 0xa89   : > { %8687 = vrot.lane.b32.xlu1 %v15693_v15, %s13680_s20  ;;  %v16438_v15 = vld [vmem:[#allocation23_spill] sm:$0xff] }
 0xa8d   : > { %8689 = vrot.lane.b32.xlu1 %v15695_v51, %s13680_s20  ;;  %v16439_v51 = vld [vmem:[#allocation24_spill] sm:$0xff] }
 0xa91   : > { %5938 = vrot.lane.b32.xlu1 %v16434_v36, %s13681_s29 }
 0xa92   : > { %11248 = vrot.lane.b32.xlu0 %v16435_v19, %s13681_s29 }
 0xa95   : > { %5940 = vrot.lane.b32.xlu1 %v16436_v57, %s13681_s29 }
 0xa96   : > { %5910 = vrot.lane.b32.xlu0 %v16437_v34, %s13681_s29 }
 0xa99   : > { %8691 = vrot.lane.b32.xlu1 %v15697_v18, %s13680_s20  ;;  %v15937_v18 = vpop.permute.xlu0 %10944 }
 0xa9a   : > { %5912 = vrot.lane.b32.xlu0 %v16438_v15, %s13681_s29 }
 0xa9d   : > { %8693 = vrot.lane.b32.xlu1 %v15699_v46, %s13680_s20  ;;  %v15941_v46 = vpop.permute.xlu0 %11096 }
 0xa9e   : > { %8663 = vrot.lane.b32.xlu0 %v15669_v17, %s13680_s20  ;;  %v16441_v17 = vld [vmem:[#allocation32_spill] sm:$0xff] }
 0xaa2   : > { %8665 = vrot.lane.b32.xlu0 %v15673_v12, %s13680_s20  ;;  %v15945_v12 = vpop.permute.xlu1 %11172 }
 0xaa6   : > { %5914 = vrot.lane.b32.xlu0 %v16439_v51, %s13681_s29 }
 0xaaa   : > { %5916 = vrot.lane.b32.xlu0 %v16440_v8, %s13681_s29 }
 0xaae   : > { %8667 = vrot.lane.b32.xlu0 %v15671_v22, %s13680_s20 }
 0xab2   : > { %8669 = vrot.lane.b32.xlu0 %v15675_v59, %s13680_s20 }
 0xab6   : > { %5918 = vrot.lane.b32.xlu0 %v16441_v17, %s13681_s29 }
 0xab9   : > { %v10106_v14 = vpop.xlane.xlu0 %10105 }
 0xaba   : > { %5920 = vrot.lane.b32.xlu0 %v16442_v13, %s13681_s29  ;;  %13479 = vrcp.f32 %v10106_v14 }
 0xabc   : > { %v10109_v40 = vpop.xlane.xlu1 %10108 }
 0xabd   : > { %13481 = vrcp.f32 %v10109_v40  ;;  %v10112_v22 = vpop.xlane.xlu0 %10111 }
 0xabe   : > { %8671 = vrot.lane.b32.xlu0 %v15679_v47, %s13680_s20  ;;  %13483 = vrcp.f32 %v10112_v22 }
 0xac1   : > { %v10115_v59 = vpop.xlane.xlu1 %10114 }
 0xac2   : > { %13485 = vrcp.f32 %v10115_v59  ;;  %8673 = vrot.lane.b32.xlu0 %v15677_v11, %s13680_s20 }
 0xac4   : > { %v13480_v56 = vpop.eup %13479 }
 0xac5   : > { %v10168_v16 = vmul.f32 %v13480_v56, %v15811_v24  ;;  %v10121_v41 = vpop.xlane.xlu1 %10120  ;;  %v10118_v55 = vpop.xlane.xlu0 %10117 }
 0xac6   : > { %13487 = vrcp.f32 %v10121_v41  ;;  %5922 = vrot.lane.b32.xlu0 %v16443_v6, %s13681_s29 }
 0xac7   : > { %v13482_v9 = vpop.eup %13481  ;;  %13489 = vrcp.f32 %v10118_v55  ;;  %12931 = vmatmul.mubr.msk.f32.vlgmr.msra.gmra.mrb[136].mxu0 %vm1845_vm3, %v10168_v16 }
 0xac8   : > { %v13484_v47 = vpop.eup %13483  ;;  %v10169_v35 = vmul.f32 %v13482_v9, %v15817_v2  ;;  %12939 = vmatpush3.msra.mxu0 %v15793_v50  ;;  %12940 = vmatprep.mubr.msk.f32.mxu0 %vm13677_vm0, %v16284_v29 }
 0xac9   : > { %v10170_v11 = vmul.f32 %v13484_v47, %v15819_v30  ;;  %v10127_v24 = vpop.xlane.xlu1 %10126  ;;  %v10124_v52 = vpop.xlane.xlu0 %10123  ;;  %12948 = vmatprep.subr.mxu0 %v16284_v29 }
 0xaca   : > { %12936 = vmatmul.mubr.msk.f32.vlgmr.msra.gmra.mrb[136].mxu1 %vm1845_vm3, %v10169_v35  ;;  %13491 = vrcp.f32 %v10127_v24  ;;  %5924 = vrot.lane.b32.xlu0 %v16444_v27, %s13681_s29 }
 0xacb   : > { %12944 = vmatpush3.msra.mxu1 %v15789_v0  ;;  %13493 = vrcp.f32 %v10124_v52  ;;  %12941 = vmatmul.mubr.msk.f32.vlgmr.msra.gmra.mrb[138].mxu0 %vm1845_vm3, %v10170_v11 }
 0xacc   : > { %v13486_v50 = vpop.eup %13485  ;;  %12949 = vmatpush3.msra.mxu0 %v15791_v45  ;;  %12945 = vmatprep.mubr.msk.f32.mxu1 %vm13677_vm0, %v16284_v29 }
 0xacd   : > { %v10171_v2 = vmul.f32 %v13486_v50, %v15827_v4  ;;  %v10133_v30 = vpop.xlane.xlu1 %10132  ;;  %v10130_v37 = vpop.xlane.xlu0 %10129  ;;  %12953 = vmatprep.subr.mxu1 %v16284_v29  ;;  %12950 = vmatprep.mubr.msk.f32.mxu0 %vm13677_vm0, %v16284_v29 }
 0xace   : > { %13495 = vrcp.f32 %v10133_v30  ;;  %8675 = vrot.lane.b32.xlu0 %v15683_v7, %s13680_s20  ;;  %12958 = vmatprep.subr.mxu0 %v16284_v29 }
 0xacf   : > { %13497 = vrcp.f32 %v10130_v37  ;;  %12946 = vmatmul.mubr.msk.f32.vlgmr.msra.gmra.mrb[138].mxu1 %vm1845_vm3, %v10171_v2 }
 0xad0   : > { %v13488_v0 = vpop.eup %13487  ;;  %12954 = vmatpush3.msra.mxu1 %v15795_v48  ;;  %12955 = vmatprep.mubr.msk.f32.mxu1 %vm13677_vm0, %v16284_v29 }
 0xad1   : > { %v13490_v45 = vpop.eup %13489  ;;  %v10173_v4 = vmul.f32 %v13488_v0, %v15833_v32  ;;  %v10139_v54 = vpop.xlane.xlu1 %10138  ;;  %12963 = vmatprep.subr.mxu1 %v16284_v29  ;;  %v11497_v0 = vld [vmem:[#allocation8] sm:$0xff] }
 0xad2   : > { %v10136_v31 = vpop.xlane.xlu0 %10135  ;;  %v10172_v7 = vmul.f32 %v13490_v45, %v15835_v61  ;;  %13499 = vrcp.f32 %v10139_v54  ;;  %8677 = vrot.lane.b32.xlu0 %v15681_v21, %s13680_s20  ;;  %v11498_v45 = vld [vmem:[#allocation8 + $0x8] sm:$0xff] }
 0xad3   : > { %13501 = vrcp.f32 %v10136_v31  ;;  %12956 = vmatmul.mubr.msk.f32.vlgmr.msra.gmra.mrb[140].mxu1 %vm1845_vm3, %v10173_v4  ;;  %v11499_v4 = vld [vmem:[#allocation8 + $0x10] sm:$0xff]  ;;  %v13128_v54 = vpack.c.bf16 %v11498_v45, %v11497_v0  ;;  %v11500_v31 = vld [vmem:[#allocation8 + $0x18] sm:$0xff] }
 0xad4   : > { %v13492_v48 = vpop.eup %13491  ;;  %12951 = vmatmul.mubr.msk.f32.vlgmr.msra.gmra.mrb[140].mxu0 %vm1845_vm3, %v10172_v7  ;;  %12964 = vmatpush3.msra.mxu1 %v15799_v42  ;;  %v13132_v7 = vpack.c.bf16 %v11500_v31, %v11499_v4 }
 0xad5   : > { %v13494_v3 = vpop.eup %13493  ;;  %v10175_v32 = vmul.f32 %v13492_v48, %v15843_v25  ;;  %12959 = vmatpush3.msra.mxu0 %v15797_v39  ;;  %v10145_v58 = vpop.xlane.xlu1 %10144  ;;  %12960 = vmatprep.mubr.msk.f32.mxu0 %vm13677_vm0, %v16284_v29  ;;  %v11501_v48 = vld [vmem:[#allocation8 + $0x20] sm:$0xff] }
 0xad6   : > { %v10142_v60 = vpop.xlane.xlu0 %10141  ;;  %v10174_v21 = vmul.f32 %v13494_v3, %v15845_v23  ;;  %13503 = vrcp.f32 %v10145_v58  ;;  %12965 = vmatprep.mubr.msk.f32.mxu1 %vm13677_vm0, %v16284_v29  ;;  %12968 = vmatprep.subr.mxu0 %v16284_v29  ;;  %v11502_v3 = vld [vmem:[#allocation8 + $0x28] sm:$0xff]  ;;  %v11503_v58 = vld [vmem:[#allocation8 + $0x30] sm:$0xff] }
 0xad7   : > { %13505 = vrcp.f32 %v10142_v60  ;;  %12973 = vmatprep.subr.mxu1 %v16284_v29  ;;  %12966 = vmatmul.mubr.msk.f32.vlgmr.msra.gmra.mrb[142].mxu1 %vm1845_vm3, %v10175_v32  ;;  %v13136_v32 = vpack.c.bf16 %v11502_v3, %v11501_v48  ;;  %v11504_v60 = vld [vmem:[#allocation8 + $0x38] sm:$0xff] }
 0xad8   : > { %v13496_v42 = vpop.eup %13495  ;;  %12961 = vmatmul.mubr.msk.f32.vlgmr.msra.gmra.mrb[142].mxu0 %vm1845_vm3, %v10174_v21  ;;  %12974 = vmatpush3.msra.mxu1 %v15803_v28  ;;  %v13140_v21 = vpack.c.bf16 %v11504_v60, %v11503_v58 }
 0xad9   : > { %v13498_v39 = vpop.eup %13497  ;;  %v10177_v61 = vmul.f32 %v13496_v42, %v15852_v10  ;;  %12969 = vmatpush3.msra.mxu0 %v15801_v53  ;;  %v10148_v25 = vpop.xlane.xlu1 %10147  ;;  %12970 = vmatprep.mubr.msk.f32.mxu0 %vm13677_vm0, %v16284_v29  ;;  %v11505_v42 = vld [vmem:[#allocation8 + $0x40] sm:$0xff] }
 0xada   : > { %v10176_v23 = vmul.f32 %v13498_v39, %v15854_v38  ;;  %12975 = vmatprep.mubr.msk.f32.mxu1 %vm13677_vm0, %v16284_v29  ;;  %12978 = vmatprep.subr.mxu0 %v16284_v29  ;;  %13507 = vrcp.f32 %v10148_v25  ;;  %v11506_v39 = vld [vmem:[#allocation8 + $0x48] sm:$0xff]  ;;  %v11507_v25 = vld [vmem:[#allocation8 + $0x50] sm:$0xff] }
 0xadb   : > { %12983 = vmatprep.subr.mxu1 %v16284_v29  ;;  %12976 = vmatmul.mubr.msk.f32.vlgmr.msra.gmra.mrb[144].mxu1 %vm1845_vm3, %v10177_v61  ;;  %v13144_v61 = vpack.c.bf16 %v11506_v39, %v11505_v42 }
 0xadc   : > { %v13500_v28 = vpop.eup %13499  ;;  %12971 = vmatmul.mubr.msk.f32.vlgmr.msra.gmra.mrb[144].mxu0 %vm1845_vm3, %v10176_v23  ;;  %12984 = vmatpush3.msra.mxu1 %v15886_v63  ;;  %v11508_v23 = vld [vmem:[#allocation8 + $0x58] sm:$0xff] }
 0xadd   : > { %v13502_v53 = vpop.eup %13501  ;;  %v10179_v10 = vmul.f32 %v13500_v28, %v15860_v49  ;;  %12979 = vmatpush3.msra.mxu0 %v15937_v18  ;;  %v11325_v38 = vpop.permute.xlu1 %11324  ;;  %12980 = vmatprep.mubr.msk.f32.mxu0 %vm13677_vm0, %v16284_v29  ;;  %v13148_v28 = vpack.c.bf16 %v11508_v23, %v11507_v25 }
 0xade   : > { %v10178_v20 = vmul.f32 %v13502_v53, %v15862_v62  ;;  %12985 = vmatprep.mubr.msk.f32.mxu1 %vm13677_vm0, %v16284_v29  ;;  %12988 = vmatprep.subr.mxu0 %v16284_v29  ;;  %v11509_v53 = vld [vmem:[#allocation8 + $0x60] sm:$0xff] }
 0xadf   : > { %12993 = vmatprep.subr.mxu1 %v16284_v29  ;;  %12986 = vmatmul.mubr.msk.f32.vlgmr.msra.gmra.mrb[146].mxu1 %vm1845_vm3, %v10179_v10  ;;  %v11510_v10 = vld [vmem:[#allocation8 + $0x68] sm:$0xff] }
 0xae0   : > { %v13504_v63 = vpop.eup %13503  ;;  %12981 = vmatmul.mubr.msk.f32.vlgmr.msra.gmra.mrb[146].mxu0 %vm1845_vm3, %v10178_v20  ;;  %12994 = vmatpush3.msra.mxu1 %v15945_v12  ;;  %v11511_v20 = vld [vmem:[#allocation8 + $0x70] sm:$0xff] }
 0xae1   : > { %v13506_v49 = vpop.eup %13505  ;;  %v10181_v33 = vmul.f32 %v13504_v63, %v15868_v1  ;;  %12989 = vmatpush3.msra.mxu0 %v15941_v46  ;;  %v5927_v62 = vpop.permute.xlu1 %5926  ;;  %12990 = vmatprep.mubr.msk.f32.mxu0 %vm13677_vm0, %v16284_v29  ;;  %v11512_v63 = vld [vmem:[#allocation8 + $0x78] sm:$0xff] }
 0xae2   : > { %v10180_v26 = vmul.f32 %v13506_v49, %v15870_v5  ;;  %5967 = vst.msk [vmem:[#allocation2 + $0x40] sm:$0xff] %vm5958_vm4, %v5927_v62  ;;  %12995 = vmatprep.mubr.msk.f32.mxu1 %vm13677_vm0, %v16284_v29  ;;  %13003 = vmatprep.subr.mxu1 %v16284_v29  ;;  %v13156_v49 = vpack.c.bf16 %v11512_v63, %v11511_v20 }
 0xae3   : > { %12996 = vmatmul.mubr.msk.f32.vlgmr.msra.gmra.mrb[148].mxu1 %vm1845_vm3, %v10181_v33  ;;  %12998 = vmatprep.subr.mxu0 %v16284_v29 }
 0xae4   : > { %12991 = vmatmul.mubr.msk.f32.vlgmr.msra.gmra.mrb[148].mxu0 %vm1845_vm3, %v10180_v26  ;;  %13004 = vmatpush3.msra.mxu1 %v11325_v38  ;;  %v13508_v46 = vpop.eup %13507  ;;  %v13152_v38 = vpack.c.bf16 %v11510_v10, %v11509_v53 }
 0xae5   : > { %v5929_v1 = vpop.permute.xlu1 %5928  ;;  %13000 = vmatprep.mubr.msk.f32.mxu0 %vm13677_vm0, %v16284_v29  ;;  %13005 = vmatprep.mubr.msk.f32.mxu1 %vm13677_vm0, %v16284_v29  ;;  %v10182_v17 = vmul.f32 %v13508_v46, %v15876_v44 }
 0xae6   : > { %5968 = vst.msk [vmem:[#allocation2 + $0x48] sm:$0xff] %vm5958_vm4, %v5929_v1  ;;  %13160 = vmatprep.subr.bf16.mxu1 %v13128_v54 }
 0xae9   : > { %v8680_v5 = vpop.permute.xlu1 %8679 }
 0xaea   : > { %8720 = vst.msk [vmem:[#allocation2 + $0x40] sm:$0xff] %vm8711_vm5, %v8680_v5 }
 0xaed   : > { %v8682_v36 = vpop.permute.xlu1 %8681 }
 0xaee   : > { %8721 = vst.msk [vmem:[#allocation2 + $0x48] sm:$0xff] %vm8711_vm5, %v8682_v36 }
 0xaf1   : > { %v5931_v19 = vpop.permute.xlu1 %5930 }
 0xaf2   : > { %5969 = vst.msk [vmem:[#allocation2 + $0x50] sm:$0xff] %vm5958_vm4, %v5931_v19 }
 0xaf5   : > { %v5933_v57 = vpop.permute.xlu1 %5932 }
 0xaf6   : > { %5970 = vst.msk [vmem:[#allocation2 + $0x58] sm:$0xff] %vm5958_vm4, %v5933_v57 }
 0xaf9   : > { %v8684_v34 = vpop.permute.xlu1 %8683 }
 0xafa   : > { %8722 = vst.msk [vmem:[#allocation2 + $0x50] sm:$0xff] %vm8711_vm5, %v8684_v34 }
 0xafd   : > { %v8686_v15 = vpop.permute.xlu1 %8685 }
 0xafe   : > { %8723 = vst.msk [vmem:[#allocation2 + $0x58] sm:$0xff] %vm8711_vm5, %v8686_v15 }
 0xb01   : > { %v5935_v29 = vpop.permute.xlu1 %5934 }
 0xb02   : > { %5971 = vst.msk [vmem:[#allocation2 + $0x60] sm:$0xff] %vm5958_vm4, %v5935_v29 }
 0xb05   : > { %v5937_v51 = vpop.permute.xlu1 %5936 }
 0xb06   : > { %5972 = vst.msk [vmem:[#allocation2 + $0x68] sm:$0xff] %vm5958_vm4, %v5937_v51 }
 0xb09   : > { %v10151_v8 = vpop.xlane.xlu0 %10150  ;;  %v8688_v18 = vpop.permute.xlu1 %8687 }
 0xb0a   : > { %13509 = vrcp.f32 %v10151_v8  ;;  %8724 = vst.msk [vmem:[#allocation2 + $0x60] sm:$0xff] %vm8711_vm5, %v8688_v18 }
 0xb0d   : > { %v11249_v12 = vpop.permute.xlu0 %11248  ;;  %v8690_v14 = vpop.permute.xlu1 %8689 }
 0xb0e   : > { %8725 = vst.msk [vmem:[#allocation2 + $0x68] sm:$0xff] %vm8711_vm5, %v8690_v14  ;;  %12999 = vmatpush3.msra.mxu0 %v11249_v12 }
 0xb0f   : > { %13001 = vmatmul.mubr.msk.f32.vlgmr.msra.gmra.mrb[150].mxu0 %vm1845_vm3, %v10182_v17  ;;  %13129 = vmatprep.subr.bf16.mxu0 %v13128_v54 }
 0xb10   : > { %13131 = vmatpush3.bf16.msra.mxu0 %v13128_v54 }
 0xb11   : > { %v5911_v13 = vpop.permute.xlu0 %5910  ;;  %v5939_v40 = vpop.permute.xlu1 %5938  ;;  %13133 = vmatprep.subr.bf16.mxu0 %v13132_v7 }
 0xb12   : > { %5959 = vst.msk [vmem:[#allocation2] sm:$0xff] %vm5958_vm4, %v5911_v13  ;;  %5973 = vst.msk [vmem:[#allocation2 + $0x70] sm:$0xff] %vm5958_vm4, %v5939_v40 }
 0xb14   : > { %v13510_v22 = vpop.eup %13509  ;;  %13135 = vmatpush3.bf16.msra.mxu0 %v13132_v7 }
 0xb15   : > { %v10183_v59 = vmul.f32 %v13510_v22, %v15899_v43  ;;  %v5913_v56 = vpop.permute.xlu0 %5912  ;;  %v5941_v16 = vpop.permute.xlu1 %5940  ;;  %13137 = vmatprep.subr.bf16.mxu0 %v13136_v32 }
 0xb16   : > { %5960 = vst.msk [vmem:[#allocation2 + $0x8] sm:$0xff] %vm5958_vm4, %v5913_v56  ;;  %5974 = vst.msk [vmem:[#allocation2 + $0x78] sm:$0xff] %vm5958_vm4, %v5941_v16 }
 0xb17   : > { %13006 = vmatmul.mubr.msk.f32.vlgmr.msra.gmra.mrb[150].mxu1 %vm1845_vm3, %v10183_v59 }
 0xb18   : > { %13168 = vmatpush3.bf16.msra.mxu1 %v13128_v54  ;;  %13139 = vmatpush3.bf16.msra.mxu0 %v13136_v32 }
 0xb19   : > { %v8664_v44 = vpop.permute.xlu0 %8663  ;;  %v8692_v41 = vpop.permute.xlu1 %8691  ;;  %13161 = vmatprep.subr.bf16.mxu1 %v13132_v7  ;;  %13141 = vmatprep.subr.bf16.mxu0 %v13140_v21 }
 0xb1a   : > { %8712 = vst.msk [vmem:[#allocation2] sm:$0xff] %vm8711_vm5, %v8664_v44  ;;  %8726 = vst.msk [vmem:[#allocation2 + $0x70] sm:$0xff] %vm8711_vm5, %v8692_v41 }
 0xb1c   : > { %13169 = vmatpush3.bf16.msra.mxu1 %v13132_v7  ;;  %13143 = vmatpush3.bf16.msra.mxu0 %v13140_v21 }
 0xb1d   : > { %v8666_v55 = vpop.permute.xlu0 %8665  ;;  %v8694_v6 = vpop.permute.xlu1 %8693  ;;  %13162 = vmatprep.subr.bf16.mxu1 %v13136_v32  ;;  %13145 = vmatprep.subr.bf16.mxu0 %v13144_v61 }
 0xb1e   : > { %8713 = vst.msk [vmem:[#allocation2 + $0x8] sm:$0xff] %vm8711_vm5, %v8666_v55  ;;  %8727 = vst.msk [vmem:[#allocation2 + $0x78] sm:$0xff] %vm8711_vm5, %v8694_v6 }
 0xb20   : > { %13170 = vmatpush3.bf16.msra.mxu1 %v13136_v32  ;;  %13147 = vmatpush3.bf16.msra.mxu0 %v13144_v61 }
 0xb21   : > { %v5915_v43 = vpop.permute.xlu0 %5914  ;;  %13163 = vmatprep.subr.bf16.mxu1 %v13140_v21  ;;  %13149 = vmatprep.subr.bf16.mxu0 %v13148_v28 }
 0xb22   : > { %5961 = vst.msk [vmem:[#allocation2 + $0x10] sm:$0xff] %vm5958_vm4, %v5915_v43 }
 0xb24   : > { %13171 = vmatpush3.bf16.msra.mxu1 %v13140_v21  ;;  %13151 = vmatpush3.bf16.msra.mxu0 %v13148_v28 }
 0xb25   : > { %v5917_v9 = vpop.permute.xlu0 %5916  ;;  %13164 = vmatprep.subr.bf16.mxu1 %v13144_v61  ;;  %13153 = vmatprep.subr.bf16.mxu0 %v13152_v38 }
 0xb26   : > { %5962 = vst.msk [vmem:[#allocation2 + $0x18] sm:$0xff] %vm5958_vm4, %v5917_v9 }
 0xb28   : > { %13172 = vmatpush3.bf16.msra.mxu1 %v13144_v61  ;;  %13155 = vmatpush3.bf16.msra.mxu0 %v13152_v38 }
 0xb29   : > { %v8668_v47 = vpop.permute.xlu0 %8667  ;;  %13165 = vmatprep.subr.bf16.mxu1 %v13148_v28  ;;  %13157 = vmatprep.subr.bf16.mxu0 %v13156_v49 }
 0xb2a   : > { %8714 = vst.msk [vmem:[#allocation2 + $0x10] sm:$0xff] %vm8711_vm5, %v8668_v47 }
 0xb2c   : > { %13173 = vmatpush3.bf16.msra.mxu1 %v13148_v28  ;;  %13159 = vmatpush3.bf16.msra.mxu0 %v13156_v49 }
 0xb2d   : > { %v8670_v35 = vpop.permute.xlu0 %8669  ;;  %13166 = vmatprep.subr.bf16.mxu1 %v13152_v38 }
 0xb2e   : > { %8715 = vst.msk [vmem:[#allocation2 + $0x18] sm:$0xff] %vm8711_vm5, %v8670_v35 }
 0xb30   : > { %13174 = vmatpush3.bf16.msra.mxu1 %v13152_v38 }
 0xb31   : > { %v5919_v11 = vpop.permute.xlu0 %5918  ;;  %13167 = vmatprep.subr.bf16.mxu1 %v13156_v49 }
 0xb32   : > { %5963 = vst.msk [vmem:[#allocation2 + $0x20] sm:$0xff] %vm5958_vm4, %v5919_v11 }
 0xb34   : > { %13175 = vmatpush3.bf16.msra.mxu1 %v13156_v49 }
 0xb35   : > { %v5921_v24 = vpop.permute.xlu0 %5920 }
 0xb36   : > { %5964 = vst.msk [vmem:[#allocation2 + $0x28] sm:$0xff] %vm5958_vm4, %v5921_v24 }
 0xb39   : > { %v8672_v52 = vpop.permute.xlu0 %8671 }
 0xb3a   : > { %8716 = vst.msk [vmem:[#allocation2 + $0x20] sm:$0xff] %vm8711_vm5, %v8672_v52 }
 0xb3d   : > { %v8674_v27 = vpop.permute.xlu0 %8673 }
 0xb3e   : > { %8717 = vst.msk [vmem:[#allocation2 + $0x28] sm:$0xff] %vm8711_vm5, %v8674_v27 }
 0xb41   : > { %v5923_v50 = vpop.permute.xlu0 %5922 }
 0xb42   : > { %5965 = vst.msk [vmem:[#allocation2 + $0x30] sm:$0xff] %vm5958_vm4, %v5923_v50 }
 0xb45   : > { %v5925_v2 = vpop.permute.xlu0 %5924 }
 0xb46   : > { %5966 = vst.msk [vmem:[#allocation2 + $0x38] sm:$0xff] %vm5958_vm4, %v5925_v2 }
 0xb49   : > { %v8676_v30 = vpop.permute.xlu0 %8675 }
 0xb4a   : > { %8718 = vst.msk [vmem:[#allocation2 + $0x30] sm:$0xff] %vm8711_vm5, %v8676_v30 }
 0xb4d   : > { %v8678_v37 = vpop.permute.xlu0 %8677 }
 0xb4e   : > { %8719 = vst.msk [vmem:[#allocation2 + $0x38] sm:$0xff] %vm8711_vm5, %v8678_v37 }
 0xb9a   : > { %v10256_v33 = vpop.f32.mrb[136].mxu0 }
 0xb9b   : > { %11416 = vrot.lane.b32.xlu0 %v10256_v33, %s13678_s18  ;;  %v12932_v62 = vpop.f32.mrb[137].mxu0 }
 0xb9d   : > { %v10332_v26 = vpop.f32.mrb[136].mxu1 }
 0xb9e   : > { %v12937_v1 = vpop.f32.mrb[137].mxu1  ;;  %v10408_v5 = vpop.f32.mrb[138].mxu0 }
 0xb9f   : > { %11418 = vrot.lane.b32.xlu0 %v10332_v26, %s13678_s18  ;;  %v12942_v36 = vpop.f32.mrb[139].mxu0 }
 0xba2   : > { %v10484_v19 = vpop.f32.mrb[138].mxu1 }
 0xba3   : > { %v12947_v57 = vpop.f32.mrb[139].mxu1  ;;  %11420 = vrot.lane.b32.xlu0 %v10408_v5, %s13678_s18 }
 0xba6   : > { %v10636_v34 = vpop.f32.mrb[140].mxu1 }
 0xba7   : > { %v10560_v15 = vpop.f32.mrb[140].mxu0  ;;  %v12957_v29 = vpop.f32.mrb[141].mxu1  ;;  %11422 = vrot.lane.b32.xlu0 %v10484_v19, %s13678_s18 }
 0xba8   : > { %v12952_v51 = vpop.f32.mrb[141].mxu0 }
 0xbaa   : > { %v10788_v8 = vpop.f32.mrb[142].mxu1 }
 0xbab   : > { %v10712_v18 = vpop.f32.mrb[142].mxu0  ;;  %v12967_v46 = vpop.f32.mrb[143].mxu1  ;;  %11424 = vrot.lane.b32.xlu0 %v10560_v15, %s13678_s18 }
 0xbac   : > { %v12962_v17 = vpop.f32.mrb[143].mxu0 }
 0xbae   : > { %v10940_v12 = vpop.f32.mrb[144].mxu1 }
 0xbaf   : > { %v10864_v14 = vpop.f32.mrb[144].mxu0  ;;  %v12977_v13 = vpop.f32.mrb[145].mxu1  ;;  %11426 = vrot.lane.b32.xlu0 %v10636_v34, %s13678_s18 }
 0xbb0   : > { %11432 = vrot.lane.b32.xlu1 %v10864_v14, %s13678_s18  ;;  %v12972_v40 = vpop.f32.mrb[145].mxu0 }
 0xbb2   : > { %v11092_v22 = vpop.f32.mrb[146].mxu1 }
 0xbb3   : > { %v11016_v59 = vpop.f32.mrb[146].mxu0  ;;  %v12987_v56 = vpop.f32.mrb[147].mxu1  ;;  %11428 = vrot.lane.b32.xlu0 %v10712_v18, %s13678_s18 }
 0xbb4   : > { %11434 = vrot.lane.b32.xlu1 %v10940_v12, %s13678_s18  ;;  %v12982_v16 = vpop.f32.mrb[147].mxu0 }
 0xbb6   : > { %v11244_v44 = vpop.f32.mrb[148].mxu1 }
 0xbb7   : > { %v11168_v41 = vpop.f32.mrb[148].mxu0  ;;  %v12997_v55 = vpop.f32.mrb[149].mxu1  ;;  %11430 = vrot.lane.b32.xlu0 %v10788_v8, %s13678_s18 }
 0xbb8   : > { %11436 = vrot.lane.b32.xlu1 %v11016_v59, %s13678_s18  ;;  %v12992_v6 = vpop.f32.mrb[149].mxu0 }
 0xbbc   : > { %11438 = vrot.lane.b32.xlu1 %v11092_v22, %s13678_s18 }
 0xbc0   : > { %11440 = vrot.lane.b32.xlu1 %v11168_v41, %s13678_s18 }
 0xbc4   : > { %11442 = vrot.lane.b32.xlu1 %v11244_v44, %s13678_s18 }
 0xbe2   : > { %v11320_v43 = vpop.f32.mrb[150].mxu0 }
 0xbe3   : > { %11444 = vrot.lane.b32.xlu1 %v11320_v43, %s13678_s18  ;;  %v13002_v9 = vpop.f32.mrb[151].mxu0 }
 0xbea   : > { %v11396_v47 = vpop.f32.mrb[150].mxu1 }
 0xbeb   : > { %v13007_v35 = vpop.f32.mrb[151].mxu1  ;;  %11446 = vrot.lane.b32.xlu1 %v11396_v47, %s13678_s18 }
 0xc0d   : > { %v11417_v11 = vpop.permute.xlu0 %11416 }
 0xc0e   : > { %11465 = vst.msk [vmem:[#allocation2] sm:$0xff] %vm11464_vm6, %v11417_v11 }
 0xc11   : > { %v11419_v24 = vpop.permute.xlu0 %11418 }
 0xc12   : > { %11466 = vst.msk [vmem:[#allocation2 + $0x8] sm:$0xff] %vm11464_vm6, %v11419_v24 }
 0xc15   : > { %v11421_v52 = vpop.permute.xlu0 %11420  ;;  %v11481_v27 = vld [vmem:[#allocation2] sm:$0xff] }
 0xc16   : > { %11467 = vst.msk [vmem:[#allocation2 + $0x10] sm:$0xff] %vm11464_vm6, %v11421_v52  ;;  %13040 = vmatprep.mubr.f32.mxu0 %v11481_v27 }
 0xc19   : > { %v11423_v50 = vpop.permute.xlu0 %11422  ;;  %v11482_v2 = vld [vmem:[#allocation2 + $0x8] sm:$0xff] }
 0xc1a   : > { %11468 = vst.msk [vmem:[#allocation2 + $0x18] sm:$0xff] %vm11464_vm6, %v11423_v50  ;;  %13041 = vmatmul.mubr.f32.vlgmr.msra.gmra.mrb[152].mxu0 %v11482_v2 }
 0xc1d   : > { %v11425_v30 = vpop.permute.xlu0 %11424  ;;  %v11483_v37 = vld [vmem:[#allocation2 + $0x10] sm:$0xff] }
 0xc1e   : > { %11469 = vst.msk [vmem:[#allocation2 + $0x20] sm:$0xff] %vm11464_vm6, %v11425_v30  ;;  %13043 = vmatprep.mubr.f32.mxu0 %v11483_v37 }
 0xc21   : > { %v11427_v0 = vpop.permute.xlu0 %11426  ;;  %v11484_v45 = vld [vmem:[#allocation2 + $0x18] sm:$0xff] }
 0xc22   : > { %11470 = vst.msk [vmem:[#allocation2 + $0x28] sm:$0xff] %vm11464_vm6, %v11427_v0  ;;  %v11433_v4 = vpop.permute.xlu1 %11432  ;;  %13044 = vmatmul.mubr.f32.gmra.mrb[154].mxu0 %v11484_v45 }
 0xc23   : > { %11473 = vst.msk [vmem:[#allocation2 + $0x40] sm:$0xff] %vm11464_vm6, %v11433_v4 }
 0xc25   : > { %v11429_v54 = vpop.permute.xlu0 %11428  ;;  %v11485_v31 = vld [vmem:[#allocation2 + $0x20] sm:$0xff] }
 0xc26   : > { %11471 = vst.msk [vmem:[#allocation2 + $0x30] sm:$0xff] %vm11464_vm6, %v11429_v54  ;;  %v11435_v7 = vpop.permute.xlu1 %11434  ;;  %13046 = vmatprep.mubr.f32.mxu0 %v11485_v31 }
 0xc27   : > { %11474 = vst.msk [vmem:[#allocation2 + $0x48] sm:$0xff] %vm11464_vm6, %v11435_v7 }
 0xc29   : > { %v11431_v48 = vpop.permute.xlu0 %11430  ;;  %v11486_v3 = vld [vmem:[#allocation2 + $0x28] sm:$0xff] }
 0xc2a   : > { %11472 = vst.msk [vmem:[#allocation2 + $0x38] sm:$0xff] %vm11464_vm6, %v11431_v48  ;;  %v11437_v32 = vpop.permute.xlu1 %11436  ;;  %13047 = vmatmul.mubr.f32.gmra.mrb[156].mxu0 %v11486_v3  ;;  %v11489_v58 = vld [vmem:[#allocation2 + $0x40] sm:$0xff] }
 0xc2b   : > { %11475 = vst.msk [vmem:[#allocation2 + $0x50] sm:$0xff] %vm11464_vm6, %v11437_v32  ;;  %13052 = vmatprep.mubr.f32.mxu1 %v11489_v58 }
 0xc2d   : > { %v11487_v60 = vld [vmem:[#allocation2 + $0x30] sm:$0xff] }
 0xc2e   : > { %v11439_v21 = vpop.permute.xlu1 %11438  ;;  %13049 = vmatprep.mubr.f32.mxu0 %v11487_v60  ;;  %v11490_v42 = vld [vmem:[#allocation2 + $0x48] sm:$0xff] }
 0xc2f   : > { %11476 = vst.msk [vmem:[#allocation2 + $0x58] sm:$0xff] %vm11464_vm6, %v11439_v21  ;;  %13053 = vmatmul.mubr.f32.vlgmr.msra.gmra.mrb[152].mxu1 %v11490_v42 }
 0xc31   : > { %v11488_v39 = vld [vmem:[#allocation2 + $0x38] sm:$0xff] }
 0xc32   : > { %v11441_v61 = vpop.permute.xlu1 %11440  ;;  %13050 = vmatmul.mubr.f32.gmra.mrb[158].mxu0 %v11488_v39  ;;  %v11491_v25 = vld [vmem:[#allocation2 + $0x50] sm:$0xff] }
 0xc33   : > { %11477 = vst.msk [vmem:[#allocation2 + $0x60] sm:$0xff] %vm11464_vm6, %v11441_v61  ;;  %13055 = vmatprep.mubr.f32.mxu1 %v11491_v25 }
 0xc36   : > { %v11443_v23 = vpop.permute.xlu1 %11442  ;;  %v11492_v28 = vld [vmem:[#allocation2 + $0x58] sm:$0xff] }
 0xc37   : > { %11478 = vst.msk [vmem:[#allocation2 + $0x68] sm:$0xff] %vm11464_vm6, %v11443_v23  ;;  %13056 = vmatmul.mubr.f32.gmra.mrb[154].mxu1 %v11492_v28 }
 0xc3a   : > { %v11493_v53 = vld [vmem:[#allocation2 + $0x60] sm:$0xff] }
 0xc3b   : > { %13058 = vmatprep.mubr.f32.mxu1 %v11493_v53 }
 0xc3e   : > { %v11494_v10 = vld [vmem:[#allocation2 + $0x68] sm:$0xff] }
 0xc3f   : > { %13059 = vmatmul.mubr.f32.gmra.mrb[156].mxu1 %v11494_v10 }
 0xc55   : > { %v11445_v38 = vpop.permute.xlu1 %11444 }
 0xc56   : > { %11479 = vst.msk [vmem:[#allocation2 + $0x70] sm:$0xff] %vm11464_vm6, %v11445_v38 }
 0xc5d   : > { %v11447_v20 = vpop.permute.xlu1 %11446  ;;  %v11495_v63 = vld [vmem:[#allocation2 + $0x70] sm:$0xff] }
 0xc5e   : > { %11480 = vst.msk [vmem:[#allocation2 + $0x78] sm:$0xff] %vm11464_vm6, %v11447_v20  ;;  %13061 = vmatprep.mubr.f32.mxu1 %v11495_v63 }
 0xc65   : > { %v11496_v49 = vld [vmem:[#allocation2 + $0x78] sm:$0xff] }
 0xc66   : > { %13062 = vmatmul.mubr.f32.gmra.mrb[158].mxu1 %v11496_v49 }
 0xced   : > { %v13042_v33 = vpop.f32.mrb[152].mxu0 }
 0xcee   : > { %11659 = vst [vmem:[%s16111_s30 + $0x8] sm:$0xff] %v13042_v33  ;;  %v11579_v62 = vpop.f32.mrb[153].mxu0 }
 0xcef   : > { %11658 = vst [vmem:[%s16111_s30] sm:$0xff] %v11579_v62 }
 0xcf5   : > { %v13045_v26 = vpop.f32.mrb[154].mxu0 }
 0xcf6   : > { %11661 = vst [vmem:[%s16111_s30 + $0x18] sm:$0xff] %v13045_v26  ;;  %v11589_v1 = vpop.f32.mrb[155].mxu0 }
 0xcf7   : > { %11660 = vst [vmem:[%s16111_s30 + $0x10] sm:$0xff] %v11589_v1 }
 0xcfd   : > { %v13048_v5 = vpop.f32.mrb[156].mxu0 }
 0xcfe   : > { %11663 = vst [vmem:[%s16111_s30 + $0x28] sm:$0xff] %v13048_v5  ;;  %v11599_v36 = vpop.f32.mrb[157].mxu0 }
 0xcff   : > { %11662 = vst [vmem:[%s16111_s30 + $0x20] sm:$0xff] %v11599_v36 }
 0xd02   : > { %v13054_v19 = vpop.f32.mrb[152].mxu1 }
 0xd03   : > { %11667 = vst [vmem:[%s16111_s30 + $0x48] sm:$0xff] %v13054_v19  ;;  %v11619_v57 = vpop.f32.mrb[153].mxu1 }
 0xd04   : > { %11666 = vst [vmem:[%s16111_s30 + $0x40] sm:$0xff] %v11619_v57 }
 0xd05   : > { %v13051_v34 = vpop.f32.mrb[158].mxu0 }
 0xd06   : > { %11665 = vst [vmem:[%s16111_s30 + $0x38] sm:$0xff] %v13051_v34  ;;  %v11609_v15 = vpop.f32.mrb[159].mxu0 }
 0xd07   : > { %11664 = vst [vmem:[%s16111_s30 + $0x30] sm:$0xff] %v11609_v15 }
 0xd0a   : > { %v13057_v29 = vpop.f32.mrb[154].mxu1 }
 0xd0b   : > { %11669 = vst [vmem:[%s16111_s30 + $0x58] sm:$0xff] %v13057_v29  ;;  %v11629_v51 = vpop.f32.mrb[155].mxu1 }
 0xd0c   : > { %11668 = vst [vmem:[%s16111_s30 + $0x50] sm:$0xff] %v11629_v51 }
 0xd12   : > { %v13060_v8 = vpop.f32.mrb[156].mxu1 }
 0xd13   : > { %11671 = vst [vmem:[%s16111_s30 + $0x68] sm:$0xff] %v13060_v8  ;;  %v11639_v18 = vpop.f32.mrb[157].mxu1 }
 0xd14   : > { %11670 = vst [vmem:[%s16111_s30 + $0x60] sm:$0xff] %v11639_v18 }
 0xd39   : > { %v13063_v46 = vpop.f32.mrb[158].mxu1 }
 0xd3a   : > { %11673 = vst [vmem:[%s16111_s30 + $0x78] sm:$0xff] %v13063_v46  ;;  %v11649_v17 = vpop.f32.mrb[159].mxu1 }
 0xd3b   : > { %11672 = vst [vmem:[%s16111_s30 + $0x70] sm:$0xff] %v11649_v17 }
 0xd3c   : > { %13610 = shalt.err (!%p13607_p2)
}
 0xd3d   : > { %s13611_s26 = scalar_lea.hbm %s16132_s11, 2048  ;;  %s13615_s28 = scalar_lea.hbm %s16183_s3, 4096 }
 0xd3e   : > { %p13612_p13 = scmp.ne.s32.totalorder %s16132_s11, %s13611_s26  ;;  %p13616_p4 = scmp.lt.u32.totalorder %s16132_s11, %s16183_s3 }
 0xd3f   : > { %p13617_p7 = scmp.lt.u32.totalorder %s13615_s28, %s13611_s26  ;;  %p13619_p11 = scmp.lt.u32.totalorder %s13611_s26, %s16132_s11 }
 0xd40   : > { %p13613_p6 = pnand %p13612_p13, %p16445_p0 }
 0xd41   : > { %p13618_p8 = por %p13617_p7, %p13616_p4 }
 0xd42   : > { %p13614_p10 = pneg %p13613_p6 }
 0xd43   : > { %p13620_p1 = por %p13619_p11, %p13618_p8 }
 0xd45   : > { %p13621_p3 = pnand %p13620_p1, %p13614_p10 }
 0xd47   : > { %13624 = shalt.err (!%p13621_p3)
}
 0xd48   : > { %s13683_s29 = smov 128   ;;  %s13684_s30 = smov 8  }
 0xd49   : > { %13186 = dma.vmem_to_hbm [thread:$0]  (%p16445_p0), %s16134_s27, 2048, %s16132_s11, %s11675_s25, %s13683_s29, %s13683_s29, %s13684_s30  }
 0xd4a PF: > { %s11703_s24 = sand.u32 1, %s13655_s12   ;;  %p16446_p5 = scmp.ne.s32.totalorder %s16244_s19, 0 }
 0xd4b   : > { %p16447_p9 = scmp.ge.s32.totalorder %s13667_s15, 2  ;;  %s11704_s22 = scalar_lea.sflag [#allocation5], %s11703_s24 }
 0xd4d   : > { %p13200_p12 = pnand %p16447_p9, %p16446_p5 }
 0xd4f   : > { %13650 = dma.done.wait (!%p13200_p12), %s11704_s22, 2048  }
 0xd50   : > { %13652 = vsyncadd (!%p13200_p12), %s11704_s22, 4294965248  ;;  %p17_p2 = scmp.ge.s32.totalorder %s13818_s6, 4   ;;  %s16448_s12 = smov %s13659_s13 }
 0xd51   : > { %s16449_s13 = smov %s13663_s14  ;;  %s16450_s14 = smov %s13827_s9 }
 0xd52   : > { %s16451_s15 = smov %s13818_s6  ;;  %19 = sbr.rel (!%p17_p2) target bundleno = 6 (0x6), region = 85 }
 0xd59   :  { %11709 = vsyncpa [#allocation4], 1 }
 0xd5a   :  { %11711 = vsyncpa [#allocation4 + $0x1], 1 }
 0xd5b   :  { %11712 = vsyncpa [#allocation7], 1 }
 0xd5c   :  { %11713 = vsyncpa [#allocation5], 1 }
 0xd5d   :  { %11715 = vsyncpa [#allocation5 + $0x1], 1 }

</bundles_post_ra>
